<compile_context>
chip_gen: v6e
topology: v6e:2x2x1
jax: 0.10.0
libtpu: 0.0.40
codegen_flags: <defaults>
</compile_context>

<pallas_src>
import functools

import jax
import jax.numpy as jnp
from jax import lax
from jax.experimental import pallas as pl
from jax.experimental.pallas import tpu as pltpu


# ----------------------------------------------------------------------------
# Pallas kernel: fused (multi-operand) matmul + bias + PReLU epilogue.
# Full-K single pass; when the logical LHS is a channel concat of several
# feature buffers, each piece is a separate operand and the kernel accumulates
# per-piece dots (no HBM concat ever materializes).
# ----------------------------------------------------------------------------
def _make_mm_cat_kernel(n_parts):
    def kernel(*refs):
        xs = refs[:n_parts]
        ws = refs[n_parts:2 * n_parts]
        b_ref = refs[2 * n_parts]
        a_ref = refs[2 * n_parts + 1]
        o_ref = refs[2 * n_parts + 2]
        y = jnp.dot(xs[0][...], ws[0][...], preferred_element_type=jnp.float32)
        for j in range(1, n_parts):
            y = y + jnp.dot(xs[j][...], ws[j][...],
                            preferred_element_type=jnp.float32)
        y = y + b_ref[...]                       # (bm, N) + (1, N)
        a = a_ref[0]                             # shared PReLU slope (SMEM)
        o_ref[...] = jnp.where(y > 0, y, a * y).astype(o_ref.dtype)
    return kernel


@functools.lru_cache(maxsize=None)
def _vmem_budget_bytes():
    """~75% of this generation's physical VMEM (64 MiB v7x, 128 MiB v5e/v6e)."""
    cap = 64 * 1024 * 1024                       # conservative fallback
    try:
        cap = int(getattr(pltpu.get_tpu_info(), "vmem_capacity_bytes", cap))
    except Exception:
        pass
    return (3 * cap) // 4


def _round_up(v, m):
    return ((v + m - 1) // m) * m


def _pick_block_m(M, K, N, tm_max=4096):
    """Largest 16-multiple M tile that fits the VMEM budget; at least 2 grid
    steps whenever M >= 256 so both TensorCores get work on v7x."""
    budget = _vmem_budget_bytes()
    bm = min(tm_max, _round_up(M, 16))
    if M >= 256:
        bm = min(bm, _round_up(-(-M // 2), 16))

    def usage(b):
        # 2x bf16 LHS (double buffer) + 2x bf16 weights + bias row
        # + 2x bf16 out tile + f32 epilogue temporaries.
        return (2 * b * K * 2) + (2 * K * N * 2) + (N * 4) \
            + (2 * b * N * 2) + (b * N * 4)

    while bm > 16 and usage(bm) > budget:
        bm = max(16, _round_up(bm // 2, 16))
    return bm, budget


def matmul_cat_bias_prelu(xs, ws, b_row, alpha, *, tm_max=4096):
    """PReLU(concat(xs, -1) @ concat(ws, 0) + b) without materializing concat.

    xs: list of (M, C_j) activations (cast to bf16); ws: matching list of
    (C_j, N) bf16 weight slices; b_row: (1, N) f32; alpha: (1,) f32 shared
    PReLU slope (num_parameters=1). Output is bf16.
    """
    n_parts = len(xs)
    assert len(ws) == n_parts
    M = xs[0].shape[0]
    ks = [x.shape[1] for x in xs]
    N = ws[0].shape[1]
    K = sum(ks)
    bm, budget = _pick_block_m(M, K, N, tm_max)
    grid_m = pl.cdiv(M, bm)

    xs = [x if x.dtype == jnp.bfloat16 else x.astype(jnp.bfloat16) for x in xs]

    in_specs = (
        [pl.BlockSpec((bm, kj), lambda i: (i, 0)) for kj in ks]      # LHS tiles
        + [pl.BlockSpec((kj, N), lambda i: (0, 0)) for kj in ks]     # weights
        + [pl.BlockSpec((1, N), lambda i: (0, 0)),                   # bias row
           pl.BlockSpec(memory_space=pltpu.MemorySpace.SMEM)])       # alpha

    return pl.pallas_call(
        _make_mm_cat_kernel(n_parts),
        out_shape=jax.ShapeDtypeStruct((M, N), jnp.bfloat16),
        grid=(grid_m,),
        in_specs=in_specs,
        out_specs=pl.BlockSpec((bm, N), lambda i: (i, 0)),
        compiler_params=pltpu.CompilerParams(
            dimension_semantics=("parallel",),
            vmem_limit_bytes=budget),
    )(*xs, *ws, b_row, alpha)


# ----------------------------------------------------------------------------
# Conv glue (im2col / pixel-shuffle); matmul+bias+PReLU always run in Pallas
# ----------------------------------------------------------------------------
def _im2col(x, kh, kw, sh, sw, pad):
    """x: (N,H,W,C) -> (N,Ho,Wo,kh*kw*C); patch layout ((i,j) outer, C inner)."""
    if pad:
        x = jnp.pad(x, ((0, 0), (pad, pad), (pad, pad), (0, 0)))
    _, Hp, Wp, _ = x.shape
    Ho = (Hp - kh) // sh + 1
    Wo = (Wp - kw) // sw + 1
    cols = []
    for i in range(kh):
        for j in range(kw):
            cols.append(x[:, i:i + (Ho - 1) * sh + 1:sh,
                          j:j + (Wo - 1) * sw + 1:sw, :])
    return jnp.concatenate(cols, axis=-1), Ho, Wo


def conv1x1_cat_prelu(features, cfg):
    """1x1 conv + PReLU over the channel-concat of `features`; the concat is
    folded into the kernel (one operand + weight slice per feature buffer)."""
    n, h, w = features[0].shape[:3]
    xs = [f.reshape(n * h * w, f.shape[-1]) for f in features]
    y = matmul_cat_bias_prelu(xs, cfg["w_parts"], cfg["b"], cfg["a"])
    return y.reshape(n, h, w, -1)


def conv2d_prelu(x, cfg, stride, padding):
    # TODO(synk): the stride-s im2col tensor is still materialized in HBM
    # (k^2/s^2 read blow-up); fusing the tap loop into the kernel needs
    # stride-s window DMAs under memory_space=pl.ANY and is left out.
    k = cfg["k"]
    col, Ho, Wo = _im2col(x, k, k, stride, stride, padding)
    y = matmul_cat_bias_prelu([col.reshape(-1, col.shape[-1])],
                              [cfg["w"]], cfg["b"], cfg["a"])
    return y.reshape(x.shape[0], Ho, Wo, -1)


def conv_transpose2d_prelu(x, cfg, stride, padding):
    """ConvTranspose2d + PReLU as ONE lane-dense matmul.

    All s^2 output phases of one output super-pixel read the same
    (hi-lo+1)^2 window of LR pixels, so a union-tap weight matrix of shape
    (win^2*Cin, s^2*Cout) (zeros for taps a phase doesn't use) computes every
    phase at once; the result is pixel-shuffled onto the HR grid.
    """
    n, H, W, _ = x.shape
    s, k, cout = stride, cfg["k"], cfg["cout"]
    lo, hi = cfg["lo"], cfg["hi"]
    win = hi - lo + 1
    Ho = (H - 1) * s + k - 2 * padding
    Wo = (W - 1) * s + k - 2 * padding
    Hs, Ws = -(-Ho // s), -(-Wo // s)            # output super-pixels
    pad_t = pad_l = -lo
    pad_b = (Hs - 1) + hi - (H - 1)
    pad_r = (Ws - 1) + hi - (W - 1)
    assert min(pad_t, pad_b, pad_l, pad_r) >= 0, (pad_t, pad_b, pad_l, pad_r)
    xp = jnp.pad(x, ((0, 0), (pad_t, pad_b), (pad_l, pad_r), (0, 0)))
    col, hs2, ws2 = _im2col(xp, win, win, 1, 1, 0)
    assert (hs2, ws2) == (Hs, Ws), ((hs2, ws2), (Hs, Ws))
    y = matmul_cat_bias_prelu([col.reshape(-1, col.shape[-1])],
                              [cfg["w"]], cfg["b"], cfg["a"])
    y = y.reshape(n, Hs, Ws, s, s, cout)
    y = jnp.transpose(y, (0, 1, 3, 2, 4, 5)).reshape(n, Hs * s, Ws * s, cout)
    return y[:, :Ho, :Wo, :]


# ----------------------------------------------------------------------------
# Parameters (PyTorch layout) + one-time preparation into matmul-ready layouts
# ----------------------------------------------------------------------------
def init_feedback_block_params(key, mid_channels, num_blocks, upscale_factor,
                               prelu_init=0.2):
    k = upscale_factor + 4
    C = mid_channels

    def conv_p(key, cout, cin, ksz):
        kw_, kb = jax.random.split(key)
        w = jax.random.normal(kw_, (cout, cin, ksz, ksz), jnp.float32) * 0.1
        b = jax.random.normal(kb, (cout,), jnp.float32) * 0.01
        return (w, b, jnp.float32(prelu_init))

    def convT_p(key, cin, cout, ksz):
        kw_, kb = jax.random.split(key)
        w = jax.random.normal(kw_, (cin, cout, ksz, ksz), jnp.float32) * 0.1
        b = jax.random.normal(kb, (cout,), jnp.float32) * 0.01
        return (w, b, jnp.float32(prelu_init))

    keys = jax.random.split(key, 2 + 4 * num_blocks)
    ki = iter(keys)
    params = {
        "conv_first": conv_p(next(ki), C, 2 * C, 1),
        "up_blocks": [], "down_blocks": [], "lr_blocks": [], "hr_blocks": [],
    }
    for idx in range(num_blocks):
        params["up_blocks"].append(convT_p(next(ki), C, C, k))
        params["down_blocks"].append(conv_p(next(ki), C, C, k))
        if idx > 0:
            params["lr_blocks"].append(conv_p(next(ki), C, C * (idx + 1), 1))
            params["hr_blocks"].append(conv_p(next(ki), C, C * (idx + 1), 1))
    params["conv_last"] = conv_p(next(ki), C, num_blocks * C, 1)
    return params


def prepare_params(raw, upscale_factor, padding=2):
    """One-time conversion to matmul-ready bf16 weight layouts."""
    s = upscale_factor
    C = raw["conv_first"][0].shape[0]            # mid_channels

    def bias_alpha(b, a):
        return (b.reshape(1, -1).astype(jnp.float32),
                jnp.reshape(jnp.asarray(a, jnp.float32), (1,)))

    def prep_1x1(p):
        w, b, a = p                              # (cout, cin, 1, 1)
        cout, cin = w.shape[0], w.shape[1]
        assert cin % C == 0
        wm = jnp.transpose(w.reshape(cout, cin), (1, 0)).astype(jnp.bfloat16)
        parts = [wm[j * C:(j + 1) * C, :] for j in range(cin // C)]
        br, av = bias_alpha(b, a)
        return {"w_parts": parts, "b": br, "a": av}

    def prep_conv(p):
        w, b, a = p                              # (cout, cin, k, k)
        cout, cin, k, _ = w.shape
        wm = jnp.transpose(w, (2, 3, 1, 0)).reshape(k * k * cin, cout)
        br, av = bias_alpha(b, a)
        return {"w": wm.astype(jnp.bfloat16), "b": br, "a": av, "k": k}

    def prep_convT(p):
        w, b, a = p                              # (cin, cout, k, k)
        cin, cout, k, _ = w.shape
        lo = -((k - 1 - padding) // s)           # ceil((padding - k + 1) / s)
        hi = (s - 1 + padding) // s
        win = hi - lo + 1
        wf = jnp.zeros((win, win, cin, s, s, cout), jnp.float32)
        for di_idx in range(win):
            for dj_idx in range(win):
                for ry in range(s):
                    i = ry + padding - (lo + di_idx) * s
                    if not 0 <= i < k:
                        continue
                    for rx in range(s):
                        j = rx + padding - (lo + dj_idx) * s
                        if not 0 <= j < k:
                            continue
                        wf = wf.at[di_idx, dj_idx, :, ry, rx, :].set(w[:, :, i, j])
        wm = wf.reshape(win * win * cin, s * s * cout).astype(jnp.bfloat16)
        bias = jnp.tile(b.astype(jnp.float32), (s * s,)).reshape(1, -1)
        _, av = bias_alpha(b, a)
        return {"w": wm, "b": bias, "a": av, "k": k, "cout": cout,
                "lo": lo, "hi": hi}

    return {
        "conv_first": prep_1x1(raw["conv_first"]),
        "conv_last": prep_1x1(raw["conv_last"]),
        "up_blocks": [prep_convT(p) for p in raw["up_blocks"]],
        "down_blocks": [prep_conv(p) for p in raw["down_blocks"]],
        "lr_blocks": [prep_1x1(p) for p in raw["lr_blocks"]],
        "hr_blocks": [prep_1x1(p) for p in raw["hr_blocks"]],
    }


# ----------------------------------------------------------------------------
# FeedbackBlock forward (mirrors the PyTorch module; last_hidden=None <=> reset)
# ----------------------------------------------------------------------------
def feedback_block_forward(x_nchw, prepared, num_blocks, upscale_factor,
                           padding=2, last_hidden_nchw=None):
    stride = upscale_factor
    x = jnp.transpose(x_nchw, (0, 2, 3, 1)).astype(jnp.bfloat16)      # NHWC
    last_hidden = (x if last_hidden_nchw is None else
                   jnp.transpose(last_hidden_nchw,
                                 (0, 2, 3, 1)).astype(jnp.bfloat16))

    x = conv1x1_cat_prelu([x, last_hidden], prepared["conv_first"])

    lr_features = [x]
    hr_features = []
    for idx in range(num_blocks):
        lr = (lr_features[0] if idx == 0 else
              conv1x1_cat_prelu(lr_features, prepared["lr_blocks"][idx - 1]))
        hr = conv_transpose2d_prelu(lr, prepared["up_blocks"][idx],
                                    stride, padding)
        hr_features.append(hr)
        hr = (hr_features[0] if idx == 0 else
              conv1x1_cat_prelu(hr_features, prepared["hr_blocks"][idx - 1]))
        lr = conv2d_prelu(hr, prepared["down_blocks"][idx], stride, padding)
        lr_features.append(lr)

    out = conv1x1_cat_prelu(lr_features[1:], prepared["conv_last"])
    return jnp.transpose(out.astype(jnp.float32), (0, 3, 1, 2))       # NCHW


# ----------------------------------------------------------------------------
# Pure-JAX reference (f32 math on bf16-rounded weights) for a numeric check
# ----------------------------------------------------------------------------
def feedback_block_reference(x_nchw, raw, num_blocks, upscale_factor,
                             padding=2, last_hidden_nchw=None):
    s = upscale_factor

    def prelu(x, a):
        return jnp.where(x > 0, x, a * x)

    def conv(x, w, b, stride, pad):          # x NHWC, w OIHW (PyTorch Conv2d)
        w = w.astype(jnp.bfloat16).astype(jnp.float32)
        y = lax.conv_general_dilated(
            x, jnp.transpose(w, (2, 3, 1, 0)),
            window_strides=(stride, stride), padding=((pad, pad), (pad, pad)),
            dimension_numbers=("NHWC", "HWIO", "NHWC"))
        return y + b.reshape(1, 1, 1, -1)

    def convT(x, w, b, stride, pad):         # w (Cin,Cout,k,k) (ConvTranspose2d)
        w = w.astype(jnp.bfloat16).astype(jnp.float32)
        k = w.shape[2]
        q = k - 1 - pad
        y = lax.conv_general_dilated(
            x, jnp.transpose(w[:, :, ::-1, ::-1], (2, 3, 0, 1)),
            window_strides=(1, 1), padding=((q, q), (q, q)),
            lhs_dilation=(stride, stride),
            dimension_numbers=("NHWC", "HWIO", "NHWC"))
        return y + b.reshape(1, 1, 1, -1)

    def seq_conv(x, p, stride, pad):
        w, b, a = p
        return prelu(conv(x, w, b, stride, pad), a)

    def seq_convT(x, p, stride, pad):
        w, b, a = p
        return prelu(convT(x, w, b, stride, pad), a)

    x = jnp.transpose(x_nchw, (0, 2, 3, 1))
    last_hidden = (x if last_hidden_nchw is None
                   else jnp.transpose(last_hidden_nchw, (0, 2, 3, 1)))
    x = jnp.concatenate([x, last_hidden], axis=-1)
    x = seq_conv(x, raw["conv_first"], 1, 0)
    lr_features = [x]
    hr_features = []
    for idx in range(num_blocks):
        lr = jnp.concatenate(lr_features, axis=-1)
        if idx > 0:
            lr = seq_conv(lr, raw["lr_blocks"][idx - 1], 1, 0)
        hr = seq_convT(lr, raw["up_blocks"][idx], s, padding)
        hr_features.append(hr)
        hr = jnp.concatenate(hr_features, axis=-1)
        if idx > 0:
            hr = seq_conv(hr, raw["hr_blocks"][idx - 1], 1, 0)
        lr = seq_conv(hr, raw["down_blocks"][idx], s, padding)
        lr_features.append(lr)
    out = jnp.concatenate(lr_features[1:], axis=-1)
    out = seq_conv(out, raw["conv_last"], 1, 0)
    return jnp.transpose(out, (0, 3, 1, 2))


# ----------------------------------------------------------------------------
if __name__ == "__main__":
    batch = 2
    mid_channels = 4
    num_blocks = 2
    upscale_factor = 2
    H = W = 16

    key = jax.random.PRNGKey(0)
    k_in, k_par = jax.random.split(key)
    x = jax.random.normal(k_in, (batch, mid_channels, H, W), jnp.float32)
    raw = init_feedback_block_params(k_par, mid_channels, num_blocks,
                                     upscale_factor)
    prepared = prepare_params(raw, upscale_factor, padding=2)

    fwd = jax.jit(lambda inp: feedback_block_forward(
        inp, prepared, num_blocks=num_blocks,
        upscale_factor=upscale_factor, padding=2))
    out = jax.block_until_ready(fwd(x))       # need_reset path (last_hidden = x)

    assert out.shape == (batch, mid_channels, H, W), out.shape
    assert bool(jnp.all(jnp.isfinite(out)))

    # Numeric cross-check against a pure-JAX f32 reference (same bf16 weights);
    # tolerance absorbs the bf16 activation rounding of the kernel path.
    ref = jax.block_until_ready(
        feedback_block_reference(x, raw, num_blocks, upscale_factor, padding=2))
    rel_err = jnp.linalg.norm(out - ref) / jnp.linalg.norm(ref)
    assert float(rel_err) < 5e-2, float(rel_err)

    print("KERNEL_OK")
</pallas_src>

<mosaic_0001>
module attributes {stable_mosaic.version = 11 : i64} {
  func.func @kernel(%arg0: i32, %arg1: memref<256x4xbf16, #tpu.memory_space<vmem>>, %arg2: memref<256x4xbf16, #tpu.memory_space<vmem>>, %arg3: memref<4x4xbf16, #tpu.memory_space<vmem>>, %arg4: memref<4x4xbf16, #tpu.memory_space<vmem>>, %arg5: memref<1x4xf32, #tpu.memory_space<vmem>>, %arg6: memref<1xf32, #tpu.memory_space<smem>>, %arg7: memref<256x4xbf16, #tpu.memory_space<vmem>>) attributes {dimension_semantics = [#tpu.dimension_semantics<parallel>], iteration_bounds = array<i64: 2>, scalar_prefetch = 0 : i64, scratch_operands = 0 : i64, tpu.core_type = #tpu.core_type<tc>, window_params = [{transform_indices = @transform_0, window_bounds = array<i64: 256, 4>}, {transform_indices = @transform_1, window_bounds = array<i64: 256, 4>}, {pipeline_mode = #tpu.pipeline_mode<synchronous>, transform_indices = @transform_2, window_bounds = array<i64: 4, 4>}, {pipeline_mode = #tpu.pipeline_mode<synchronous>, transform_indices = @transform_3, window_bounds = array<i64: 4, 4>}, {pipeline_mode = #tpu.pipeline_mode<synchronous>, transform_indices = @transform_4, window_bounds = array<i64: 1, 4>}, {transform_indices = @transform_5, window_bounds = array<i64: 1>}, {transform_indices = @transform_6, window_bounds = array<i64: 256, 4>}]} {
    %c0 = arith.constant 0 : index
    %c0_0 = arith.constant 0 : index
    %0 = vector.load %arg1[%c0, %c0_0] : memref<256x4xbf16, #tpu.memory_space<vmem>>, vector<256x4xbf16>
    %c0_1 = arith.constant 0 : index
    %c0_2 = arith.constant 0 : index
    %1 = vector.load %arg3[%c0_1, %c0_2] : memref<4x4xbf16, #tpu.memory_space<vmem>>, vector<4x4xbf16>
    %cst = arith.constant dense<0.000000e+00> : vector<256x4xf32>
    %2 = tpu.matmul %0, %1, %cst {dimension_numbers = #tpu.dot_dimension_numbers<[1], [0], [0], [1], [0, 0, 1, 1], [], []>} : vector<256x4xbf16>, vector<4x4xbf16>, vector<256x4xf32> -> vector<256x4xf32>
    %c0_3 = arith.constant 0 : index
    %c0_4 = arith.constant 0 : index
    %3 = vector.load %arg2[%c0_3, %c0_4] : memref<256x4xbf16, #tpu.memory_space<vmem>>, vector<256x4xbf16>
    %c0_5 = arith.constant 0 : index
    %c0_6 = arith.constant 0 : index
    %4 = vector.load %arg4[%c0_5, %c0_6] : memref<4x4xbf16, #tpu.memory_space<vmem>>, vector<4x4xbf16>
    %cst_7 = arith.constant dense<0.000000e+00> : vector<256x4xf32>
    %5 = tpu.matmul %3, %4, %cst_7 {dimension_numbers = #tpu.dot_dimension_numbers<[1], [0], [0], [1], [0, 0, 1, 1], [], []>} : vector<256x4xbf16>, vector<4x4xbf16>, vector<256x4xf32> -> vector<256x4xf32>
    %6 = arith.addf %2, %5 : vector<256x4xf32>
    %c0_8 = arith.constant 0 : index
    %c0_9 = arith.constant 0 : index
    %7 = vector.load %arg5[%c0_8, %c0_9] : memref<1x4xf32, #tpu.memory_space<vmem>>, vector<1x4xf32>
    %8 = vector.broadcast %7 : vector<1x4xf32> to vector<256x4xf32>
    %9 = arith.addf %6, %8 : vector<256x4xf32>
    %c0_10 = arith.constant 0 : index
    %10 = memref.load %arg6[%c0_10] : memref<1xf32, #tpu.memory_space<smem>>
    %cst_11 = arith.constant 0.000000e+00 : f32
    %11 = vector.broadcast %cst_11 : f32 to vector<256x4xf32>
    %12 = arith.cmpf ogt, %9, %11 : vector<256x4xf32>
    %13 = vector.broadcast %10 : f32 to vector<256x4xf32>
    %14 = arith.mulf %13, %9 : vector<256x4xf32>
    %15 = arith.select %12, %9, %14 : vector<256x4xi1>, vector<256x4xf32>
    %16 = arith.truncf %15 : vector<256x4xf32> to vector<256x4xbf16>
    %c0_12 = arith.constant 0 : index
    %c0_13 = arith.constant 0 : index
    %17 = vector.load %arg7[%c0_12, %c0_13] : memref<256x4xbf16, #tpu.memory_space<vmem>>, vector<256x4xbf16>
    tpu.vector_store %arg7[%c0_12, %c0_13], %16 {strides = array<i32>} : memref<256x4xbf16, #tpu.memory_space<vmem>>, vector<256x4xbf16>,
    return
  }
  func.func @transform_0(%arg0: i32) -> (i32, i32) {
    %c0_i32 = arith.constant 0 : i32
    %c0_i32_0 = arith.constant 0 : i32
    return %arg0, %c0_i32 : i32, i32
  }
  func.func @transform_1(%arg0: i32) -> (i32, i32) {
    %c0_i32 = arith.constant 0 : i32
    %c0_i32_0 = arith.constant 0 : i32
    return %arg0, %c0_i32 : i32, i32
  }
  func.func @transform_2(%arg0: i32) -> (i32, i32) {
    %c0_i32 = arith.constant 0 : i32
    %c0_i32_0 = arith.constant 0 : i32
    %c0_i32_1 = arith.constant 0 : i32
    return %c0_i32, %c0_i32_0 : i32, i32
  }
  func.func @transform_3(%arg0: i32) -> (i32, i32) {
    %c0_i32 = arith.constant 0 : i32
    %c0_i32_0 = arith.constant 0 : i32
    %c0_i32_1 = arith.constant 0 : i32
    return %c0_i32, %c0_i32_0 : i32, i32
  }
  func.func @transform_4(%arg0: i32) -> (i32, i32) {
    %c0_i32 = arith.constant 0 : i32
    %c0_i32_0 = arith.constant 0 : i32
    %c0_i32_1 = arith.constant 0 : i32
    return %c0_i32, %c0_i32_0 : i32, i32
  }
  func.func @transform_5(%arg0: i32) -> i32 {
    %c0_i32 = arith.constant 0 : i32
    %c0_i32_0 = arith.constant 0 : i32
    return %c0_i32 : i32
  }
  func.func @transform_6(%arg0: i32) -> (i32, i32) {
    %c0_i32 = arith.constant 0 : i32
    %c0_i32_0 = arith.constant 0 : i32
    return %arg0, %c0_i32 : i32, i32
  }
}

module attributes {stable_mosaic.version = 11 : i64} {
  func.func @kernel(%arg0: i32, %arg1: memref<256x36xbf16, #tpu.memory_space<vmem>>, %arg2: memref<36x16xbf16, #tpu.memory_space<vmem>>, %arg3: memref<1x16xf32, #tpu.memory_space<vmem>>, %arg4: memref<1xf32, #tpu.memory_space<smem>>, %arg5: memref<256x16xbf16, #tpu.memory_space<vmem>>) attributes {dimension_semantics = [#tpu.dimension_semantics<parallel>], iteration_bounds = array<i64: 2>, scalar_prefetch = 0 : i64, scratch_operands = 0 : i64, tpu.core_type = #tpu.core_type<tc>, window_params = [{transform_indices = @transform_0, window_bounds = array<i64: 256, 36>}, {pipeline_mode = #tpu.pipeline_mode<synchronous>, transform_indices = @transform_1, window_bounds = array<i64: 36, 16>}, {pipeline_mode = #tpu.pipeline_mode<synchronous>, transform_indices = @transform_2, window_bounds = array<i64: 1, 16>}, {transform_indices = @transform_3, window_bounds = array<i64: 1>}, {transform_indices = @transform_4, window_bounds = array<i64: 256, 16>}]} {
    %c0 = arith.constant 0 : index
    %c0_0 = arith.constant 0 : index
    %0 = vector.load %arg1[%c0, %c0_0] : memref<256x36xbf16, #tpu.memory_space<vmem>>, vector<256x36xbf16>
    %c0_1 = arith.constant 0 : index
    %c0_2 = arith.constant 0 : index
    %1 = vector.load %arg2[%c0_1, %c0_2] : memref<36x16xbf16, #tpu.memory_space<vmem>>, vector<36x16xbf16>
    %cst = arith.constant dense<0.000000e+00> : vector<256x16xf32>
    %2 = tpu.matmul %0, %1, %cst {dimension_numbers = #tpu.dot_dimension_numbers<[1], [0], [0], [1], [0, 0, 1, 1], [], []>} : vector<256x36xbf16>, vector<36x16xbf16>, vector<256x16xf32> -> vector<256x16xf32>
    %c0_3 = arith.constant 0 : index
    %c0_4 = arith.constant 0 : index
    %3 = vector.load %arg3[%c0_3, %c0_4] : memref<1x16xf32, #tpu.memory_space<vmem>>, vector<1x16xf32>
    %4 = vector.broadcast %3 : vector<1x16xf32> to vector<256x16xf32>
    %5 = arith.addf %2, %4 : vector<256x16xf32>
    %c0_5 = arith.constant 0 : index
    %6 = memref.load %arg4[%c0_5] : memref<1xf32, #tpu.memory_space<smem>>
    %cst_6 = arith.constant 0.000000e+00 : f32
    %7 = vector.broadcast %cst_6 : f32 to vector<256x16xf32>
    %8 = arith.cmpf ogt, %5, %7 : vector<256x16xf32>
    %9 = vector.broadcast %6 : f32 to vector<256x16xf32>
    %10 = arith.mulf %9, %5 : vector<256x16xf32>
    %11 = arith.select %8, %5, %10 : vector<256x16xi1>, vector<256x16xf32>
    %12 = arith.truncf %11 : vector<256x16xf32> to vector<256x16xbf16>
    %c0_7 = arith.constant 0 : index
    %c0_8 = arith.constant 0 : index
    %13 = vector.load %arg5[%c0_7, %c0_8] : memref<256x16xbf16, #tpu.memory_space<vmem>>, vector<256x16xbf16>
    tpu.vector_store %arg5[%c0_7, %c0_8], %12 {strides = array<i32>} : memref<256x16xbf16, #tpu.memory_space<vmem>>, vector<256x16xbf16>,
    return
  }
  func.func @transform_0(%arg0: i32) -> (i32, i32) {
    %c0_i32 = arith.constant 0 : i32
    %c0_i32_0 = arith.constant 0 : i32
    return %arg0, %c0_i32 : i32, i32
  }
  func.func @transform_1(%arg0: i32) -> (i32, i32) {
    %c0_i32 = arith.constant 0 : i32
    %c0_i32_0 = arith.constant 0 : i32
    %c0_i32_1 = arith.constant 0 : i32
    return %c0_i32, %c0_i32_0 : i32, i32
  }
  func.func @transform_2(%arg0: i32) -> (i32, i32) {
    %c0_i32 = arith.constant 0 : i32
    %c0_i32_0 = arith.constant 0 : i32
    %c0_i32_1 = arith.constant 0 : i32
    return %c0_i32, %c0_i32_0 : i32, i32
  }
  func.func @transform_3(%arg0: i32) -> i32 {
    %c0_i32 = arith.constant 0 : i32
    %c0_i32_0 = arith.constant 0 : i32
    return %c0_i32 : i32
  }
  func.func @transform_4(%arg0: i32) -> (i32, i32) {
    %c0_i32 = arith.constant 0 : i32
    %c0_i32_0 = arith.constant 0 : i32
    return %arg0, %c0_i32 : i32, i32
  }
}

module attributes {stable_mosaic.version = 11 : i64} {
  func.func @kernel(%arg0: i32, %arg1: memref<1024x4xbf16, #tpu.memory_space<vmem>>, %arg2: memref<1024x4xbf16, #tpu.memory_space<vmem>>, %arg3: memref<4x4xbf16, #tpu.memory_space<vmem>>, %arg4: memref<4x4xbf16, #tpu.memory_space<vmem>>, %arg5: memref<1x4xf32, #tpu.memory_space<vmem>>, %arg6: memref<1xf32, #tpu.memory_space<smem>>, %arg7: memref<1024x4xbf16, #tpu.memory_space<vmem>>) attributes {dimension_semantics = [#tpu.dimension_semantics<parallel>], iteration_bounds = array<i64: 2>, scalar_prefetch = 0 : i64, scratch_operands = 0 : i64, tpu.core_type = #tpu.core_type<tc>, window_params = [{transform_indices = @transform_0, window_bounds = array<i64: 1024, 4>}, {transform_indices = @transform_1, window_bounds = array<i64: 1024, 4>}, {pipeline_mode = #tpu.pipeline_mode<synchronous>, transform_indices = @transform_2, window_bounds = array<i64: 4, 4>}, {pipeline_mode = #tpu.pipeline_mode<synchronous>, transform_indices = @transform_3, window_bounds = array<i64: 4, 4>}, {pipeline_mode = #tpu.pipeline_mode<synchronous>, transform_indices = @transform_4, window_bounds = array<i64: 1, 4>}, {transform_indices = @transform_5, window_bounds = array<i64: 1>}, {transform_indices = @transform_6, window_bounds = array<i64: 1024, 4>}]} {
    %c0 = arith.constant 0 : index
    %c0_0 = arith.constant 0 : index
    %0 = vector.load %arg1[%c0, %c0_0] : memref<1024x4xbf16, #tpu.memory_space<vmem>>, vector<1024x4xbf16>
    %c0_1 = arith.constant 0 : index
    %c0_2 = arith.constant 0 : index
    %1 = vector.load %arg3[%c0_1, %c0_2] : memref<4x4xbf16, #tpu.memory_space<vmem>>, vector<4x4xbf16>
    %cst = arith.constant dense<0.000000e+00> : vector<1024x4xf32>
    %2 = tpu.matmul %0, %1, %cst {dimension_numbers = #tpu.dot_dimension_numbers<[1], [0], [0], [1], [0, 0, 1, 1], [], []>} : vector<1024x4xbf16>, vector<4x4xbf16>, vector<1024x4xf32> -> vector<1024x4xf32>
    %c0_3 = arith.constant 0 : index
    %c0_4 = arith.constant 0 : index
    %3 = vector.load %arg2[%c0_3, %c0_4] : memref<1024x4xbf16, #tpu.memory_space<vmem>>, vector<1024x4xbf16>
    %c0_5 = arith.constant 0 : index
    %c0_6 = arith.constant 0 : index
    %4 = vector.load %arg4[%c0_5, %c0_6] : memref<4x4xbf16, #tpu.memory_space<vmem>>, vector<4x4xbf16>
    %cst_7 = arith.constant dense<0.000000e+00> : vector<1024x4xf32>
    %5 = tpu.matmul %3, %4, %cst_7 {dimension_numbers = #tpu.dot_dimension_numbers<[1], [0], [0], [1], [0, 0, 1, 1], [], []>} : vector<1024x4xbf16>, vector<4x4xbf16>, vector<1024x4xf32> -> vector<1024x4xf32>
    %6 = arith.addf %2, %5 : vector<1024x4xf32>
    %c0_8 = arith.constant 0 : index
    %c0_9 = arith.constant 0 : index
    %7 = vector.load %arg5[%c0_8, %c0_9] : memref<1x4xf32, #tpu.memory_space<vmem>>, vector<1x4xf32>
    %8 = vector.broadcast %7 : vector<1x4xf32> to vector<1024x4xf32>
    %9 = arith.addf %6, %8 : vector<1024x4xf32>
    %c0_10 = arith.constant 0 : index
    %10 = memref.load %arg6[%c0_10] : memref<1xf32, #tpu.memory_space<smem>>
    %cst_11 = arith.constant 0.000000e+00 : f32
    %11 = vector.broadcast %cst_11 : f32 to vector<1024x4xf32>
    %12 = arith.cmpf ogt, %9, %11 : vector<1024x4xf32>
    %13 = vector.broadcast %10 : f32 to vector<1024x4xf32>
    %14 = arith.mulf %13, %9 : vector<1024x4xf32>
    %15 = arith.select %12, %9, %14 : vector<1024x4xi1>, vector<1024x4xf32>
    %16 = arith.truncf %15 : vector<1024x4xf32> to vector<1024x4xbf16>
    %c0_12 = arith.constant 0 : index
    %c0_13 = arith.constant 0 : index
    %17 = vector.load %arg7[%c0_12, %c0_13] : memref<1024x4xbf16, #tpu.memory_space<vmem>>, vector<1024x4xbf16>
    tpu.vector_store %arg7[%c0_12, %c0_13], %16 {strides = array<i32>} : memref<1024x4xbf16, #tpu.memory_space<vmem>>, vector<1024x4xbf16>,
    return
  }
  func.func @transform_0(%arg0: i32) -> (i32, i32) {
    %c0_i32 = arith.constant 0 : i32
    %c0_i32_0 = arith.constant 0 : i32
    return %arg0, %c0_i32 : i32, i32
  }
  func.func @transform_1(%arg0: i32) -> (i32, i32) {
    %c0_i32 = arith.constant 0 : i32
    %c0_i32_0 = arith.constant 0 : i32
    return %arg0, %c0_i32 : i32, i32
  }
  func.func @transform_2(%arg0: i32) -> (i32, i32) {
    %c0_i32 = arith.constant 0 : i32
    %c0_i32_0 = arith.constant 0 : i32
    %c0_i32_1 = arith.constant 0 : i32
    return %c0_i32, %c0_i32_0 : i32, i32
  }
  func.func @transform_3(%arg0: i32) -> (i32, i32) {
    %c0_i32 = arith.constant 0 : i32
    %c0_i32_0 = arith.constant 0 : i32
    %c0_i32_1 = arith.constant 0 : i32
    return %c0_i32, %c0_i32_0 : i32, i32
  }
  func.func @transform_4(%arg0: i32) -> (i32, i32) {
    %c0_i32 = arith.constant 0 : i32
    %c0_i32_0 = arith.constant 0 : i32
    %c0_i32_1 = arith.constant 0 : i32
    return %c0_i32, %c0_i32_0 : i32, i32
  }
  func.func @transform_5(%arg0: i32) -> i32 {
    %c0_i32 = arith.constant 0 : i32
    %c0_i32_0 = arith.constant 0 : i32
    return %c0_i32 : i32
  }
  func.func @transform_6(%arg0: i32) -> (i32, i32) {
    %c0_i32 = arith.constant 0 : i32
    %c0_i32_0 = arith.constant 0 : i32
    return %arg0, %c0_i32 : i32, i32
  }
}

module attributes {stable_mosaic.version = 11 : i64} {
  func.func @kernel(%arg0: i32, %arg1: memref<256x144xbf16, #tpu.memory_space<vmem>>, %arg2: memref<144x4xbf16, #tpu.memory_space<vmem>>, %arg3: memref<1x4xf32, #tpu.memory_space<vmem>>, %arg4: memref<1xf32, #tpu.memory_space<smem>>, %arg5: memref<256x4xbf16, #tpu.memory_space<vmem>>) attributes {dimension_semantics = [#tpu.dimension_semantics<parallel>], iteration_bounds = array<i64: 2>, scalar_prefetch = 0 : i64, scratch_operands = 0 : i64, tpu.core_type = #tpu.core_type<tc>, window_params = [{transform_indices = @transform_0, window_bounds = array<i64: 256, 144>}, {pipeline_mode = #tpu.pipeline_mode<synchronous>, transform_indices = @transform_1, window_bounds = array<i64: 144, 4>}, {pipeline_mode = #tpu.pipeline_mode<synchronous>, transform_indices = @transform_2, window_bounds = array<i64: 1, 4>}, {transform_indices = @transform_3, window_bounds = array<i64: 1>}, {transform_indices = @transform_4, window_bounds = array<i64: 256, 4>}]} {
    %c0 = arith.constant 0 : index
    %c0_0 = arith.constant 0 : index
    %0 = vector.load %arg1[%c0, %c0_0] : memref<256x144xbf16, #tpu.memory_space<vmem>>, vector<256x144xbf16>
    %c0_1 = arith.constant 0 : index
    %c0_2 = arith.constant 0 : index
    %1 = vector.load %arg2[%c0_1, %c0_2] : memref<144x4xbf16, #tpu.memory_space<vmem>>, vector<144x4xbf16>
    %cst = arith.constant dense<0.000000e+00> : vector<256x4xf32>
    %2 = tpu.matmul %0, %1, %cst {dimension_numbers = #tpu.dot_dimension_numbers<[1], [0], [0], [1], [0, 0, 1, 1], [], []>} : vector<256x144xbf16>, vector<144x4xbf16>, vector<256x4xf32> -> vector<256x4xf32>
    %c0_3 = arith.constant 0 : index
    %c0_4 = arith.constant 0 : index
    %3 = vector.load %arg3[%c0_3, %c0_4] : memref<1x4xf32, #tpu.memory_space<vmem>>, vector<1x4xf32>
    %4 = vector.broadcast %3 : vector<1x4xf32> to vector<256x4xf32>
    %5 = arith.addf %2, %4 : vector<256x4xf32>
    %c0_5 = arith.constant 0 : index
    %6 = memref.load %arg4[%c0_5] : memref<1xf32, #tpu.memory_space<smem>>
    %cst_6 = arith.constant 0.000000e+00 : f32
    %7 = vector.broadcast %cst_6 : f32 to vector<256x4xf32>
    %8 = arith.cmpf ogt, %5, %7 : vector<256x4xf32>
    %9 = vector.broadcast %6 : f32 to vector<256x4xf32>
    %10 = arith.mulf %9, %5 : vector<256x4xf32>
    %11 = arith.select %8, %5, %10 : vector<256x4xi1>, vector<256x4xf32>
    %12 = arith.truncf %11 : vector<256x4xf32> to vector<256x4xbf16>
    %c0_7 = arith.constant 0 : index
    %c0_8 = arith.constant 0 : index
    %13 = vector.load %arg5[%c0_7, %c0_8] : memref<256x4xbf16, #tpu.memory_space<vmem>>, vector<256x4xbf16>
    tpu.vector_store %arg5[%c0_7, %c0_8], %12 {strides = array<i32>} : memref<256x4xbf16, #tpu.memory_space<vmem>>, vector<256x4xbf16>,
    return
  }
  func.func @transform_0(%arg0: i32) -> (i32, i32) {
    %c0_i32 = arith.constant 0 : i32
    %c0_i32_0 = arith.constant 0 : i32
    return %arg0, %c0_i32 : i32, i32
  }
  func.func @transform_1(%arg0: i32) -> (i32, i32) {
    %c0_i32 = arith.constant 0 : i32
    %c0_i32_0 = arith.constant 0 : i32
    %c0_i32_1 = arith.constant 0 : i32
    return %c0_i32, %c0_i32_0 : i32, i32
  }
  func.func @transform_2(%arg0: i32) -> (i32, i32) {
    %c0_i32 = arith.constant 0 : i32
    %c0_i32_0 = arith.constant 0 : i32
    %c0_i32_1 = arith.constant 0 : i32
    return %c0_i32, %c0_i32_0 : i32, i32
  }
  func.func @transform_3(%arg0: i32) -> i32 {
    %c0_i32 = arith.constant 0 : i32
    %c0_i32_0 = arith.constant 0 : i32
    return %c0_i32 : i32
  }
  func.func @transform_4(%arg0: i32) -> (i32, i32) {
    %c0_i32 = arith.constant 0 : i32
    %c0_i32_0 = arith.constant 0 : i32
    return %arg0, %c0_i32 : i32, i32
  }
}

</mosaic_0001>

<bundles_post_ra>
// kernel: _lambda_.9
= control target key start
LH: loop header
LB: loop body
LE: loop exit
PB: predicated region body
PF: predicated region fallthrough
CT: control target
= control target key end

     0   :  { %s1110_s17 = smov 0   ;;  %s1316_s0 = inlined_call_operand.vmem [shape: bf16[512,36], index: 0, kind: input, shape index: {}]   ;;  %s1317_s1 = inlined_call_operand.vmem [shape: bf16[36,16], index: 1, kind: input, shape index: {}]   ;;  %s1318_s2 = inlined_call_operand.vmem [shape: f32[1,16], index: 2, kind: input, shape index: {}]   ;;  %s1319_s3 = inlined_call_operand.<no memory space> [shape: f32[1], index: 3, kind: input, shape index: {}]   ;;  %s1320_s4 = inlined_call_operand.vmem [shape: bf16[512,16], index: 4, kind: output, shape index: {}]  }
   0x1   :  { %9 = sst [smem:[#allocation2]] %s1319_s3 }
   0x2 LB: > { %s871_s18 = sadd.s32 4294967295, %s1080_s17   ;;  %p875_p0 = scmp.ge.s32.totalorder %s1080_s17, 1  ;;  %s1080_s17 = sphi %s1110_s17, %s15_s17  }
   0x3   : > { %p164_p1 = scmp.lt.s32.totalorder %s1080_s17, 3 }
   0x5   : > { %p165_p2 = pnand %p875_p0, %p164_p1 }
   0x6   : > { %s876_s22 = sshll.u32 (!%p165_p2), %s871_s18, 5  ;;  %s556_s29 = sld [smem:[#allocation2]] (!%p165_p2) }
   0x7   : > { %168 = sbr.rel (%p165_p2) target bundleno = 265 (0x109), region = 36  ;;  %p191_p3 = scmp.lt.s32.totalorder (!%p165_p2), %s876_s22, 63 }
   0xc   : > { %v1055_v0 = vld [vmem:[%s1317_s1 + $0x10] ss:$0 sps:$4 sm:$0x33]   ;;  %vm391_vm0 = vcmask 1041408   ;;  %v1056_v1 = vld [vmem:[%s1317_s1 + $0x8] sm:$0xff]   ;;  %v1057_v3 = vld [vmem:[%s1317_s1] sm:$0xff]   ;;  %v1174_v22 = vstv %s556_s29 }
   0xd   : > { %1045 = vmatprep.subr.msk.bf16.mxu0 %vm391_vm0, %v1055_v0  ;;  %1046 = vmatprep.subr.msk.bf16.mxu1 %vm391_vm0, %v1055_v0  ;;  %v393_v2 = vsel %vm391_vm0, %v1055_v0, 0  ;;  %s1322_s22 = smov (!%p191_p3, %s876_s22), 63  ;;  %vm342_vm1 = vcmask 293888   ;;  %v1172_v20 = vld [vmem:[%s1318_s2] ss:$0 sm:$0xff]  ;;  %vm782_vm4 = vcmask 125952  }
   0xe   : > { %1002 = vmatpush3.bf16.msra.mxu0 %v393_v2  ;;  %1042 = vmatpush3.bf16.msra.mxu1 %v393_v2  ;;  %s877_s25 = sshll.u32 %s1322_s22, 2 }
   0xf   : > { %1003 = vmatprep.subr.bf16.mxu0 %v1056_v1  ;;  %1040 = vmatprep.subr.bf16.mxu1 %v1056_v1  ;;  %s1135_s28 = scalar_lea.vmem %s1316_s0, %s877_s25  ;;  %s1187_s8 = scalar_lea.vmem %s1320_s4, %s877_s25 }
  0x10   : > { %v1058_v4 = vld [vmem:[%s1135_s28] sm:$0xff]   ;;  %v1060_v6 = vld [vmem:[%s1135_s28 + $0x8] sm:$0xff]   ;;  %v1062_v8 = vld [vmem:[%s1135_s28 + $0x10] sm:$0xff]  }
  0x11   : > { %v1059_v5 = vld [vmem:[%s1135_s28 + $0x40] sm:$0xff]   ;;  %1007 = vmatprep.mubr.msk.bf16.mxu0 %vm342_vm1, %v1058_v4  ;;  %v1061_v7 = vld [vmem:[%s1135_s28 + $0x48] sm:$0xff]   ;;  %v1063_v9 = vld [vmem:[%s1135_s28 + $0x50] sm:$0xff]  }
  0x12   : > { %1004 = vmatpush3.bf16.msra.mxu0 %v1056_v1  ;;  %1043 = vmatpush3.bf16.msra.mxu1 %v1056_v1  ;;  %v1064_v10 = vld [vmem:[%s1135_s28 + $0x18] sm:$0xff]   ;;  %v1066_v12 = vld [vmem:[%s1135_s28 + $0x20] sm:$0xff]   ;;  %v1068_v14 = vld [vmem:[%s1135_s28 + $0x28] sm:$0xff]  }
  0x13   : > { %1005 = vmatprep.subr.bf16.mxu0 %v1057_v3  ;;  %1041 = vmatprep.subr.bf16.mxu1 %v1057_v3  ;;  %v1065_v11 = vld [vmem:[%s1135_s28 + $0x58] sm:$0xff]   ;;  %v1067_v13 = vld [vmem:[%s1135_s28 + $0x60] sm:$0xff]   ;;  %v1069_v15 = vld [vmem:[%s1135_s28 + $0x68] sm:$0xff]  }
  0x14   : > { %1023 = vmatprep.mubr.msk.bf16.mxu1 %vm342_vm1, %v1059_v5  ;;  %v1070_v16 = vld [vmem:[%s1135_s28 + $0x30] sm:$0xff]   ;;  %v1072_v18 = vld [vmem:[%s1135_s28 + $0x38] sm:$0xff]  }
  0x15   : > { %v1071_v17 = vld [vmem:[%s1135_s28 + $0x70] sm:$0xff]   ;;  %v1073_v19 = vld [vmem:[%s1135_s28 + $0x78] sm:$0xff]  }
  0x16   : > { %1006 = vmatpush3.bf16.msra.mxu0 %v1057_v3  ;;  %1044 = vmatpush3.bf16.msra.mxu1 %v1057_v3 }
  0x19   : > { %1008 = vmatmul.mubr.msk.bf16.vlgmr.msra.gmra.mxu0 %vm342_vm1, %v1060_v6  ;;  %1024 = vmatmul.mubr.msk.bf16.vlgmr.msra.gmra.mxu1 %vm342_vm1, %v1061_v7 }
  0x1a   : > { %1011 = vmatprep.mubr.msk.bf16.mxu0 %vm342_vm1, %v1062_v8  ;;  %1027 = vmatprep.mubr.msk.bf16.mxu1 %vm342_vm1, %v1063_v9 }
  0x21   : > { %1012 = vmatmul.mubr.msk.bf16.gmra.mxu0 %vm342_vm1, %v1064_v10  ;;  %1028 = vmatmul.mubr.msk.bf16.gmra.mxu1 %vm342_vm1, %v1065_v11 }
  0x22   : > { %1015 = vmatprep.mubr.msk.bf16.mxu0 %vm342_vm1, %v1066_v12  ;;  %1031 = vmatprep.mubr.msk.bf16.mxu1 %vm342_vm1, %v1067_v13 }
  0x29   : > { %1016 = vmatmul.mubr.msk.bf16.gmra.mxu0 %vm342_vm1, %v1068_v14  ;;  %1032 = vmatmul.mubr.msk.bf16.gmra.mxu1 %vm342_vm1, %v1069_v15 }
  0x2a   : > { %1019 = vmatprep.mubr.msk.bf16.mxu0 %vm342_vm1, %v1070_v16  ;;  %1035 = vmatprep.mubr.msk.bf16.mxu1 %vm342_vm1, %v1071_v17 }
  0x31   : > { %1020 = vmatmul.mubr.msk.bf16.gmra.mxu0 %vm342_vm1, %v1072_v18  ;;  %1036 = vmatmul.mubr.msk.bf16.gmra.mxu1 %vm342_vm1, %v1073_v19 }
  0xd9   : > { %v1009_v21 = vpop.f32.mrf.mxu0  ;;  %v1025_v23 = vpop.f32.mrf.mxu1 }
  0xda   : > { %v438_v24 = vadd.f32 %v1009_v21, %v1172_v20  ;;  %v502_v25 = vadd.f32 %v1025_v23, %v1172_v20 }
  0xdb   : > { %v429_v26 = vpop.f32.mrf.mxu0  ;;  %v493_v27 = vpop.f32.mrf.mxu1 }
  0xdc   : > { %vm559_vm2 = vcmp.gt.f32.partialorder %v438_v24, 0.0  ;;  %v592_v28 = vmul.f32 %v1174_v22, %v438_v24  ;;  %vm575_vm3 = vcmp.gt.f32.partialorder %v502_v25, 0.0  ;;  %v608_v29 = vmul.f32 %v1174_v22, %v502_v25 }
  0xdd   : > { %v430_v30 = vadd.f32 %v1172_v20, %v429_v26  ;;  %v494_v31 = vadd.f32 %v1172_v20, %v493_v27  ;;  %v1010_v32 = vpop.f32.mrf.mxu0  ;;  %v1026_v33 = vpop.f32.mrf.mxu1 }
  0xde   : > { %v624_v34 = vsel %vm559_vm2, %v438_v24, %v592_v28  ;;  %v640_v35 = vsel %vm575_vm3, %v502_v25, %v608_v29  ;;  %v441_v36 = vadd.f32 %v1010_v32, %v1172_v20  ;;  %v505_v37 = vadd.f32 %v1026_v33, %v1172_v20 }
  0xdf   : > { %v952_v38 = vpack.c.bf16 %v624_v34, %v624_v34  ;;  %v968_v39 = vpack.c.bf16 %v640_v35, %v640_v35  ;;  %vm557_vm5 = vcmp.gt.f32.partialorder %v430_v30, 0.0  ;;  %v590_v40 = vmul.f32 %v1174_v22, %v430_v30  ;;  %v432_v41 = vpop.f32.mrf.mxu0  ;;  %v496_v42 = vpop.f32.mrf.mxu1 }
  0xe0   : > { %vm573_vm6 = vcmp.gt.f32.partialorder %v494_v31, 0.0  ;;  %v606_v43 = vmul.f32 %v1174_v22, %v494_v31  ;;  %vm560_vm7 = vcmp.gt.f32.partialorder %v441_v36, 0.0  ;;  %v593_v44 = vmul.f32 %v1174_v22, %v441_v36 }
  0xe1   : > { %785 = vst.msk [vmem:[%s1187_s8 + $0x8] sm:$0xf] %vm782_vm4, %v952_v38  ;;  %801 = vst.msk [vmem:[%s1187_s8 + $0x48] sm:$0xf] %vm782_vm4, %v968_v39  ;;  %v622_v45 = vsel %vm557_vm5, %v430_v30, %v590_v40  ;;  %vm576_vm8 = vcmp.gt.f32.partialorder %v505_v37, 0.0  ;;  %v609_v46 = vmul.f32 %v1174_v22, %v505_v37  ;;  %v433_v47 = vadd.f32 %v1172_v20, %v432_v41  ;;  %v1013_v48 = vpop.f32.mrf.mxu0  ;;  %v1029_v49 = vpop.f32.mrf.mxu1 }
  0xe2   : > { %v950_v50 = vpack.c.bf16 %v622_v45, %v622_v45  ;;  %v638_v51 = vsel %vm573_vm6, %v494_v31, %v606_v43  ;;  %v625_v52 = vsel %vm560_vm7, %v441_v36, %v593_v44  ;;  %v497_v53 = vadd.f32 %v1172_v20, %v496_v42 }
  0xe3   : > { %v966_v54 = vpack.c.bf16 %v638_v51, %v638_v51  ;;  %v953_v55 = vpack.c.bf16 %v625_v52, %v625_v52  ;;  %v641_v56 = vsel %vm576_vm8, %v505_v37, %v609_v46  ;;  %vm558_vm9 = vcmp.gt.f32.partialorder %v433_v47, 0.0  ;;  %v445_v57 = vpop.f32.mrf.mxu0  ;;  %v509_v58 = vpop.f32.mrf.mxu1 }
  0xe4   : > { %783 = vst.msk [vmem:[%s1187_s8] sm:$0xf] %vm782_vm4, %v950_v50  ;;  %v969_v59 = vpack.c.bf16 %v641_v56, %v641_v56  ;;  %v591_v60 = vmul.f32 %v1174_v22, %v433_v47  ;;  %vm574_vm10 = vcmp.gt.f32.partialorder %v497_v53, 0.0  ;;  %v607_v61 = vmul.f32 %v1174_v22, %v497_v53 }
  0xe5   : > { %799 = vst.msk [vmem:[%s1187_s8 + $0x40] sm:$0xf] %vm782_vm4, %v966_v54  ;;  %786 = vst.msk [vmem:[%s1187_s8 + $0xc] sm:$0xf] %vm782_vm4, %v953_v55  ;;  %v454_v62 = vadd.f32 %v1013_v48, %v1172_v20  ;;  %v518_v63 = vadd.f32 %v1029_v49, %v1172_v20  ;;  %v446_v0 = vadd.f32 %v1172_v20, %v445_v57  ;;  %v1014_v2 = vpop.f32.mrf.mxu0  ;;  %v1030_v3 = vpop.f32.mrf.mxu1 }
  0xe6   : > { %v510_v1 = vadd.f32 %v1172_v20, %v509_v58  ;;  %802 = vst.msk [vmem:[%s1187_s8 + $0x4c] sm:$0xf] %vm782_vm4, %v969_v59  ;;  %v623_v4 = vsel %vm558_vm9, %v433_v47, %v591_v60  ;;  %v639_v5 = vsel %vm574_vm10, %v497_v53, %v607_v61  ;;  %v457_v6 = vadd.f32 %v1014_v2, %v1172_v20 }
  0xe7   : > { %v521_v7 = vadd.f32 %v1030_v3, %v1172_v20  ;;  %v951_v8 = vpack.c.bf16 %v623_v4, %v623_v4  ;;  %v967_v9 = vpack.c.bf16 %v639_v5, %v639_v5  ;;  %vm563_vm11 = vcmp.gt.f32.partialorder %v454_v62, 0.0  ;;  %v448_v11 = vpop.f32.mrf.mxu0  ;;  %v512_v12 = vpop.f32.mrf.mxu1 }
  0xe8   : > { %v596_v10 = vmul.f32 %v1174_v22, %v454_v62  ;;  %vm579_vm12 = vcmp.gt.f32.partialorder %v518_v63, 0.0  ;;  %v612_v13 = vmul.f32 %v1174_v22, %v518_v63  ;;  %vm561_vm13 = vcmp.gt.f32.partialorder %v446_v0, 0.0 }
  0xe9   : > { %v594_v14 = vmul.f32 %v1174_v22, %v446_v0  ;;  %784 = vst.msk [vmem:[%s1187_s8 + $0x4] sm:$0xf] %vm782_vm4, %v951_v8  ;;  %800 = vst.msk [vmem:[%s1187_s8 + $0x44] sm:$0xf] %vm782_vm4, %v967_v9  ;;  %vm577_vm14 = vcmp.gt.f32.partialorder %v510_v1, 0.0  ;;  %v610_v16 = vmul.f32 %v1174_v22, %v510_v1  ;;  %vm564_vm15 = vcmp.gt.f32.partialorder %v457_v6, 0.0  ;;  %v1017_v17 = vpop.f32.mrf.mxu0  ;;  %v1033_v18 = vpop.f32.mrf.mxu1 }
  0xea   : > { %v628_v15 = vsel %vm563_vm11, %v454_v62, %v596_v10  ;;  %v644_v21 = vsel %vm579_vm12, %v518_v63, %v612_v13  ;;  %v597_v24 = vmul.f32 %v1174_v22, %v457_v6  ;;  %vm580_vm0 = vcmp.gt.f32.partialorder %v521_v7, 0.0 }
  0xeb   : > { %v956_v19 = vpack.c.bf16 %v628_v15, %v628_v15  ;;  %v626_v23 = vsel %vm561_vm13, %v446_v0, %v594_v14  ;;  %v972_v25 = vpack.c.bf16 %v644_v21, %v644_v21  ;;  %v642_v27 = vsel %vm577_vm14, %v510_v1, %v610_v16  ;;  %v461_v28 = vpop.f32.mrf.mxu0  ;;  %v525_v29 = vpop.f32.mrf.mxu1 }
  0xec   : > { %v954_v26 = vpack.c.bf16 %v626_v23, %v626_v23  ;;  %v970_v30 = vpack.c.bf16 %v642_v27, %v642_v27  ;;  %v629_v31 = vsel %vm564_vm15, %v457_v6, %v597_v24  ;;  %v613_v32 = vmul.f32 %v1174_v22, %v521_v7 }
  0xed   : > { %789 = vst.msk [vmem:[%s1187_s8 + $0x18] sm:$0xf] %vm782_vm4, %v956_v19  ;;  %v449_v33 = vadd.f32 %v1172_v20, %v448_v11  ;;  %805 = vst.msk [vmem:[%s1187_s8 + $0x58] sm:$0xf] %vm782_vm4, %v972_v25  ;;  %v957_v34 = vpack.c.bf16 %v629_v31, %v629_v31  ;;  %v513_v35 = vadd.f32 %v1172_v20, %v512_v12  ;;  %v1018_v38 = vpop.f32.mrf.mxu0  ;;  %v1034_v39 = vpop.f32.mrf.mxu1 }
  0xee   : > { %787 = vst.msk [vmem:[%s1187_s8 + $0x10] sm:$0xf] %vm782_vm4, %v954_v26  ;;  %v470_v36 = vadd.f32 %v1017_v17, %v1172_v20  ;;  %v534_v37 = vadd.f32 %v1033_v18, %v1172_v20  ;;  %803 = vst.msk [vmem:[%s1187_s8 + $0x50] sm:$0xf] %vm782_vm4, %v970_v30  ;;  %v645_v40 = vsel %vm580_vm0, %v521_v7, %v613_v32 }
  0xef   : > { %vm562_vm1 = vcmp.gt.f32.partialorder %v449_v33, 0.0  ;;  %v595_v41 = vmul.f32 %v1174_v22, %v449_v33  ;;  %v462_v42 = vadd.f32 %v1172_v20, %v461_v28  ;;  %790 = vst.msk [vmem:[%s1187_s8 + $0x1c] sm:$0xf] %vm782_vm4, %v957_v34  ;;  %v973_v43 = vpack.c.bf16 %v645_v40, %v645_v40  ;;  %v464_v45 = vpop.f32.mrf.mxu0  ;;  %v528_v46 = vpop.f32.mrf.mxu1 }
  0xf0   : > { %vm578_vm2 = vcmp.gt.f32.partialorder %v513_v35, 0.0  ;;  %v611_v44 = vmul.f32 %v1174_v22, %v513_v35  ;;  %vm567_vm3 = vcmp.gt.f32.partialorder %v470_v36, 0.0  ;;  %v600_v48 = vmul.f32 %v1174_v22, %v470_v36 }
  0xf1   : > { %v627_v47 = vsel %vm562_vm1, %v449_v33, %v595_v41  ;;  %vm583_vm5 = vcmp.gt.f32.partialorder %v534_v37, 0.0  ;;  %v616_v49 = vmul.f32 %v1174_v22, %v534_v37  ;;  %806 = vst.msk [vmem:[%s1187_s8 + $0x5c] sm:$0xf] %vm782_vm4, %v973_v43  ;;  %vm565_vm6 = vcmp.gt.f32.partialorder %v462_v42, 0.0  ;;  %v1021_v53 = vpop.f32.mrf.mxu0  ;;  %v1037_v54 = vpop.f32.mrf.mxu1 }
  0xf2   : > { %v955_v50 = vpack.c.bf16 %v627_v47, %v627_v47  ;;  %v643_v51 = vsel %vm578_vm2, %v513_v35, %v611_v44  ;;  %v598_v52 = vmul.f32 %v1174_v22, %v462_v42  ;;  %v632_v56 = vsel %vm567_vm3, %v470_v36, %v600_v48 }
  0xf3   : > { %v971_v55 = vpack.c.bf16 %v643_v51, %v643_v51  ;;  %v648_v57 = vsel %vm583_vm5, %v534_v37, %v616_v49  ;;  %v526_v58 = vadd.f32 %v1172_v20, %v525_v29  ;;  %v960_v59 = vpack.c.bf16 %v632_v56, %v632_v56  ;;  %v477_v63 = vpop.f32.mrf.mxu0  ;;  %v541_v3 = vpop.f32.mrf.mxu1 }
  0xf4   : > { %788 = vst.msk [vmem:[%s1187_s8 + $0x14] sm:$0xf] %vm782_vm4, %v955_v50  ;;  %v976_v60 = vpack.c.bf16 %v648_v57, %v648_v57  ;;  %v630_v61 = vsel %vm565_vm6, %v462_v42, %v598_v52  ;;  %v473_v62 = vadd.f32 %v1018_v38, %v1172_v20  ;;  %v537_v2 = vadd.f32 %v1034_v39, %v1172_v20 }
  0xf5   : > { %804 = vst.msk [vmem:[%s1187_s8 + $0x54] sm:$0xf] %vm782_vm4, %v971_v55  ;;  %v958_v0 = vpack.c.bf16 %v630_v61, %v630_v61  ;;  %vm581_vm7 = vcmp.gt.f32.partialorder %v526_v58, 0.0  ;;  %v614_v1 = vmul.f32 %v1174_v22, %v526_v58  ;;  %793 = vst.msk [vmem:[%s1187_s8 + $0x28] sm:$0xf] %vm782_vm4, %v960_v59  ;;  %v465_v5 = vadd.f32 %v1172_v20, %v464_v45  ;;  %v1022_v13 = vpop.f32.mrf.mxu0  ;;  %v1038_v17 = vpop.f32.mrf.mxu1 }
  0xf6   : > { %809 = vst.msk [vmem:[%s1187_s8 + $0x68] sm:$0xf] %vm782_vm4, %v976_v60  ;;  %vm568_vm8 = vcmp.gt.f32.partialorder %v473_v62, 0.0  ;;  %v601_v4 = vmul.f32 %v1174_v22, %v473_v62  ;;  %v529_v6 = vadd.f32 %v1172_v20, %v528_v46  ;;  %vm584_vm9 = vcmp.gt.f32.partialorder %v537_v2, 0.0 }
  0xf7   : > { %791 = vst.msk [vmem:[%s1187_s8 + $0x20] sm:$0xf] %vm782_vm4, %v958_v0  ;;  %v646_v7 = vsel %vm581_vm7, %v526_v58, %v614_v1  ;;  %v617_v8 = vmul.f32 %v1174_v22, %v537_v2  ;;  %v486_v9 = vadd.f32 %v1021_v53, %v1172_v20  ;;  %vm566_vm10 = vcmp.gt.f32.partialorder %v465_v5, 0.0  ;;  %v480_v31 = vpop.f32.mrf.mxu0  ;;  %v544_v34 = vpop.f32.mrf.mxu1 }
  0xf8   : > { %v974_v10 = vpack.c.bf16 %v646_v7, %v646_v7  ;;  %v633_v11 = vsel %vm568_vm8, %v473_v62, %v601_v4  ;;  %v599_v12 = vmul.f32 %v1174_v22, %v465_v5  ;;  %vm582_vm11 = vcmp.gt.f32.partialorder %v529_v6, 0.0 }
  0xf9   : > { %v961_v14 = vpack.c.bf16 %v633_v11, %v633_v11  ;;  %v649_v15 = vsel %vm584_vm9, %v537_v2, %v617_v8  ;;  %v615_v16 = vmul.f32 %v1174_v22, %v529_v6  ;;  %vm571_vm12 = vcmp.gt.f32.partialorder %v486_v9, 0.0 }
  0xfa   : > { %807 = vst.msk [vmem:[%s1187_s8 + $0x60] sm:$0xf] %vm782_vm4, %v974_v10  ;;  %v977_v18 = vpack.c.bf16 %v649_v15, %v649_v15  ;;  %v631_v19 = vsel %vm566_vm10, %v465_v5, %v599_v12  ;;  %v604_v21 = vmul.f32 %v1174_v22, %v486_v9  ;;  %v550_v25 = vadd.f32 %v1037_v54, %v1172_v20 }
  0xfb   : > { %794 = vst.msk [vmem:[%s1187_s8 + $0x2c] sm:$0xf] %vm782_vm4, %v961_v14  ;;  %v959_v23 = vpack.c.bf16 %v631_v19, %v631_v19  ;;  %v647_v24 = vsel %vm582_vm11, %v529_v6, %v615_v16  ;;  %v478_v26 = vadd.f32 %v1172_v20, %v477_v63  ;;  %v542_v29 = vadd.f32 %v1172_v20, %v541_v3 }
  0xfc   : > { %810 = vst.msk [vmem:[%s1187_s8 + $0x6c] sm:$0xf] %vm782_vm4, %v977_v18  ;;  %v975_v27 = vpack.c.bf16 %v647_v24, %v647_v24  ;;  %v636_v28 = vsel %vm571_vm12, %v486_v9, %v604_v21  ;;  %v489_v30 = vadd.f32 %v1022_v13, %v1172_v20  ;;  %vm587_vm13 = vcmp.gt.f32.partialorder %v550_v25, 0.0 }
  0xfd   : > { %792 = vst.msk [vmem:[%s1187_s8 + $0x24] sm:$0xf] %vm782_vm4, %v959_v23  ;;  %v964_v32 = vpack.c.bf16 %v636_v28, %v636_v28  ;;  %v620_v33 = vmul.f32 %v1174_v22, %v550_v25  ;;  %vm569_vm14 = vcmp.gt.f32.partialorder %v478_v26, 0.0  ;;  %v602_v35 = vmul.f32 %v1174_v22, %v478_v26 }
  0xfe   : > { %808 = vst.msk [vmem:[%s1187_s8 + $0x64] sm:$0xf] %vm782_vm4, %v975_v27  ;;  %vm585_vm15 = vcmp.gt.f32.partialorder %v542_v29, 0.0  ;;  %v618_v36 = vmul.f32 %v1174_v22, %v542_v29  ;;  %vm572_vm0 = vcmp.gt.f32.partialorder %v489_v30, 0.0  ;;  %v605_v38 = vmul.f32 %v1174_v22, %v489_v30 }
  0xff   : > { %797 = vst.msk [vmem:[%s1187_s8 + $0x38] sm:$0xf] %vm782_vm4, %v964_v32  ;;  %v652_v37 = vsel %vm587_vm13, %v550_v25, %v620_v33  ;;  %v553_v39 = vadd.f32 %v1038_v17, %v1172_v20  ;;  %v481_v40 = vadd.f32 %v1172_v20, %v480_v31  ;;  %v634_v42 = vsel %vm569_vm14, %v478_v26, %v602_v35 }
 0x100   : > { %v980_v41 = vpack.c.bf16 %v652_v37, %v652_v37  ;;  %v650_v43 = vsel %vm585_vm15, %v542_v29, %v618_v36  ;;  %v545_v44 = vadd.f32 %v1172_v20, %v544_v34  ;;  %v962_v45 = vpack.c.bf16 %v634_v42, %v634_v42 }
 0x101   : > { %v978_v46 = vpack.c.bf16 %v650_v43, %v650_v43  ;;  %v637_v47 = vsel %vm572_vm0, %v489_v30, %v605_v38  ;;  %vm588_vm1 = vcmp.gt.f32.partialorder %v553_v39, 0.0  ;;  %v621_v49 = vmul.f32 %v1174_v22, %v553_v39 }
 0x102   : > { %813 = vst.msk [vmem:[%s1187_s8 + $0x78] sm:$0xf] %vm782_vm4, %v980_v41  ;;  %v965_v48 = vpack.c.bf16 %v637_v47, %v637_v47  ;;  %vm570_vm2 = vcmp.gt.f32.partialorder %v481_v40, 0.0  ;;  %v603_v50 = vmul.f32 %v1174_v22, %v481_v40  ;;  %795 = vst.msk [vmem:[%s1187_s8 + $0x30] sm:$0xf] %vm782_vm4, %v962_v45  ;;  %vm586_vm3 = vcmp.gt.f32.partialorder %v545_v44, 0.0 }
 0x103   : > { %811 = vst.msk [vmem:[%s1187_s8 + $0x70] sm:$0xf] %vm782_vm4, %v978_v46  ;;  %v619_v20 = vmul.f32 %v1174_v22, %v545_v44  ;;  %v653_v51 = vsel %vm588_vm1, %v553_v39, %v621_v49 }
 0x104   : > { %798 = vst.msk [vmem:[%s1187_s8 + $0x3c] sm:$0xf] %vm782_vm4, %v965_v48  ;;  %v635_v52 = vsel %vm570_vm2, %v481_v40, %v603_v50  ;;  %v981_v53 = vpack.c.bf16 %v653_v51, %v653_v51 }
 0x105   : > { %v963_v54 = vpack.c.bf16 %v635_v52, %v635_v52  ;;  %v651_v55 = vsel %vm586_vm3, %v545_v44, %v619_v20 }
 0x106   : > { %v979_v56 = vpack.c.bf16 %v651_v55, %v651_v55  ;;  %814 = vst.msk [vmem:[%s1187_s8 + $0x7c] sm:$0xf] %vm782_vm4, %v981_v53 }
 0x107   : > { %796 = vst.msk [vmem:[%s1187_s8 + $0x34] sm:$0xf] %vm782_vm4, %v963_v54 }
 0x108   : > { %812 = vst.msk [vmem:[%s1187_s8 + $0x74] sm:$0xf] %vm782_vm4, %v979_v56 }
 0x109 PF: > { %s15_s17 = sadd.s32 1, %s1080_s17  }
 0x10a   : > { %p12_p4 = scmp.ge.s32.totalorder %s15_s17, 4  }
 0x10c   :  { %14 = sbr.rel (!%p12_p4) target bundleno = 2 (0x2), region = 66 }

// kernel: _lambda_.8
= control target key start
LH: loop header
LB: loop body
LE: loop exit
PB: predicated region body
PF: predicated region fallthrough
CT: control target
= control target key end

     0   :  { %s1629_s23 = smov 0   ;;  %s1865_s0 = inlined_call_operand.vmem [shape: bf16[512,4], index: 0, kind: input, shape index: {}, may-alias: {0,1}]   ;;  %s1866_s1 = inlined_call_operand.vmem [shape: bf16[512,4], index: 1, kind: input, shape index: {}, may-alias: {0,1}]   ;;  %s1867_s2 = inlined_call_operand.vmem [shape: bf16[4,4], index: 2, kind: input, shape index: {}]   ;;  %s1868_s3 = inlined_call_operand.vmem [shape: bf16[4,4], index: 3, kind: input, shape index: {}]   ;;  %s1869_s4 = inlined_call_operand.vmem [shape: f32[1,4], index: 4, kind: input, shape index: {}]   ;;  %s1870_s5 = inlined_call_operand.<no memory space> [shape: f32[1], index: 5, kind: input, shape index: {}]   ;;  %s1871_s6 = inlined_call_operand.vmem [shape: bf16[512,4], index: 6, kind: output, shape index: {}]  }
   0x1   :  { %11 = sst [smem:[#allocation2]] %s1870_s5 }
   0x2 LB: > { %s1297_s24 = sadd.s32 4294967295, %s1589_s23   ;;  %p1301_p0 = scmp.ge.s32.totalorder %s1589_s23, 1  ;;  %s1589_s23 = sphi %s1629_s23, %s17_s23  }
   0x3   : > { %p225_p1 = scmp.lt.s32.totalorder %s1589_s23, 3 }
   0x5   : > { %p226_p2 = pnand %p1301_p0, %p225_p1 }
   0x6   : > { %s1302_s28 = sshll.u32 (!%p226_p2), %s1297_s24, 5  ;;  %s970_s12 = sld [smem:[#allocation2]] (!%p226_p2) }
   0x7   : > { %229 = sbr.rel (%p226_p2) target bundleno = 284 (0x11c), region = 44  ;;  %p261_p3 = scmp.lt.s32.totalorder (!%p226_p2), %s1302_s28, 63 }
   0xc   : > { %v344_v0 = vld [vmem:[%s1868_s3] sm:$0x3]  ;;  %vm474_vm0 = vcmask 1041408   ;;  %s1873_s28 = smov (!%p261_p3, %s1302_s28), 63  ;;  %vm425_vm1 = vcmask 31744   ;;  %v1726_v41 = vstv %s970_s12  ;;  %vm1196_vm3 = vcmask 27648  }
   0xd   : > { %v311_v1 = vld [vmem:[%s1867_s2] sm:$0x3]  ;;  %1541 = vmatprep.subr.msk.bf16.mxu0 %vm474_vm0, %v344_v0  ;;  %v476_v2 = vsel %vm474_vm0, %v344_v0, 0  ;;  %s1643_s29 = sshll.u32 %s1873_s28, 2 }
   0xe   : > { %1542 = vmatprep.subr.msk.bf16.mxu1 %vm474_vm0, %v311_v1  ;;  %v768_v3 = vsel %vm474_vm0, %v311_v1, 0  ;;  %1474 = vmatpush3.bf16.msra.mxu0 %v476_v2  ;;  %s1649_s8 = scalar_lea.vmem %s1866_s1, %s1643_s29  ;;  %s1656_s11 = scalar_lea.vmem %s1865_s0, %s1643_s29  ;;  %v1724_v38 = vld [vmem:[%s1869_s4] ss:$0 sm:$0xff] }
   0xf   : > { %1508 = vmatpush3.bf16.msra.mxu1 %v768_v3  ;;  %v1551_v4 = vld [vmem:[%s1649_s8] sm:$0xff]   ;;  %v1553_v6 = vld [vmem:[%s1649_s8 + $0x8] sm:$0xff]   ;;  %v1555_v8 = vld [vmem:[%s1649_s8 + $0x10] sm:$0xff]   ;;  %s1735_s17 = scalar_lea.vmem %s1871_s6, %s1643_s29 }
  0x10   : > { %v1552_v5 = vld [vmem:[%s1656_s11] sm:$0xff]   ;;  %1475 = vmatprep.mubr.msk.bf16.mxu0 %vm425_vm1, %v1551_v4  ;;  %v1554_v7 = vld [vmem:[%s1656_s11 + $0x8] sm:$0xff]   ;;  %v1556_v9 = vld [vmem:[%s1656_s11 + $0x10] sm:$0xff]  }
  0x11   : > { %1509 = vmatprep.mubr.msk.bf16.mxu1 %vm425_vm1, %v1552_v5  ;;  %1476 = vmatmul.mubr.msk.bf16.vlgmr.msra.gmra.mxu0 %vm425_vm1, %v1553_v6  ;;  %v1557_v10 = vld [vmem:[%s1649_s8 + $0x18] sm:$0xff]   ;;  %v1559_v12 = vld [vmem:[%s1649_s8 + $0x20] sm:$0xff]   ;;  %v1561_v14 = vld [vmem:[%s1649_s8 + $0x28] sm:$0xff]  }
  0x12   : > { %1510 = vmatmul.mubr.msk.bf16.vlgmr.msra.gmra.mxu1 %vm425_vm1, %v1554_v7  ;;  %1479 = vmatprep.mubr.msk.bf16.mxu0 %vm425_vm1, %v1555_v8  ;;  %v1558_v11 = vld [vmem:[%s1656_s11 + $0x18] sm:$0xff]   ;;  %v1560_v13 = vld [vmem:[%s1656_s11 + $0x20] sm:$0xff]   ;;  %v1562_v15 = vld [vmem:[%s1656_s11 + $0x28] sm:$0xff]  }
  0x13   : > { %1513 = vmatprep.mubr.msk.bf16.mxu1 %vm425_vm1, %v1556_v9  ;;  %v1563_v16 = vld [vmem:[%s1649_s8 + $0x30] sm:$0xff]   ;;  %v1565_v18 = vld [vmem:[%s1649_s8 + $0x38] sm:$0xff]   ;;  %v1567_v20 = vld [vmem:[%s1649_s8 + $0x40] sm:$0xff]  }
  0x14   : > { %v1564_v17 = vld [vmem:[%s1656_s11 + $0x30] sm:$0xff]   ;;  %v1566_v19 = vld [vmem:[%s1656_s11 + $0x38] sm:$0xff]   ;;  %v1568_v21 = vld [vmem:[%s1656_s11 + $0x40] sm:$0xff]  }
  0x15   : > { %v1569_v22 = vld [vmem:[%s1649_s8 + $0x48] sm:$0xff]   ;;  %v1571_v24 = vld [vmem:[%s1649_s8 + $0x50] sm:$0xff]   ;;  %v1573_v26 = vld [vmem:[%s1649_s8 + $0x58] sm:$0xff]  }
  0x16   : > { %v1570_v23 = vld [vmem:[%s1656_s11 + $0x48] sm:$0xff]   ;;  %v1572_v25 = vld [vmem:[%s1656_s11 + $0x50] sm:$0xff]   ;;  %v1574_v27 = vld [vmem:[%s1656_s11 + $0x58] sm:$0xff]  }
  0x17   : > { %v1575_v28 = vld [vmem:[%s1649_s8 + $0x60] sm:$0xff]   ;;  %v1577_v30 = vld [vmem:[%s1649_s8 + $0x68] sm:$0xff]   ;;  %v1579_v32 = vld [vmem:[%s1649_s8 + $0x70] sm:$0xff]  }
  0x18   : > { %v1576_v29 = vld [vmem:[%s1656_s11 + $0x60] sm:$0xff]   ;;  %v1578_v31 = vld [vmem:[%s1656_s11 + $0x68] sm:$0xff]   ;;  %v1580_v33 = vld [vmem:[%s1656_s11 + $0x70] sm:$0xff]  }
  0x19   : > { %1480 = vmatmul.mubr.msk.bf16.gmra.mxu0 %vm425_vm1, %v1557_v10  ;;  %v1581_v34 = vld [vmem:[%s1649_s8 + $0x78] sm:$0xff]  }
  0x1a   : > { %1514 = vmatmul.mubr.msk.bf16.gmra.mxu1 %vm425_vm1, %v1558_v11  ;;  %1483 = vmatprep.mubr.msk.bf16.mxu0 %vm425_vm1, %v1559_v12  ;;  %v1582_v35 = vld [vmem:[%s1656_s11 + $0x78] sm:$0xff]  }
  0x1b   : > { %1517 = vmatprep.mubr.msk.bf16.mxu1 %vm425_vm1, %v1560_v13 }
  0x21   : > { %1484 = vmatmul.mubr.msk.bf16.gmra.mxu0 %vm425_vm1, %v1561_v14 }
  0x22   : > { %1518 = vmatmul.mubr.msk.bf16.gmra.mxu1 %vm425_vm1, %v1562_v15  ;;  %1487 = vmatprep.mubr.msk.bf16.mxu0 %vm425_vm1, %v1563_v16 }
  0x23   : > { %1521 = vmatprep.mubr.msk.bf16.mxu1 %vm425_vm1, %v1564_v17 }
  0x29   : > { %1488 = vmatmul.mubr.msk.bf16.gmra.mxu0 %vm425_vm1, %v1565_v18 }
  0x2a   : > { %1522 = vmatmul.mubr.msk.bf16.gmra.mxu1 %vm425_vm1, %v1566_v19  ;;  %1491 = vmatprep.mubr.msk.bf16.mxu0 %vm425_vm1, %v1567_v20 }
  0x2b   : > { %1525 = vmatprep.mubr.msk.bf16.mxu1 %vm425_vm1, %v1568_v21 }
  0x31   : > { %1492 = vmatmul.mubr.msk.bf16.gmra.mxu0 %vm425_vm1, %v1569_v22 }
  0x32   : > { %1526 = vmatmul.mubr.msk.bf16.gmra.mxu1 %vm425_vm1, %v1570_v23  ;;  %1495 = vmatprep.mubr.msk.bf16.mxu0 %vm425_vm1, %v1571_v24 }
  0x33   : > { %1529 = vmatprep.mubr.msk.bf16.mxu1 %vm425_vm1, %v1572_v25 }
  0x39   : > { %1496 = vmatmul.mubr.msk.bf16.gmra.mxu0 %vm425_vm1, %v1573_v26 }
  0x3a   : > { %1530 = vmatmul.mubr.msk.bf16.gmra.mxu1 %vm425_vm1, %v1574_v27  ;;  %1499 = vmatprep.mubr.msk.bf16.mxu0 %vm425_vm1, %v1575_v28 }
  0x3b   : > { %1533 = vmatprep.mubr.msk.bf16.mxu1 %vm425_vm1, %v1576_v29 }
  0x41   : > { %1500 = vmatmul.mubr.msk.bf16.gmra.mxu0 %vm425_vm1, %v1577_v30 }
  0x42   : > { %1534 = vmatmul.mubr.msk.bf16.gmra.mxu1 %vm425_vm1, %v1578_v31  ;;  %1503 = vmatprep.mubr.msk.bf16.mxu0 %vm425_vm1, %v1579_v32 }
  0x43   : > { %1537 = vmatprep.mubr.msk.bf16.mxu1 %vm425_vm1, %v1580_v33 }
  0x49   : > { %1504 = vmatmul.mubr.msk.bf16.gmra.mxu0 %vm425_vm1, %v1581_v34 }
  0x4a   : > { %1538 = vmatmul.mubr.msk.bf16.gmra.mxu1 %vm425_vm1, %v1582_v35 }
  0xd1   : > { %v1477_v36 = vpop.f32.mrf.mxu0 }
  0xd2   : > { %v1511_v37 = vpop.f32.mrf.mxu1 }
  0xd3   : > { %v813_v39 = vadd.f32 %v1511_v37, %v1477_v36  ;;  %v512_v40 = vpop.f32.mrf.mxu0 }
  0xd4   : > { %v804_v42 = vpop.f32.mrf.mxu1 }
  0xd5   : > { %v940_v43 = vadd.f32 %v1724_v38, %v813_v39  ;;  %v805_v44 = vadd.f32 %v804_v42, %v512_v40  ;;  %v1478_v45 = vpop.f32.mrf.mxu0 }
  0xd6   : > { %v1512_v46 = vpop.f32.mrf.mxu1 }
  0xd7   : > { %vm973_vm2 = vcmp.gt.f32.partialorder %v940_v43, 0.0  ;;  %v1006_v47 = vmul.f32 %v1726_v41, %v940_v43  ;;  %v938_v48 = vadd.f32 %v1724_v38, %v805_v44  ;;  %v816_v49 = vadd.f32 %v1512_v46, %v1478_v45  ;;  %v515_v50 = vpop.f32.mrf.mxu0 }
  0xd8   : > { %v807_v51 = vpop.f32.mrf.mxu1 }
  0xd9   : > { %v1038_v52 = vsel %vm973_vm2, %v940_v43, %v1006_v47  ;;  %vm971_vm4 = vcmp.gt.f32.partialorder %v938_v48, 0.0  ;;  %v1004_v53 = vmul.f32 %v1726_v41, %v938_v48  ;;  %v941_v54 = vadd.f32 %v1724_v38, %v816_v49  ;;  %v1481_v55 = vpop.f32.mrf.mxu0 }
  0xda   : > { %v1409_v56 = vpack.c.bf16 %v1038_v52, %v1038_v52  ;;  %v808_v57 = vadd.f32 %v807_v51, %v515_v50  ;;  %v1515_v58 = vpop.f32.mrf.mxu1 }
  0xdb   : > { %v1036_v59 = vsel %vm971_vm4, %v938_v48, %v1004_v53  ;;  %vm974_vm5 = vcmp.gt.f32.partialorder %v941_v54, 0.0  ;;  %v1007_v60 = vmul.f32 %v1726_v41, %v941_v54  ;;  %v829_v61 = vadd.f32 %v1515_v58, %v1481_v55  ;;  %v528_v62 = vpop.f32.mrf.mxu0 }
  0xdc   : > { %1199 = vst.msk [vmem:[%s1735_s17 + $0x8] sm:$0xf] %vm1196_vm3, %v1409_v56  ;;  %v1407_v63 = vpack.c.bf16 %v1036_v59, %v1036_v59  ;;  %v939_v0 = vadd.f32 %v1724_v38, %v808_v57  ;;  %v820_v1 = vpop.f32.mrf.mxu1 }
  0xdd   : > { %v1039_v2 = vsel %vm974_vm5, %v941_v54, %v1007_v60  ;;  %v944_v3 = vadd.f32 %v1724_v38, %v829_v61  ;;  %v821_v4 = vadd.f32 %v820_v1, %v528_v62  ;;  %v1482_v5 = vpop.f32.mrf.mxu0 }
  0xde   : > { %1197 = vst.msk [vmem:[%s1735_s17] sm:$0xf] %vm1196_vm3, %v1407_v63  ;;  %v1410_v6 = vpack.c.bf16 %v1039_v2, %v1039_v2  ;;  %vm972_vm6 = vcmp.gt.f32.partialorder %v939_v0, 0.0  ;;  %v1005_v7 = vmul.f32 %v1726_v41, %v939_v0  ;;  %v1516_v8 = vpop.f32.mrf.mxu1 }
  0xdf   : > { %vm977_vm7 = vcmp.gt.f32.partialorder %v944_v3, 0.0  ;;  %v1010_v9 = vmul.f32 %v1726_v41, %v944_v3  ;;  %v942_v10 = vadd.f32 %v1724_v38, %v821_v4  ;;  %v832_v11 = vadd.f32 %v1516_v8, %v1482_v5  ;;  %v531_v12 = vpop.f32.mrf.mxu0 }
  0xe0   : > { %1200 = vst.msk [vmem:[%s1735_s17 + $0xc] sm:$0xf] %vm1196_vm3, %v1410_v6  ;;  %v1037_v13 = vsel %vm972_vm6, %v939_v0, %v1005_v7  ;;  %v823_v14 = vpop.f32.mrf.mxu1 }
  0xe1   : > { %v1408_v15 = vpack.c.bf16 %v1037_v13, %v1037_v13  ;;  %v1042_v16 = vsel %vm977_vm7, %v944_v3, %v1010_v9  ;;  %vm975_vm8 = vcmp.gt.f32.partialorder %v942_v10, 0.0  ;;  %v1008_v17 = vmul.f32 %v1726_v41, %v942_v10  ;;  %v1485_v18 = vpop.f32.mrf.mxu0 }
  0xe2   : > { %v1413_v19 = vpack.c.bf16 %v1042_v16, %v1042_v16  ;;  %v945_v20 = vadd.f32 %v1724_v38, %v832_v11  ;;  %v824_v21 = vadd.f32 %v823_v14, %v531_v12  ;;  %v1519_v22 = vpop.f32.mrf.mxu1 }
  0xe3   : > { %1198 = vst.msk [vmem:[%s1735_s17 + $0x4] sm:$0xf] %vm1196_vm3, %v1408_v15  ;;  %v1040_v23 = vsel %vm975_vm8, %v942_v10, %v1008_v17  ;;  %v845_v24 = vadd.f32 %v1519_v22, %v1485_v18  ;;  %v544_v25 = vpop.f32.mrf.mxu0 }
  0xe4   : > { %1203 = vst.msk [vmem:[%s1735_s17 + $0x18] sm:$0xf] %vm1196_vm3, %v1413_v19  ;;  %v1411_v26 = vpack.c.bf16 %v1040_v23, %v1040_v23  ;;  %vm978_vm9 = vcmp.gt.f32.partialorder %v945_v20, 0.0  ;;  %v1011_v27 = vmul.f32 %v1726_v41, %v945_v20  ;;  %v943_v28 = vadd.f32 %v1724_v38, %v824_v21  ;;  %v836_v29 = vpop.f32.mrf.mxu1 }
  0xe5   : > { %v948_v30 = vadd.f32 %v1724_v38, %v845_v24  ;;  %v837_v31 = vadd.f32 %v836_v29, %v544_v25  ;;  %v1486_v32 = vpop.f32.mrf.mxu0 }
  0xe6   : > { %1201 = vst.msk [vmem:[%s1735_s17 + $0x10] sm:$0xf] %vm1196_vm3, %v1411_v26  ;;  %v1043_v33 = vsel %vm978_vm9, %v945_v20, %v1011_v27  ;;  %vm976_vm10 = vcmp.gt.f32.partialorder %v943_v28, 0.0  ;;  %v1009_v34 = vmul.f32 %v1726_v41, %v943_v28  ;;  %v1520_v35 = vpop.f32.mrf.mxu1 }
  0xe7   : > { %v1414_v36 = vpack.c.bf16 %v1043_v33, %v1043_v33  ;;  %vm981_vm11 = vcmp.gt.f32.partialorder %v948_v30, 0.0  ;;  %v1014_v37 = vmul.f32 %v1726_v41, %v948_v30  ;;  %v946_v39 = vadd.f32 %v1724_v38, %v837_v31  ;;  %v547_v40 = vpop.f32.mrf.mxu0 }
  0xe8   : > { %v1041_v42 = vsel %vm976_vm10, %v943_v28, %v1009_v34  ;;  %v848_v43 = vadd.f32 %v1520_v35, %v1486_v32  ;;  %v839_v44 = vpop.f32.mrf.mxu1 }
  0xe9   : > { %1204 = vst.msk [vmem:[%s1735_s17 + $0x1c] sm:$0xf] %vm1196_vm3, %v1414_v36  ;;  %v1412_v45 = vpack.c.bf16 %v1041_v42, %v1041_v42  ;;  %v1046_v46 = vsel %vm981_vm11, %v948_v30, %v1014_v37  ;;  %vm979_vm12 = vcmp.gt.f32.partialorder %v946_v39, 0.0  ;;  %v1012_v47 = vmul.f32 %v1726_v41, %v946_v39  ;;  %v1489_v48 = vpop.f32.mrf.mxu0 }
  0xea   : > { %v1417_v49 = vpack.c.bf16 %v1046_v46, %v1046_v46  ;;  %v949_v50 = vadd.f32 %v1724_v38, %v848_v43  ;;  %v840_v51 = vadd.f32 %v839_v44, %v547_v40  ;;  %v1523_v52 = vpop.f32.mrf.mxu1 }
  0xeb   : > { %1202 = vst.msk [vmem:[%s1735_s17 + $0x14] sm:$0xf] %vm1196_vm3, %v1412_v45  ;;  %v1044_v53 = vsel %vm979_vm12, %v946_v39, %v1012_v47  ;;  %v861_v54 = vadd.f32 %v1523_v52, %v1489_v48  ;;  %v560_v55 = vpop.f32.mrf.mxu0 }
  0xec   : > { %1207 = vst.msk [vmem:[%s1735_s17 + $0x28] sm:$0xf] %vm1196_vm3, %v1417_v49  ;;  %v1415_v56 = vpack.c.bf16 %v1044_v53, %v1044_v53  ;;  %vm982_vm13 = vcmp.gt.f32.partialorder %v949_v50, 0.0  ;;  %v1015_v57 = vmul.f32 %v1726_v41, %v949_v50  ;;  %v947_v58 = vadd.f32 %v1724_v38, %v840_v51  ;;  %v852_v59 = vpop.f32.mrf.mxu1 }
  0xed   : > { %v952_v60 = vadd.f32 %v1724_v38, %v861_v54  ;;  %v853_v61 = vadd.f32 %v852_v59, %v560_v55  ;;  %v1490_v62 = vpop.f32.mrf.mxu0 }
  0xee   : > { %1205 = vst.msk [vmem:[%s1735_s17 + $0x20] sm:$0xf] %vm1196_vm3, %v1415_v56  ;;  %v1047_v63 = vsel %vm982_vm13, %v949_v50, %v1015_v57  ;;  %vm980_vm14 = vcmp.gt.f32.partialorder %v947_v58, 0.0  ;;  %v1013_v0 = vmul.f32 %v1726_v41, %v947_v58  ;;  %v1524_v1 = vpop.f32.mrf.mxu1 }
  0xef   : > { %v1418_v2 = vpack.c.bf16 %v1047_v63, %v1047_v63  ;;  %vm985_vm15 = vcmp.gt.f32.partialorder %v952_v60, 0.0  ;;  %v1018_v3 = vmul.f32 %v1726_v41, %v952_v60  ;;  %v950_v4 = vadd.f32 %v1724_v38, %v853_v61  ;;  %v563_v5 = vpop.f32.mrf.mxu0 }
  0xf0   : > { %v1045_v6 = vsel %vm980_vm14, %v947_v58, %v1013_v0  ;;  %v864_v7 = vadd.f32 %v1524_v1, %v1490_v62  ;;  %v855_v8 = vpop.f32.mrf.mxu1 }
  0xf1   : > { %1208 = vst.msk [vmem:[%s1735_s17 + $0x2c] sm:$0xf] %vm1196_vm3, %v1418_v2  ;;  %v1416_v9 = vpack.c.bf16 %v1045_v6, %v1045_v6  ;;  %v1050_v10 = vsel %vm985_vm15, %v952_v60, %v1018_v3  ;;  %vm983_vm0 = vcmp.gt.f32.partialorder %v950_v4, 0.0  ;;  %v1016_v11 = vmul.f32 %v1726_v41, %v950_v4  ;;  %v1493_v12 = vpop.f32.mrf.mxu0 }
  0xf2   : > { %v1421_v13 = vpack.c.bf16 %v1050_v10, %v1050_v10  ;;  %v953_v14 = vadd.f32 %v1724_v38, %v864_v7  ;;  %v856_v15 = vadd.f32 %v855_v8, %v563_v5  ;;  %v1527_v16 = vpop.f32.mrf.mxu1 }
  0xf3   : > { %1206 = vst.msk [vmem:[%s1735_s17 + $0x24] sm:$0xf] %vm1196_vm3, %v1416_v9  ;;  %v1048_v17 = vsel %vm983_vm0, %v950_v4, %v1016_v11  ;;  %v877_v18 = vadd.f32 %v1527_v16, %v1493_v12  ;;  %v576_v19 = vpop.f32.mrf.mxu0 }
  0xf4   : > { %1211 = vst.msk [vmem:[%s1735_s17 + $0x38] sm:$0xf] %vm1196_vm3, %v1421_v13  ;;  %v1419_v20 = vpack.c.bf16 %v1048_v17, %v1048_v17  ;;  %vm986_vm1 = vcmp.gt.f32.partialorder %v953_v14, 0.0  ;;  %v1019_v21 = vmul.f32 %v1726_v41, %v953_v14  ;;  %v951_v22 = vadd.f32 %v1724_v38, %v856_v15  ;;  %v868_v23 = vpop.f32.mrf.mxu1 }
  0xf5   : > { %v956_v24 = vadd.f32 %v1724_v38, %v877_v18  ;;  %v869_v25 = vadd.f32 %v868_v23, %v576_v19  ;;  %v1494_v26 = vpop.f32.mrf.mxu0 }
  0xf6   : > { %1209 = vst.msk [vmem:[%s1735_s17 + $0x30] sm:$0xf] %vm1196_vm3, %v1419_v20  ;;  %v1051_v27 = vsel %vm986_vm1, %v953_v14, %v1019_v21  ;;  %vm984_vm2 = vcmp.gt.f32.partialorder %v951_v22, 0.0  ;;  %v1017_v28 = vmul.f32 %v1726_v41, %v951_v22  ;;  %v1528_v29 = vpop.f32.mrf.mxu1 }
  0xf7   : > { %v1422_v30 = vpack.c.bf16 %v1051_v27, %v1051_v27  ;;  %vm989_vm4 = vcmp.gt.f32.partialorder %v956_v24, 0.0  ;;  %v1022_v31 = vmul.f32 %v1726_v41, %v956_v24  ;;  %v954_v32 = vadd.f32 %v1724_v38, %v869_v25  ;;  %v579_v33 = vpop.f32.mrf.mxu0 }
  0xf8   : > { %v1049_v34 = vsel %vm984_vm2, %v951_v22, %v1017_v28  ;;  %v880_v35 = vadd.f32 %v1528_v29, %v1494_v26  ;;  %v871_v36 = vpop.f32.mrf.mxu1 }
  0xf9   : > { %1212 = vst.msk [vmem:[%s1735_s17 + $0x3c] sm:$0xf] %vm1196_vm3, %v1422_v30  ;;  %v1420_v37 = vpack.c.bf16 %v1049_v34, %v1049_v34  ;;  %v1054_v39 = vsel %vm989_vm4, %v956_v24, %v1022_v31  ;;  %vm987_vm5 = vcmp.gt.f32.partialorder %v954_v32, 0.0  ;;  %v1020_v40 = vmul.f32 %v1726_v41, %v954_v32  ;;  %v1497_v42 = vpop.f32.mrf.mxu0 }
  0xfa   : > { %v1425_v43 = vpack.c.bf16 %v1054_v39, %v1054_v39  ;;  %v957_v44 = vadd.f32 %v1724_v38, %v880_v35  ;;  %v872_v45 = vadd.f32 %v871_v36, %v579_v33  ;;  %v1531_v46 = vpop.f32.mrf.mxu1 }
  0xfb   : > { %1210 = vst.msk [vmem:[%s1735_s17 + $0x34] sm:$0xf] %vm1196_vm3, %v1420_v37  ;;  %v1052_v47 = vsel %vm987_vm5, %v954_v32, %v1020_v40  ;;  %v893_v48 = vadd.f32 %v1531_v46, %v1497_v42  ;;  %v592_v49 = vpop.f32.mrf.mxu0 }
  0xfc   : > { %1215 = vst.msk [vmem:[%s1735_s17 + $0x48] sm:$0xf] %vm1196_vm3, %v1425_v43  ;;  %v1423_v50 = vpack.c.bf16 %v1052_v47, %v1052_v47  ;;  %vm990_vm6 = vcmp.gt.f32.partialorder %v957_v44, 0.0  ;;  %v1023_v51 = vmul.f32 %v1726_v41, %v957_v44  ;;  %v955_v52 = vadd.f32 %v1724_v38, %v872_v45  ;;  %v884_v53 = vpop.f32.mrf.mxu1 }
  0xfd   : > { %v960_v54 = vadd.f32 %v1724_v38, %v893_v48  ;;  %v885_v55 = vadd.f32 %v884_v53, %v592_v49  ;;  %v1498_v56 = vpop.f32.mrf.mxu0 }
  0xfe   : > { %1213 = vst.msk [vmem:[%s1735_s17 + $0x40] sm:$0xf] %vm1196_vm3, %v1423_v50  ;;  %v1055_v57 = vsel %vm990_vm6, %v957_v44, %v1023_v51  ;;  %vm988_vm7 = vcmp.gt.f32.partialorder %v955_v52, 0.0  ;;  %v1021_v58 = vmul.f32 %v1726_v41, %v955_v52  ;;  %v1532_v59 = vpop.f32.mrf.mxu1 }
  0xff   : > { %v1426_v60 = vpack.c.bf16 %v1055_v57, %v1055_v57  ;;  %vm993_vm8 = vcmp.gt.f32.partialorder %v960_v54, 0.0  ;;  %v1026_v61 = vmul.f32 %v1726_v41, %v960_v54  ;;  %v958_v62 = vadd.f32 %v1724_v38, %v885_v55  ;;  %v595_v63 = vpop.f32.mrf.mxu0 }
 0x100   : > { %v1053_v0 = vsel %vm988_vm7, %v955_v52, %v1021_v58  ;;  %v896_v1 = vadd.f32 %v1532_v59, %v1498_v56  ;;  %v887_v2 = vpop.f32.mrf.mxu1 }
 0x101   : > { %1216 = vst.msk [vmem:[%s1735_s17 + $0x4c] sm:$0xf] %vm1196_vm3, %v1426_v60  ;;  %v1424_v3 = vpack.c.bf16 %v1053_v0, %v1053_v0  ;;  %v1058_v4 = vsel %vm993_vm8, %v960_v54, %v1026_v61  ;;  %vm991_vm9 = vcmp.gt.f32.partialorder %v958_v62, 0.0  ;;  %v1024_v5 = vmul.f32 %v1726_v41, %v958_v62  ;;  %v1501_v6 = vpop.f32.mrf.mxu0 }
 0x102   : > { %v1429_v7 = vpack.c.bf16 %v1058_v4, %v1058_v4  ;;  %v961_v8 = vadd.f32 %v1724_v38, %v896_v1  ;;  %v888_v9 = vadd.f32 %v887_v2, %v595_v63  ;;  %v1535_v10 = vpop.f32.mrf.mxu1 }
 0x103   : > { %1214 = vst.msk [vmem:[%s1735_s17 + $0x44] sm:$0xf] %vm1196_vm3, %v1424_v3  ;;  %v1056_v11 = vsel %vm991_vm9, %v958_v62, %v1024_v5  ;;  %v909_v12 = vadd.f32 %v1535_v10, %v1501_v6  ;;  %v608_v13 = vpop.f32.mrf.mxu0 }
 0x104   : > { %1219 = vst.msk [vmem:[%s1735_s17 + $0x58] sm:$0xf] %vm1196_vm3, %v1429_v7  ;;  %v1427_v14 = vpack.c.bf16 %v1056_v11, %v1056_v11  ;;  %vm994_vm10 = vcmp.gt.f32.partialorder %v961_v8, 0.0  ;;  %v1027_v15 = vmul.f32 %v1726_v41, %v961_v8  ;;  %v959_v16 = vadd.f32 %v1724_v38, %v888_v9  ;;  %v900_v17 = vpop.f32.mrf.mxu1 }
 0x105   : > { %v964_v18 = vadd.f32 %v1724_v38, %v909_v12  ;;  %v901_v19 = vadd.f32 %v900_v17, %v608_v13  ;;  %v1502_v20 = vpop.f32.mrf.mxu0 }
 0x106   : > { %1217 = vst.msk [vmem:[%s1735_s17 + $0x50] sm:$0xf] %vm1196_vm3, %v1427_v14  ;;  %v1059_v21 = vsel %vm994_vm10, %v961_v8, %v1027_v15  ;;  %vm992_vm11 = vcmp.gt.f32.partialorder %v959_v16, 0.0  ;;  %v1025_v22 = vmul.f32 %v1726_v41, %v959_v16  ;;  %v1536_v23 = vpop.f32.mrf.mxu1 }
 0x107   : > { %v1430_v24 = vpack.c.bf16 %v1059_v21, %v1059_v21  ;;  %vm997_vm12 = vcmp.gt.f32.partialorder %v964_v18, 0.0  ;;  %v1030_v25 = vmul.f32 %v1726_v41, %v964_v18  ;;  %v962_v26 = vadd.f32 %v1724_v38, %v901_v19  ;;  %v611_v27 = vpop.f32.mrf.mxu0 }
 0x108   : > { %v1057_v28 = vsel %vm992_vm11, %v959_v16, %v1025_v22  ;;  %v912_v29 = vadd.f32 %v1536_v23, %v1502_v20  ;;  %v903_v30 = vpop.f32.mrf.mxu1 }
 0x109   : > { %1220 = vst.msk [vmem:[%s1735_s17 + $0x5c] sm:$0xf] %vm1196_vm3, %v1430_v24  ;;  %v1428_v31 = vpack.c.bf16 %v1057_v28, %v1057_v28  ;;  %v1062_v32 = vsel %vm997_vm12, %v964_v18, %v1030_v25  ;;  %vm995_vm13 = vcmp.gt.f32.partialorder %v962_v26, 0.0  ;;  %v1028_v33 = vmul.f32 %v1726_v41, %v962_v26  ;;  %v1505_v34 = vpop.f32.mrf.mxu0 }
 0x10a   : > { %v1433_v35 = vpack.c.bf16 %v1062_v32, %v1062_v32  ;;  %v965_v36 = vadd.f32 %v1724_v38, %v912_v29  ;;  %v904_v37 = vadd.f32 %v903_v30, %v611_v27  ;;  %v1539_v39 = vpop.f32.mrf.mxu1 }
 0x10b   : > { %1218 = vst.msk [vmem:[%s1735_s17 + $0x54] sm:$0xf] %vm1196_vm3, %v1428_v31  ;;  %v1060_v40 = vsel %vm995_vm13, %v962_v26, %v1028_v33  ;;  %v925_v42 = vadd.f32 %v1539_v39, %v1505_v34  ;;  %v624_v43 = vpop.f32.mrf.mxu0 }
 0x10c   : > { %1223 = vst.msk [vmem:[%s1735_s17 + $0x68] sm:$0xf] %vm1196_vm3, %v1433_v35  ;;  %v1431_v44 = vpack.c.bf16 %v1060_v40, %v1060_v40  ;;  %vm998_vm14 = vcmp.gt.f32.partialorder %v965_v36, 0.0  ;;  %v1031_v45 = vmul.f32 %v1726_v41, %v965_v36  ;;  %v963_v46 = vadd.f32 %v1724_v38, %v904_v37  ;;  %v916_v47 = vpop.f32.mrf.mxu1 }
 0x10d   : > { %v968_v48 = vadd.f32 %v1724_v38, %v925_v42  ;;  %v917_v49 = vadd.f32 %v916_v47, %v624_v43  ;;  %v1506_v50 = vpop.f32.mrf.mxu0 }
 0x10e   : > { %1221 = vst.msk [vmem:[%s1735_s17 + $0x60] sm:$0xf] %vm1196_vm3, %v1431_v44  ;;  %v1063_v51 = vsel %vm998_vm14, %v965_v36, %v1031_v45  ;;  %vm996_vm15 = vcmp.gt.f32.partialorder %v963_v46, 0.0  ;;  %v1029_v52 = vmul.f32 %v1726_v41, %v963_v46  ;;  %v1540_v53 = vpop.f32.mrf.mxu1 }
 0x10f   : > { %v1434_v54 = vpack.c.bf16 %v1063_v51, %v1063_v51  ;;  %vm1001_vm0 = vcmp.gt.f32.partialorder %v968_v48, 0.0  ;;  %v1034_v55 = vmul.f32 %v1726_v41, %v968_v48  ;;  %v966_v56 = vadd.f32 %v1724_v38, %v917_v49  ;;  %v627_v57 = vpop.f32.mrf.mxu0 }
 0x110   : > { %v1061_v58 = vsel %vm996_vm15, %v963_v46, %v1029_v52  ;;  %v928_v59 = vadd.f32 %v1540_v53, %v1506_v50  ;;  %v919_v60 = vpop.f32.mrf.mxu1 }
 0x111   : > { %1224 = vst.msk [vmem:[%s1735_s17 + $0x6c] sm:$0xf] %vm1196_vm3, %v1434_v54  ;;  %v1432_v61 = vpack.c.bf16 %v1061_v58, %v1061_v58  ;;  %v1066_v62 = vsel %vm1001_vm0, %v968_v48, %v1034_v55  ;;  %vm999_vm1 = vcmp.gt.f32.partialorder %v966_v56, 0.0  ;;  %v1032_v63 = vmul.f32 %v1726_v41, %v966_v56 }
 0x112   : > { %v1437_v0 = vpack.c.bf16 %v1066_v62, %v1066_v62  ;;  %v969_v1 = vadd.f32 %v1724_v38, %v928_v59  ;;  %v920_v2 = vadd.f32 %v919_v60, %v627_v57 }
 0x113   : > { %1222 = vst.msk [vmem:[%s1735_s17 + $0x64] sm:$0xf] %vm1196_vm3, %v1432_v61  ;;  %v1064_v3 = vsel %vm999_vm1, %v966_v56, %v1032_v63 }
 0x114   : > { %1227 = vst.msk [vmem:[%s1735_s17 + $0x78] sm:$0xf] %vm1196_vm3, %v1437_v0  ;;  %v1435_v4 = vpack.c.bf16 %v1064_v3, %v1064_v3  ;;  %vm1002_vm2 = vcmp.gt.f32.partialorder %v969_v1, 0.0  ;;  %v1035_v5 = vmul.f32 %v1726_v41, %v969_v1  ;;  %v967_v6 = vadd.f32 %v1724_v38, %v920_v2 }
 0x116   : > { %1225 = vst.msk [vmem:[%s1735_s17 + $0x70] sm:$0xf] %vm1196_vm3, %v1435_v4  ;;  %v1067_v7 = vsel %vm1002_vm2, %v969_v1, %v1035_v5  ;;  %vm1000_vm4 = vcmp.gt.f32.partialorder %v967_v6, 0.0  ;;  %v1033_v8 = vmul.f32 %v1726_v41, %v967_v6 }
 0x117   : > { %v1438_v9 = vpack.c.bf16 %v1067_v7, %v1067_v7 }
 0x118   : > { %v1065_v10 = vsel %vm1000_vm4, %v967_v6, %v1033_v8 }
 0x119   : > { %1228 = vst.msk [vmem:[%s1735_s17 + $0x7c] sm:$0xf] %vm1196_vm3, %v1438_v9  ;;  %v1436_v11 = vpack.c.bf16 %v1065_v10, %v1065_v10 }
 0x11b   : > { %1226 = vst.msk [vmem:[%s1735_s17 + $0x74] sm:$0xf] %vm1196_vm3, %v1436_v11 }
 0x11c PF: > { %s17_s23 = sadd.s32 1, %s1589_s23  }
 0x11d   : > { %p14_p4 = scmp.ge.s32.totalorder %s17_s23, 4  }
 0x11f   :  { %16 = sbr.rel (!%p14_p4) target bundleno = 2 (0x2), region = 77 }

// kernel: _lambda_.10
= control target key start
LH: loop header
LB: loop body
LE: loop exit
PB: predicated region body
PF: predicated region fallthrough
CT: control target
= control target key end

     0   :  { %s1242_s17 = smov 0   ;;  %s1477_s0 = inlined_call_operand.vmem [shape: bf16[512,144], index: 0, kind: input, shape index: {}]   ;;  %s1478_s1 = inlined_call_operand.vmem [shape: bf16[144,4], index: 1, kind: input, shape index: {}]   ;;  %s1479_s2 = inlined_call_operand.vmem [shape: f32[1,4], index: 2, kind: input, shape index: {}]   ;;  %s1480_s3 = inlined_call_operand.<no memory space> [shape: f32[1], index: 3, kind: input, shape index: {}]   ;;  %s1481_s4 = inlined_call_operand.vmem [shape: bf16[512,4], index: 4, kind: output, shape index: {}]  }
   0x1   :  { %9 = sst [smem:[#allocation2]] %s1480_s3 }
   0x2 LB: > { %s986_s18 = sadd.s32 4294967295, %s1211_s17   ;;  %p990_p0 = scmp.ge.s32.totalorder %s1211_s17, 1  ;;  %s1211_s17 = sphi %s1242_s17, %s15_s17  }
   0x3   : > { %p165_p1 = scmp.lt.s32.totalorder %s1211_s17, 3 }
   0x5   : > { %p166_p2 = pnand %p990_p0, %p165_p1 }
   0x6   : > { %s991_s3 = sshll.u32 (!%p166_p2), %s986_s18, 5  ;;  %s671_s15 = sld [smem:[#allocation2]] (!%p166_p2) }
   0x7   : > { %169 = sbr.rel (%p166_p2) target bundleno = 310 (0x136), region = 36  ;;  %p193_p3 = scmp.lt.s32.totalorder (!%p166_p2), %s991_s3, 63 }
   0xc   : > { %v1148_v0 = vld [vmem:[%s1478_s1 + $0x38] sm:$0xff]   ;;  %v1213_v1 = vmov 0   ;;  %v1149_v2 = vld [vmem:[%s1478_s1 + $0x30] sm:$0xff]   ;;  %s1483_s3 = smov (!%p193_p3, %s991_s3), 63  ;;  %v1150_v3 = vld [vmem:[%s1478_s1 + $0x28] sm:$0xff]   ;;  %vm461_vm0 = vcmask 130048   ;;  %v1338_v44 = vstv %s671_s15 }
   0xd   : > { %510 = vmatprep.subr.bf16.mxu0 %v1213_v1  ;;  %1121 = vmatprep.subr.bf16.mxu1 %v1213_v1  ;;  %s1088_s25 = sshll.u32 %s1483_s3, 3  ;;  %v1151_v4 = vld [vmem:[%s1478_s1 + $0x20] sm:$0xff]   ;;  %v1152_v7 = vld [vmem:[%s1478_s1 + $0x18] sm:$0xff]   ;;  %v1153_v8 = vld [vmem:[%s1478_s1 + $0x10] sm:$0xff]   ;;  %s995_s19 = sshll.u32 %s1483_s3, 2  ;;  %vm897_vm3 = vcmask 27648  }
   0xe   : > { %511 = vmatpush1.bf16.msra.mxu0 %v1148_v0  ;;  %1130 = vmatpush1.bf16.msra.mxu1 %v1148_v0  ;;  %s1265_s28 = scalar_lea.vmem %s1477_s0, %s1088_s25  ;;  %v1154_v9 = vld [vmem:[%s1478_s1 + $0x8] sm:$0xff]   ;;  %v1155_v10 = vld [vmem:[%s1478_s1] sm:$0xff]   ;;  %s1348_s22 = scalar_lea.vmem %s1481_s4, %s995_s19 }
   0xf   : > { %512 = vmatprep.subr.bf16.mxu0 %v1213_v1  ;;  %1122 = vmatprep.subr.bf16.mxu1 %v1213_v1  ;;  %v1159_v5 = vld [vmem:[%s1265_s28 + $0x4] ss:$8 sps:$4 sm:$0xff]   ;;  %v1157_v12 = vld [vmem:[%s1265_s28] ss:$8 sps:$4 sm:$0xff]   ;;  %v1163_v14 = vld [vmem:[%s1265_s28 + $0x14] ss:$8 sps:$4 sm:$0xff]  }
  0x10   : > { %v1162_v6 = vld [vmem:[%s1265_s28 + $0x84] ss:$8 sps:$4 sm:$0xff]   ;;  %1038 = vmatprep.mubr.msk.bf16.mxu0 %vm461_vm0, %v1159_v5  ;;  %v1160_v13 = vld [vmem:[%s1265_s28 + $0x80] ss:$8 sps:$4 sm:$0xff]   ;;  %v1165_v15 = vld [vmem:[%s1265_s28 + $0x94] ss:$8 sps:$4 sm:$0xff]  }
  0x11   : > { %1046 = vmatprep.mubr.msk.bf16.mxu1 %vm461_vm0, %v1162_v6  ;;  %v1156_v11 = vld [vmem:[%s1478_s1 + $0x40] sm:$0xff]   ;;  %v1167_v16 = vld [vmem:[%s1265_s28 + $0x10] ss:$8 sps:$4 sm:$0xff]   ;;  %v1175_v22 = vld [vmem:[%s1265_s28 + $0x34] ss:$8 sps:$4 sm:$0xff]  }
  0x12   : > { %513 = vmatpush1.bf16.msra.mxu0 %v1149_v2  ;;  %1131 = vmatpush1.bf16.msra.mxu1 %v1149_v2  ;;  %v1168_v17 = vld [vmem:[%s1265_s28 + $0x90] ss:$8 sps:$4 sm:$0xff]   ;;  %v1169_v18 = vld [vmem:[%s1265_s28 + $0x24] ss:$8 sps:$4 sm:$0xff]   ;;  %v1173_v20 = vld [vmem:[%s1265_s28 + $0x20] ss:$8 sps:$4 sm:$0xff]  }
  0x13   : > { %514 = vmatprep.subr.bf16.mxu0 %v1213_v1  ;;  %1123 = vmatprep.subr.bf16.mxu1 %v1213_v1  ;;  %v1171_v19 = vld [vmem:[%s1265_s28 + $0xa4] ss:$8 sps:$4 sm:$0xff]   ;;  %v1174_v21 = vld [vmem:[%s1265_s28 + $0xa0] ss:$8 sps:$4 sm:$0xff]   ;;  %v1177_v23 = vld [vmem:[%s1265_s28 + $0xb4] ss:$8 sps:$4 sm:$0xff]  }
  0x14   : > { %v1179_v24 = vld [vmem:[%s1265_s28 + $0x30] ss:$8 sps:$4 sm:$0xff]   ;;  %v1181_v26 = vld [vmem:[%s1265_s28 + $0x44] ss:$8 sps:$4 sm:$0xff]   ;;  %v1185_v28 = vld [vmem:[%s1265_s28 + $0x40] ss:$8 sps:$4 sm:$0xff]  }
  0x15   : > { %v1180_v25 = vld [vmem:[%s1265_s28 + $0xb0] ss:$8 sps:$4 sm:$0xff]   ;;  %v1183_v27 = vld [vmem:[%s1265_s28 + $0xc4] ss:$8 sps:$4 sm:$0xff]   ;;  %v1186_v29 = vld [vmem:[%s1265_s28 + $0xc0] ss:$8 sps:$4 sm:$0xff]  }
  0x16   : > { %515 = vmatpush1.bf16.msra.mxu0 %v1150_v3  ;;  %1132 = vmatpush1.bf16.msra.mxu1 %v1150_v3  ;;  %v1187_v30 = vld [vmem:[%s1265_s28 + $0x54] ss:$8 sps:$4 sm:$0xff]   ;;  %v1191_v32 = vld [vmem:[%s1265_s28 + $0x50] ss:$8 sps:$4 sm:$0xff]   ;;  %v1193_v34 = vld [vmem:[%s1265_s28 + $0x64] ss:$8 sps:$4 sm:$0xff]  }
  0x17   : > { %516 = vmatprep.subr.bf16.mxu0 %v1213_v1  ;;  %1124 = vmatprep.subr.bf16.mxu1 %v1213_v1  ;;  %v1189_v31 = vld [vmem:[%s1265_s28 + $0xd4] ss:$8 sps:$4 sm:$0xff]   ;;  %v1192_v33 = vld [vmem:[%s1265_s28 + $0xd0] ss:$8 sps:$4 sm:$0xff]   ;;  %v1195_v35 = vld [vmem:[%s1265_s28 + $0xe4] ss:$8 sps:$4 sm:$0xff]  }
  0x18   : > { %v1197_v36 = vld [vmem:[%s1265_s28 + $0x60] ss:$8 sps:$4 sm:$0xff]   ;;  %v1199_v38 = vld [vmem:[%s1265_s28 + $0x74] ss:$8 sps:$4 sm:$0xff]   ;;  %v1203_v40 = vld [vmem:[%s1265_s28 + $0x70] ss:$8 sps:$4 sm:$0xff]  }
  0x19   : > { %v1198_v37 = vld [vmem:[%s1265_s28 + $0xe0] ss:$8 sps:$4 sm:$0xff]   ;;  %v1201_v39 = vld [vmem:[%s1265_s28 + $0xf4] ss:$8 sps:$4 sm:$0xff]   ;;  %v1204_v41 = vld [vmem:[%s1265_s28 + $0xf0] ss:$8 sps:$4 sm:$0xff]  }
  0x1a   : > { %517 = vmatpush1.bf16.msra.mxu0 %v1151_v4  ;;  %1133 = vmatpush1.bf16.msra.mxu1 %v1151_v4  ;;  %v1336_v42 = vld [vmem:[%s1479_s2] ss:$0 sm:$0xff] }
  0x1b   : > { %518 = vmatprep.subr.bf16.mxu0 %v1213_v1  ;;  %1125 = vmatprep.subr.bf16.mxu1 %v1213_v1 }
  0x1e   : > { %519 = vmatpush1.bf16.msra.mxu0 %v1152_v7  ;;  %1134 = vmatpush1.bf16.msra.mxu1 %v1152_v7 }
  0x1f   : > { %520 = vmatprep.subr.bf16.mxu0 %v1213_v1  ;;  %1126 = vmatprep.subr.bf16.mxu1 %v1213_v1 }
  0x22   : > { %521 = vmatpush1.bf16.msra.mxu0 %v1153_v8  ;;  %1135 = vmatpush1.bf16.msra.mxu1 %v1153_v8 }
  0x23   : > { %522 = vmatprep.subr.bf16.mxu0 %v1213_v1  ;;  %1127 = vmatprep.subr.bf16.mxu1 %v1213_v1 }
  0x26   : > { %523 = vmatpush1.bf16.msra.mxu0 %v1154_v9  ;;  %1136 = vmatpush1.bf16.msra.mxu1 %v1154_v9 }
  0x27   : > { %524 = vmatprep.subr.bf16.mxu0 %v1213_v1  ;;  %1128 = vmatprep.subr.bf16.mxu1 %v1213_v1 }
  0x2a   : > { %525 = vmatpush1.bf16.msra.mxu0 %v1155_v10  ;;  %1137 = vmatpush1.bf16.msra.mxu1 %v1155_v10 }
  0x2b   : > { %540 = vmatprep.subr.bf16.mxu0 %v1213_v1  ;;  %1129 = vmatprep.subr.bf16.mxu1 %v1213_v1 }
  0x2e   : > { %541 = vmatpush2.bf16.msra.mxu0 %v1156_v11  ;;  %1138 = vmatpush2.bf16.msra.mxu1 %v1156_v11 }
  0x31   : > { %543 = vmatmul.mubr.bf16.vlgmr.msra.gmra.mxu0 %v1157_v12  ;;  %607 = vmatmul.mubr.bf16.vlgmr.msra.gmra.mxu1 %v1160_v13 }
  0x32   : > { %1039 = vmatprep.mubr.msk.bf16.mxu0 %vm461_vm0, %v1163_v14  ;;  %1047 = vmatprep.mubr.msk.bf16.mxu1 %vm461_vm0, %v1165_v15 }
  0x39   : > { %551 = vmatmul.mubr.bf16.gmra.mxu0 %v1167_v16  ;;  %615 = vmatmul.mubr.bf16.gmra.mxu1 %v1168_v17 }
  0x3a   : > { %1040 = vmatprep.mubr.msk.bf16.mxu0 %vm461_vm0, %v1169_v18  ;;  %1048 = vmatprep.mubr.msk.bf16.mxu1 %vm461_vm0, %v1171_v19 }
  0x41   : > { %559 = vmatmul.mubr.bf16.gmra.mxu0 %v1173_v20  ;;  %623 = vmatmul.mubr.bf16.gmra.mxu1 %v1174_v21 }
  0x42   : > { %1041 = vmatprep.mubr.msk.bf16.mxu0 %vm461_vm0, %v1175_v22  ;;  %1049 = vmatprep.mubr.msk.bf16.mxu1 %vm461_vm0, %v1177_v23 }
  0x49   : > { %567 = vmatmul.mubr.bf16.gmra.mxu0 %v1179_v24  ;;  %631 = vmatmul.mubr.bf16.gmra.mxu1 %v1180_v25 }
  0x4a   : > { %1042 = vmatprep.mubr.msk.bf16.mxu0 %vm461_vm0, %v1181_v26  ;;  %1050 = vmatprep.mubr.msk.bf16.mxu1 %vm461_vm0, %v1183_v27 }
  0x51   : > { %575 = vmatmul.mubr.bf16.gmra.mxu0 %v1185_v28  ;;  %639 = vmatmul.mubr.bf16.gmra.mxu1 %v1186_v29 }
  0x52   : > { %1043 = vmatprep.mubr.msk.bf16.mxu0 %vm461_vm0, %v1187_v30  ;;  %1051 = vmatprep.mubr.msk.bf16.mxu1 %vm461_vm0, %v1189_v31 }
  0x59   : > { %583 = vmatmul.mubr.bf16.gmra.mxu0 %v1191_v32  ;;  %647 = vmatmul.mubr.bf16.gmra.mxu1 %v1192_v33 }
  0x5a   : > { %1044 = vmatprep.mubr.msk.bf16.mxu0 %vm461_vm0, %v1193_v34  ;;  %1052 = vmatprep.mubr.msk.bf16.mxu1 %vm461_vm0, %v1195_v35 }
  0x61   : > { %591 = vmatmul.mubr.bf16.gmra.mxu0 %v1197_v36  ;;  %655 = vmatmul.mubr.bf16.gmra.mxu1 %v1198_v37 }
  0x62   : > { %1045 = vmatprep.mubr.msk.bf16.mxu0 %vm461_vm0, %v1199_v38  ;;  %1053 = vmatprep.mubr.msk.bf16.mxu1 %vm461_vm0, %v1201_v39 }
  0x69   : > { %599 = vmatmul.mubr.bf16.gmra.mxu0 %v1203_v40  ;;  %663 = vmatmul.mubr.bf16.gmra.mxu1 %v1204_v41 }
  0xf1   : > { %v544_v43 = vpop.f32.mrf.mxu0  ;;  %v608_v45 = vpop.f32.mrf.mxu1 }
  0xf2   : > { %v545_v46 = vadd.f32 %v1336_v42, %v544_v43  ;;  %v609_v47 = vadd.f32 %v1336_v42, %v608_v45 }
  0xf3   : > { %v546_v48 = vpop.f32.mrf.mxu0  ;;  %v610_v49 = vpop.f32.mrf.mxu1 }
  0xf4   : > { %vm672_vm1 = vcmp.gt.f32.partialorder %v545_v46, 0.0  ;;  %v705_v50 = vmul.f32 %v1338_v44, %v545_v46  ;;  %vm688_vm2 = vcmp.gt.f32.partialorder %v609_v47, 0.0  ;;  %v721_v51 = vmul.f32 %v1338_v44, %v609_v47 }
  0xf5   : > { %v547_v52 = vpop.f32.mrf.mxu0  ;;  %v611_v53 = vpop.f32.mrf.mxu1 }
  0xf6   : > { %v737_v54 = vsel %vm672_vm1, %v545_v46, %v705_v50  ;;  %v753_v55 = vsel %vm688_vm2, %v609_v47, %v721_v51  ;;  %v548_v56 = vadd.f32 %v1336_v42, %v547_v52  ;;  %v612_v57 = vadd.f32 %v1336_v42, %v611_v53 }
  0xf7   : > { %v1089_v58 = vpack.c.bf16 %v737_v54, %v737_v54  ;;  %v1105_v59 = vpack.c.bf16 %v753_v55, %v753_v55  ;;  %v549_v60 = vpop.f32.mrf.mxu0  ;;  %v613_v61 = vpop.f32.mrf.mxu1 }
  0xf8   : > { %vm673_vm4 = vcmp.gt.f32.partialorder %v548_v56, 0.0  ;;  %v706_v62 = vmul.f32 %v1338_v44, %v548_v56  ;;  %vm689_vm5 = vcmp.gt.f32.partialorder %v612_v57, 0.0  ;;  %v722_v63 = vmul.f32 %v1338_v44, %v612_v57 }
  0xf9   : > { %898 = vst.msk [vmem:[%s1348_s22] sm:$0xf] %vm897_vm3, %v1089_v58  ;;  %914 = vst.msk [vmem:[%s1348_s22 + $0x40] sm:$0xf] %vm897_vm3, %v1105_v59  ;;  %v552_v0 = vpop.f32.mrf.mxu0  ;;  %v616_v1 = vpop.f32.mrf.mxu1 }
  0xfa   : > { %v738_v2 = vsel %vm673_vm4, %v548_v56, %v706_v62  ;;  %v754_v3 = vsel %vm689_vm5, %v612_v57, %v722_v63  ;;  %v553_v4 = vadd.f32 %v1336_v42, %v552_v0  ;;  %v617_v5 = vadd.f32 %v1336_v42, %v616_v1 }
  0xfb   : > { %v1090_v6 = vpack.c.bf16 %v738_v2, %v738_v2  ;;  %v1106_v7 = vpack.c.bf16 %v754_v3, %v754_v3  ;;  %v554_v8 = vpop.f32.mrf.mxu0  ;;  %v618_v9 = vpop.f32.mrf.mxu1 }
  0xfc   : > { %vm674_vm6 = vcmp.gt.f32.partialorder %v553_v4, 0.0  ;;  %v707_v10 = vmul.f32 %v1338_v44, %v553_v4  ;;  %vm690_vm7 = vcmp.gt.f32.partialorder %v617_v5, 0.0  ;;  %v723_v11 = vmul.f32 %v1338_v44, %v617_v5 }
  0xfd   : > { %899 = vst.msk [vmem:[%s1348_s22 + $0x4] sm:$0xf] %vm897_vm3, %v1090_v6  ;;  %915 = vst.msk [vmem:[%s1348_s22 + $0x44] sm:$0xf] %vm897_vm3, %v1106_v7  ;;  %v555_v12 = vpop.f32.mrf.mxu0  ;;  %v619_v13 = vpop.f32.mrf.mxu1 }
  0xfe   : > { %v739_v14 = vsel %vm674_vm6, %v553_v4, %v707_v10  ;;  %v755_v15 = vsel %vm690_vm7, %v617_v5, %v723_v11  ;;  %v556_v16 = vadd.f32 %v1336_v42, %v555_v12  ;;  %v620_v17 = vadd.f32 %v1336_v42, %v619_v13 }
  0xff   : > { %v1091_v18 = vpack.c.bf16 %v739_v14, %v739_v14  ;;  %v1107_v19 = vpack.c.bf16 %v755_v15, %v755_v15  ;;  %v557_v20 = vpop.f32.mrf.mxu0  ;;  %v621_v21 = vpop.f32.mrf.mxu1 }
 0x100   : > { %vm675_vm8 = vcmp.gt.f32.partialorder %v556_v16, 0.0  ;;  %v708_v22 = vmul.f32 %v1338_v44, %v556_v16  ;;  %vm691_vm9 = vcmp.gt.f32.partialorder %v620_v17, 0.0  ;;  %v724_v23 = vmul.f32 %v1338_v44, %v620_v17 }
 0x101   : > { %900 = vst.msk [vmem:[%s1348_s22 + $0x8] sm:$0xf] %vm897_vm3, %v1091_v18  ;;  %916 = vst.msk [vmem:[%s1348_s22 + $0x48] sm:$0xf] %vm897_vm3, %v1107_v19  ;;  %v560_v24 = vpop.f32.mrf.mxu0  ;;  %v624_v25 = vpop.f32.mrf.mxu1 }
 0x102   : > { %v740_v26 = vsel %vm675_vm8, %v556_v16, %v708_v22  ;;  %v756_v27 = vsel %vm691_vm9, %v620_v17, %v724_v23  ;;  %v561_v28 = vadd.f32 %v1336_v42, %v560_v24  ;;  %v625_v29 = vadd.f32 %v1336_v42, %v624_v25 }
 0x103   : > { %v1092_v30 = vpack.c.bf16 %v740_v26, %v740_v26  ;;  %v1108_v31 = vpack.c.bf16 %v756_v27, %v756_v27  ;;  %v562_v32 = vpop.f32.mrf.mxu0  ;;  %v626_v33 = vpop.f32.mrf.mxu1 }
 0x104   : > { %vm676_vm10 = vcmp.gt.f32.partialorder %v561_v28, 0.0  ;;  %v709_v34 = vmul.f32 %v1338_v44, %v561_v28  ;;  %vm692_vm11 = vcmp.gt.f32.partialorder %v625_v29, 0.0  ;;  %v725_v35 = vmul.f32 %v1338_v44, %v625_v29 }
 0x105   : > { %901 = vst.msk [vmem:[%s1348_s22 + $0xc] sm:$0xf] %vm897_vm3, %v1092_v30  ;;  %917 = vst.msk [vmem:[%s1348_s22 + $0x4c] sm:$0xf] %vm897_vm3, %v1108_v31  ;;  %v563_v36 = vpop.f32.mrf.mxu0  ;;  %v627_v37 = vpop.f32.mrf.mxu1 }
 0x106   : > { %v741_v38 = vsel %vm676_vm10, %v561_v28, %v709_v34  ;;  %v757_v39 = vsel %vm692_vm11, %v625_v29, %v725_v35  ;;  %v564_v40 = vadd.f32 %v1336_v42, %v563_v36  ;;  %v628_v41 = vadd.f32 %v1336_v42, %v627_v37 }
 0x107   : > { %v1093_v43 = vpack.c.bf16 %v741_v38, %v741_v38  ;;  %v1109_v45 = vpack.c.bf16 %v757_v39, %v757_v39  ;;  %v565_v46 = vpop.f32.mrf.mxu0  ;;  %v629_v47 = vpop.f32.mrf.mxu1 }
 0x108   : > { %vm677_vm12 = vcmp.gt.f32.partialorder %v564_v40, 0.0  ;;  %v710_v48 = vmul.f32 %v1338_v44, %v564_v40  ;;  %vm693_vm13 = vcmp.gt.f32.partialorder %v628_v41, 0.0  ;;  %v726_v49 = vmul.f32 %v1338_v44, %v628_v41 }
 0x109   : > { %902 = vst.msk [vmem:[%s1348_s22 + $0x10] sm:$0xf] %vm897_vm3, %v1093_v43  ;;  %918 = vst.msk [vmem:[%s1348_s22 + $0x50] sm:$0xf] %vm897_vm3, %v1109_v45  ;;  %v568_v50 = vpop.f32.mrf.mxu0  ;;  %v632_v51 = vpop.f32.mrf.mxu1 }
 0x10a   : > { %v742_v52 = vsel %vm677_vm12, %v564_v40, %v710_v48  ;;  %v758_v53 = vsel %vm693_vm13, %v628_v41, %v726_v49  ;;  %v569_v54 = vadd.f32 %v1336_v42, %v568_v50  ;;  %v633_v55 = vadd.f32 %v1336_v42, %v632_v51 }
 0x10b   : > { %v1094_v56 = vpack.c.bf16 %v742_v52, %v742_v52  ;;  %v1110_v57 = vpack.c.bf16 %v758_v53, %v758_v53  ;;  %v570_v58 = vpop.f32.mrf.mxu0  ;;  %v634_v59 = vpop.f32.mrf.mxu1 }
 0x10c   : > { %vm678_vm14 = vcmp.gt.f32.partialorder %v569_v54, 0.0  ;;  %v711_v60 = vmul.f32 %v1338_v44, %v569_v54  ;;  %vm694_vm15 = vcmp.gt.f32.partialorder %v633_v55, 0.0  ;;  %v727_v61 = vmul.f32 %v1338_v44, %v633_v55 }
 0x10d   : > { %903 = vst.msk [vmem:[%s1348_s22 + $0x14] sm:$0xf] %vm897_vm3, %v1094_v56  ;;  %919 = vst.msk [vmem:[%s1348_s22 + $0x54] sm:$0xf] %vm897_vm3, %v1110_v57  ;;  %v571_v62 = vpop.f32.mrf.mxu0  ;;  %v635_v63 = vpop.f32.mrf.mxu1 }
 0x10e   : > { %v743_v0 = vsel %vm678_vm14, %v569_v54, %v711_v60  ;;  %v759_v1 = vsel %vm694_vm15, %v633_v55, %v727_v61  ;;  %v572_v2 = vadd.f32 %v1336_v42, %v571_v62  ;;  %v636_v3 = vadd.f32 %v1336_v42, %v635_v63 }
 0x10f   : > { %v1095_v4 = vpack.c.bf16 %v743_v0, %v743_v0  ;;  %v1111_v5 = vpack.c.bf16 %v759_v1, %v759_v1  ;;  %v573_v6 = vpop.f32.mrf.mxu0  ;;  %v637_v7 = vpop.f32.mrf.mxu1 }
 0x110   : > { %vm679_vm0 = vcmp.gt.f32.partialorder %v572_v2, 0.0  ;;  %v712_v8 = vmul.f32 %v1338_v44, %v572_v2  ;;  %vm695_vm1 = vcmp.gt.f32.partialorder %v636_v3, 0.0  ;;  %v728_v9 = vmul.f32 %v1338_v44, %v636_v3 }
 0x111   : > { %904 = vst.msk [vmem:[%s1348_s22 + $0x18] sm:$0xf] %vm897_vm3, %v1095_v4  ;;  %920 = vst.msk [vmem:[%s1348_s22 + $0x58] sm:$0xf] %vm897_vm3, %v1111_v5  ;;  %v576_v10 = vpop.f32.mrf.mxu0  ;;  %v640_v11 = vpop.f32.mrf.mxu1 }
 0x112   : > { %v744_v12 = vsel %vm679_vm0, %v572_v2, %v712_v8  ;;  %v760_v13 = vsel %vm695_vm1, %v636_v3, %v728_v9  ;;  %v577_v14 = vadd.f32 %v1336_v42, %v576_v10  ;;  %v641_v15 = vadd.f32 %v1336_v42, %v640_v11 }
 0x113   : > { %v1096_v16 = vpack.c.bf16 %v744_v12, %v744_v12  ;;  %v1112_v17 = vpack.c.bf16 %v760_v13, %v760_v13  ;;  %v578_v18 = vpop.f32.mrf.mxu0  ;;  %v642_v19 = vpop.f32.mrf.mxu1 }
 0x114   : > { %vm680_vm2 = vcmp.gt.f32.partialorder %v577_v14, 0.0  ;;  %v713_v20 = vmul.f32 %v1338_v44, %v577_v14  ;;  %vm696_vm4 = vcmp.gt.f32.partialorder %v641_v15, 0.0  ;;  %v729_v21 = vmul.f32 %v1338_v44, %v641_v15 }
 0x115   : > { %905 = vst.msk [vmem:[%s1348_s22 + $0x1c] sm:$0xf] %vm897_vm3, %v1096_v16  ;;  %921 = vst.msk [vmem:[%s1348_s22 + $0x5c] sm:$0xf] %vm897_vm3, %v1112_v17  ;;  %v579_v22 = vpop.f32.mrf.mxu0  ;;  %v643_v23 = vpop.f32.mrf.mxu1 }
 0x116   : > { %v745_v24 = vsel %vm680_vm2, %v577_v14, %v713_v20  ;;  %v761_v25 = vsel %vm696_vm4, %v641_v15, %v729_v21  ;;  %v580_v26 = vadd.f32 %v1336_v42, %v579_v22  ;;  %v644_v27 = vadd.f32 %v1336_v42, %v643_v23 }
 0x117   : > { %v1097_v28 = vpack.c.bf16 %v745_v24, %v745_v24  ;;  %v1113_v29 = vpack.c.bf16 %v761_v25, %v761_v25  ;;  %v581_v30 = vpop.f32.mrf.mxu0  ;;  %v645_v31 = vpop.f32.mrf.mxu1 }
 0x118   : > { %vm681_vm5 = vcmp.gt.f32.partialorder %v580_v26, 0.0  ;;  %v714_v32 = vmul.f32 %v1338_v44, %v580_v26  ;;  %vm697_vm6 = vcmp.gt.f32.partialorder %v644_v27, 0.0  ;;  %v730_v33 = vmul.f32 %v1338_v44, %v644_v27 }
 0x119   : > { %906 = vst.msk [vmem:[%s1348_s22 + $0x20] sm:$0xf] %vm897_vm3, %v1097_v28  ;;  %922 = vst.msk [vmem:[%s1348_s22 + $0x60] sm:$0xf] %vm897_vm3, %v1113_v29  ;;  %v584_v34 = vpop.f32.mrf.mxu0  ;;  %v648_v35 = vpop.f32.mrf.mxu1 }
 0x11a   : > { %v746_v36 = vsel %vm681_vm5, %v580_v26, %v714_v32  ;;  %v762_v37 = vsel %vm697_vm6, %v644_v27, %v730_v33  ;;  %v585_v38 = vadd.f32 %v1336_v42, %v584_v34  ;;  %v649_v39 = vadd.f32 %v1336_v42, %v648_v35 }
 0x11b   : > { %v1098_v40 = vpack.c.bf16 %v746_v36, %v746_v36  ;;  %v1114_v41 = vpack.c.bf16 %v762_v37, %v762_v37  ;;  %v586_v43 = vpop.f32.mrf.mxu0  ;;  %v650_v45 = vpop.f32.mrf.mxu1 }
 0x11c   : > { %vm682_vm7 = vcmp.gt.f32.partialorder %v585_v38, 0.0  ;;  %v715_v46 = vmul.f32 %v1338_v44, %v585_v38  ;;  %vm698_vm8 = vcmp.gt.f32.partialorder %v649_v39, 0.0  ;;  %v731_v47 = vmul.f32 %v1338_v44, %v649_v39 }
 0x11d   : > { %907 = vst.msk [vmem:[%s1348_s22 + $0x24] sm:$0xf] %vm897_vm3, %v1098_v40  ;;  %923 = vst.msk [vmem:[%s1348_s22 + $0x64] sm:$0xf] %vm897_vm3, %v1114_v41  ;;  %v587_v48 = vpop.f32.mrf.mxu0  ;;  %v651_v49 = vpop.f32.mrf.mxu1 }
 0x11e   : > { %v747_v50 = vsel %vm682_vm7, %v585_v38, %v715_v46  ;;  %v763_v51 = vsel %vm698_vm8, %v649_v39, %v731_v47  ;;  %v588_v52 = vadd.f32 %v1336_v42, %v587_v48  ;;  %v652_v53 = vadd.f32 %v1336_v42, %v651_v49 }
 0x11f   : > { %v1099_v54 = vpack.c.bf16 %v747_v50, %v747_v50  ;;  %v1115_v55 = vpack.c.bf16 %v763_v51, %v763_v51  ;;  %v589_v56 = vpop.f32.mrf.mxu0  ;;  %v653_v57 = vpop.f32.mrf.mxu1 }
 0x120   : > { %vm683_vm9 = vcmp.gt.f32.partialorder %v588_v52, 0.0  ;;  %v716_v58 = vmul.f32 %v1338_v44, %v588_v52  ;;  %vm699_vm10 = vcmp.gt.f32.partialorder %v652_v53, 0.0  ;;  %v732_v59 = vmul.f32 %v1338_v44, %v652_v53 }
 0x121   : > { %908 = vst.msk [vmem:[%s1348_s22 + $0x28] sm:$0xf] %vm897_vm3, %v1099_v54  ;;  %924 = vst.msk [vmem:[%s1348_s22 + $0x68] sm:$0xf] %vm897_vm3, %v1115_v55  ;;  %v592_v60 = vpop.f32.mrf.mxu0  ;;  %v656_v61 = vpop.f32.mrf.mxu1 }
 0x122   : > { %v748_v62 = vsel %vm683_vm9, %v588_v52, %v716_v58  ;;  %v764_v63 = vsel %vm699_vm10, %v652_v53, %v732_v59  ;;  %v593_v0 = vadd.f32 %v1336_v42, %v592_v60  ;;  %v657_v1 = vadd.f32 %v1336_v42, %v656_v61 }
 0x123   : > { %v1100_v2 = vpack.c.bf16 %v748_v62, %v748_v62  ;;  %v1116_v3 = vpack.c.bf16 %v764_v63, %v764_v63  ;;  %v594_v4 = vpop.f32.mrf.mxu0  ;;  %v658_v5 = vpop.f32.mrf.mxu1 }
 0x124   : > { %vm684_vm11 = vcmp.gt.f32.partialorder %v593_v0, 0.0  ;;  %v717_v6 = vmul.f32 %v1338_v44, %v593_v0  ;;  %vm700_vm12 = vcmp.gt.f32.partialorder %v657_v1, 0.0  ;;  %v733_v7 = vmul.f32 %v1338_v44, %v657_v1 }
 0x125   : > { %909 = vst.msk [vmem:[%s1348_s22 + $0x2c] sm:$0xf] %vm897_vm3, %v1100_v2  ;;  %925 = vst.msk [vmem:[%s1348_s22 + $0x6c] sm:$0xf] %vm897_vm3, %v1116_v3  ;;  %v595_v8 = vpop.f32.mrf.mxu0  ;;  %v659_v9 = vpop.f32.mrf.mxu1 }
 0x126   : > { %v749_v10 = vsel %vm684_vm11, %v593_v0, %v717_v6  ;;  %v765_v11 = vsel %vm700_vm12, %v657_v1, %v733_v7  ;;  %v596_v12 = vadd.f32 %v1336_v42, %v595_v8  ;;  %v660_v13 = vadd.f32 %v1336_v42, %v659_v9 }
 0x127   : > { %v1101_v14 = vpack.c.bf16 %v749_v10, %v749_v10  ;;  %v1117_v15 = vpack.c.bf16 %v765_v11, %v765_v11  ;;  %v597_v16 = vpop.f32.mrf.mxu0  ;;  %v661_v17 = vpop.f32.mrf.mxu1 }
 0x128   : > { %vm685_vm13 = vcmp.gt.f32.partialorder %v596_v12, 0.0  ;;  %v718_v18 = vmul.f32 %v1338_v44, %v596_v12  ;;  %vm701_vm14 = vcmp.gt.f32.partialorder %v660_v13, 0.0  ;;  %v734_v19 = vmul.f32 %v1338_v44, %v660_v13 }
 0x129   : > { %910 = vst.msk [vmem:[%s1348_s22 + $0x30] sm:$0xf] %vm897_vm3, %v1101_v14  ;;  %926 = vst.msk [vmem:[%s1348_s22 + $0x70] sm:$0xf] %vm897_vm3, %v1117_v15  ;;  %v600_v20 = vpop.f32.mrf.mxu0  ;;  %v664_v21 = vpop.f32.mrf.mxu1 }
 0x12a   : > { %v750_v22 = vsel %vm685_vm13, %v596_v12, %v718_v18  ;;  %v766_v23 = vsel %vm701_vm14, %v660_v13, %v734_v19  ;;  %v601_v24 = vadd.f32 %v1336_v42, %v600_v20  ;;  %v665_v25 = vadd.f32 %v1336_v42, %v664_v21 }
 0x12b   : > { %v1102_v26 = vpack.c.bf16 %v750_v22, %v750_v22  ;;  %v1118_v27 = vpack.c.bf16 %v766_v23, %v766_v23  ;;  %v602_v28 = vpop.f32.mrf.mxu0  ;;  %v666_v29 = vpop.f32.mrf.mxu1 }
 0x12c   : > { %vm686_vm15 = vcmp.gt.f32.partialorder %v601_v24, 0.0  ;;  %v719_v30 = vmul.f32 %v1338_v44, %v601_v24  ;;  %vm702_vm0 = vcmp.gt.f32.partialorder %v665_v25, 0.0  ;;  %v735_v31 = vmul.f32 %v1338_v44, %v665_v25 }
 0x12d   : > { %911 = vst.msk [vmem:[%s1348_s22 + $0x34] sm:$0xf] %vm897_vm3, %v1102_v26  ;;  %927 = vst.msk [vmem:[%s1348_s22 + $0x74] sm:$0xf] %vm897_vm3, %v1118_v27  ;;  %v603_v32 = vpop.f32.mrf.mxu0  ;;  %v667_v33 = vpop.f32.mrf.mxu1 }
 0x12e   : > { %v751_v34 = vsel %vm686_vm15, %v601_v24, %v719_v30  ;;  %v767_v35 = vsel %vm702_vm0, %v665_v25, %v735_v31  ;;  %v604_v36 = vadd.f32 %v1336_v42, %v603_v32  ;;  %v668_v37 = vadd.f32 %v1336_v42, %v667_v33 }
 0x12f   : > { %v1103_v38 = vpack.c.bf16 %v751_v34, %v751_v34  ;;  %v1119_v39 = vpack.c.bf16 %v767_v35, %v767_v35  ;;  %v605_v40 = vpop.f32.mrf.mxu0  ;;  %v669_v41 = vpop.f32.mrf.mxu1 }
 0x130   : > { %vm687_vm1 = vcmp.gt.f32.partialorder %v604_v36, 0.0  ;;  %v720_v43 = vmul.f32 %v1338_v44, %v604_v36  ;;  %vm703_vm2 = vcmp.gt.f32.partialorder %v668_v37, 0.0  ;;  %v736_v45 = vmul.f32 %v1338_v44, %v668_v37 }
 0x131   : > { %912 = vst.msk [vmem:[%s1348_s22 + $0x38] sm:$0xf] %vm897_vm3, %v1103_v38  ;;  %928 = vst.msk [vmem:[%s1348_s22 + $0x78] sm:$0xf] %vm897_vm3, %v1119_v39 }
 0x132   : > { %v752_v46 = vsel %vm687_vm1, %v604_v36, %v720_v43  ;;  %v768_v47 = vsel %vm703_vm2, %v668_v37, %v736_v45 }
 0x133   : > { %v1104_v48 = vpack.c.bf16 %v752_v46, %v752_v46  ;;  %v1120_v49 = vpack.c.bf16 %v768_v47, %v768_v47 }
 0x135   : > { %913 = vst.msk [vmem:[%s1348_s22 + $0x3c] sm:$0xf] %vm897_vm3, %v1104_v48  ;;  %929 = vst.msk [vmem:[%s1348_s22 + $0x7c] sm:$0xf] %vm897_vm3, %v1120_v49 }
 0x136 PF: > { %s15_s17 = sadd.s32 1, %s1211_s17  }
 0x137   : > { %p12_p4 = scmp.ge.s32.totalorder %s15_s17, 4  }
 0x139   :  { %14 = sbr.rel (!%p12_p4) target bundleno = 2 (0x2), region = 66 }

// kernel: _lambda_.13
= control target key start
LH: loop header
LB: loop body
LE: loop exit
PB: predicated region body
PF: predicated region fallthrough
CT: control target
= control target key end

     0   :  { %s4991_s23 = smov 0   ;;  %s5813_s0 = inlined_call_operand.vmem [shape: bf16[2048,4], index: 0, kind: input, shape index: {}]   ;;  %s5814_s1 = inlined_call_operand.vmem [shape: bf16[2048,4], index: 1, kind: input, shape index: {}]   ;;  %s5815_s2 = inlined_call_operand.vmem [shape: bf16[4,4], index: 2, kind: input, shape index: {}]   ;;  %s5816_s3 = inlined_call_operand.vmem [shape: bf16[4,4], index: 3, kind: input, shape index: {}]   ;;  %s5817_s4 = inlined_call_operand.vmem [shape: f32[1,4], index: 4, kind: input, shape index: {}]   ;;  %s5818_s5 = inlined_call_operand.<no memory space> [shape: f32[1], index: 5, kind: input, shape index: {}]   ;;  %s5819_s6 = inlined_call_operand.vmem [shape: bf16[2048,4], index: 6, kind: output, shape index: {}]  }
   0x1   :  { %11 = sst [smem:[#allocation2]] %s5818_s5 }
   0x2 LB: > { %s3889_s24 = sadd.s32 4294967295, %s4951_s23   ;;  %p3893_p0 = scmp.ge.s32.totalorder %s4951_s23, 1  ;;  %s4951_s23 = sphi %s4991_s23, %s17_s23  }
   0x3   : > { %p225_p1 = scmp.lt.s32.totalorder %s4951_s23, 3 }
   0x5   : > { %p226_p2 = pnand %p3893_p0, %p225_p1 }
   0x6   : > { %s3894_s28 = sshll.u32 (!%p226_p2), %s3889_s24, 7  ;;  %s2794_s12 = sld [smem:[#allocation2]] (!%p226_p2) }
   0x7   : > { %229 = sbr.rel (%p226_p2) target bundleno = 476 (0x1dc), region = 44  ;;  %p261_p3 = scmp.lt.s32.totalorder (!%p226_p2), %s3894_s28, 255 }
   0xc   : > { %v536_v0 = vld [vmem:[%s5816_s3] sm:$0x3]  ;;  %vm1050_vm0 = vcmask 1041408   ;;  %s5821_s28 = smov (!%p261_p3, %s3894_s28), 255  ;;  %vm857_vm1 = vcmask 31744   ;;  %vm3692_vm3 = vcmask 27648  }
   0xd   : > { %v407_v1 = vld [vmem:[%s5815_s2] sm:$0x3]  ;;  %4805 = vmatprep.subr.msk.bf16.mxu0 %vm1050_vm0, %v536_v0  ;;  %v1052_v2 = vsel %vm1050_vm0, %v536_v0, 0  ;;  %s5005_s29 = sshll.u32 %s5821_s28, 2 }
   0xe   : > { %4806 = vmatprep.subr.msk.bf16.mxu1 %vm1050_vm0, %v407_v1  ;;  %v2112_v3 = vsel %vm1050_vm0, %v407_v1, 0  ;;  %4546 = vmatpush3.bf16.msra.mxu0 %v1052_v2  ;;  %s5011_s8 = scalar_lea.vmem %s5814_s1, %s5005_s29  ;;  %s5018_s11 = scalar_lea.vmem %s5813_s0, %s5005_s29 }
   0xf   : > { %4676 = vmatpush3.bf16.msra.mxu1 %v2112_v3  ;;  %v4815_v4 = vld [vmem:[%s5011_s8] sm:$0xff]   ;;  %v4817_v6 = vld [vmem:[%s5011_s8 + $0x8] sm:$0xff]   ;;  %v4819_v8 = vld [vmem:[%s5011_s8 + $0x10] sm:$0xff]   ;;  %s5241_s17 = scalar_lea.vmem %s5819_s6, %s5005_s29 }
  0x10   : > { %v4816_v5 = vld [vmem:[%s5018_s11] sm:$0xff]   ;;  %4547 = vmatprep.mubr.msk.bf16.mxu0 %vm857_vm1, %v4815_v4  ;;  %v4818_v7 = vld [vmem:[%s5018_s11 + $0x8] sm:$0xff]   ;;  %v4820_v9 = vld [vmem:[%s5018_s11 + $0x10] sm:$0xff]  }
  0x11   : > { %4677 = vmatprep.mubr.msk.bf16.mxu1 %vm857_vm1, %v4816_v5  ;;  %4548 = vmatmul.mubr.msk.bf16.vlgmr.msra.gmra.mxu0 %vm857_vm1, %v4817_v6  ;;  %v4821_v10 = vld [vmem:[%s5011_s8 + $0x18] sm:$0xff]   ;;  %v4823_v12 = vld [vmem:[%s5011_s8 + $0x20] sm:$0xff]   ;;  %v4825_v14 = vld [vmem:[%s5011_s8 + $0x28] sm:$0xff]  }
  0x12   : > { %4678 = vmatmul.mubr.msk.bf16.vlgmr.msra.gmra.mxu1 %vm857_vm1, %v4818_v7  ;;  %4551 = vmatprep.mubr.msk.bf16.mxu0 %vm857_vm1, %v4819_v8  ;;  %v4822_v11 = vld [vmem:[%s5018_s11 + $0x18] sm:$0xff]   ;;  %v4824_v13 = vld [vmem:[%s5018_s11 + $0x20] sm:$0xff]   ;;  %v4826_v15 = vld [vmem:[%s5018_s11 + $0x28] sm:$0xff]  }
  0x13   : > { %4681 = vmatprep.mubr.msk.bf16.mxu1 %vm857_vm1, %v4820_v9  ;;  %v4827_v16 = vld [vmem:[%s5011_s8 + $0x30] sm:$0xff]   ;;  %v4829_v18 = vld [vmem:[%s5011_s8 + $0x38] sm:$0xff]   ;;  %v4831_v20 = vld [vmem:[%s5011_s8 + $0x40] sm:$0xff]  }
  0x14   : > { %v4828_v17 = vld [vmem:[%s5018_s11 + $0x30] sm:$0xff]   ;;  %v4830_v19 = vld [vmem:[%s5018_s11 + $0x38] sm:$0xff]   ;;  %v4832_v21 = vld [vmem:[%s5018_s11 + $0x40] sm:$0xff]  }
  0x15   : > { %v4833_v22 = vld [vmem:[%s5011_s8 + $0x48] sm:$0xff]   ;;  %v4835_v24 = vld [vmem:[%s5011_s8 + $0x50] sm:$0xff]   ;;  %v4837_v26 = vld [vmem:[%s5011_s8 + $0x58] sm:$0xff]  }
  0x16   : > { %v4834_v23 = vld [vmem:[%s5018_s11 + $0x48] sm:$0xff]   ;;  %v4836_v25 = vld [vmem:[%s5018_s11 + $0x50] sm:$0xff]   ;;  %v4838_v27 = vld [vmem:[%s5018_s11 + $0x58] sm:$0xff]  }
  0x17   : > { %v4839_v28 = vld [vmem:[%s5011_s8 + $0x60] sm:$0xff]   ;;  %v4841_v30 = vld [vmem:[%s5011_s8 + $0x68] sm:$0xff]   ;;  %v4843_v32 = vld [vmem:[%s5011_s8 + $0x70] sm:$0xff]  }
  0x18   : > { %v4840_v29 = vld [vmem:[%s5018_s11 + $0x60] sm:$0xff]   ;;  %v4842_v31 = vld [vmem:[%s5018_s11 + $0x68] sm:$0xff]   ;;  %v4844_v33 = vld [vmem:[%s5018_s11 + $0x70] sm:$0xff]  }
  0x19   : > { %4552 = vmatmul.mubr.msk.bf16.gmra.mxu0 %vm857_vm1, %v4821_v10  ;;  %v4845_v34 = vld [vmem:[%s5011_s8 + $0x78] sm:$0xff]   ;;  %v4847_v36 = vld [vmem:[%s5011_s8 + $0x80] sm:$0xff]   ;;  %v4849_v38 = vld [vmem:[%s5011_s8 + $0x88] sm:$0xff]  }
  0x1a   : > { %4682 = vmatmul.mubr.msk.bf16.gmra.mxu1 %vm857_vm1, %v4822_v11  ;;  %4555 = vmatprep.mubr.msk.bf16.mxu0 %vm857_vm1, %v4823_v12  ;;  %v4846_v35 = vld [vmem:[%s5018_s11 + $0x78] sm:$0xff]   ;;  %v4848_v37 = vld [vmem:[%s5018_s11 + $0x80] sm:$0xff]   ;;  %v4850_v39 = vld [vmem:[%s5018_s11 + $0x88] sm:$0xff]  }
  0x1b   : > { %4685 = vmatprep.mubr.msk.bf16.mxu1 %vm857_vm1, %v4824_v13  ;;  %v4851_v40 = vld [vmem:[%s5011_s8 + $0x90] sm:$0xff]   ;;  %v4853_v42 = vld [vmem:[%s5011_s8 + $0x98] sm:$0xff]   ;;  %v4855_v44 = vld [vmem:[%s5011_s8 + $0xa0] sm:$0xff]  }
  0x1c   : > { %v4852_v41 = vld [vmem:[%s5018_s11 + $0x90] sm:$0xff]   ;;  %v4854_v43 = vld [vmem:[%s5018_s11 + $0x98] sm:$0xff]   ;;  %v4856_v45 = vld [vmem:[%s5018_s11 + $0xa0] sm:$0xff]  }
  0x1d   : > { %v4857_v46 = vld [vmem:[%s5011_s8 + $0xa8] sm:$0xff]   ;;  %v4859_v48 = vld [vmem:[%s5011_s8 + $0xb0] sm:$0xff]   ;;  %v4861_v50 = vld [vmem:[%s5011_s8 + $0xb8] sm:$0xff]  }
  0x1e   : > { %v4858_v47 = vld [vmem:[%s5018_s11 + $0xa8] sm:$0xff]   ;;  %v4860_v49 = vld [vmem:[%s5018_s11 + $0xb0] sm:$0xff]   ;;  %v4862_v51 = vld [vmem:[%s5018_s11 + $0xb8] sm:$0xff]  }
  0x1f   : > { %v4863_v52 = vld [vmem:[%s5011_s8 + $0xc0] sm:$0xff]   ;;  %v4865_v54 = vld [vmem:[%s5011_s8 + $0xc8] sm:$0xff]   ;;  %v4867_v56 = vld [vmem:[%s5011_s8 + $0xd0] sm:$0xff]  }
  0x20   : > { %v4864_v53 = vld [vmem:[%s5018_s11 + $0xc0] sm:$0xff]   ;;  %v4866_v55 = vld [vmem:[%s5018_s11 + $0xc8] sm:$0xff]   ;;  %v4868_v57 = vld [vmem:[%s5018_s11 + $0xd0] sm:$0xff]  }
  0x21   : > { %4556 = vmatmul.mubr.msk.bf16.gmra.mxu0 %vm857_vm1, %v4825_v14  ;;  %v4869_v58 = vld [vmem:[%s5011_s8 + $0xd8] sm:$0xff]   ;;  %v4871_v60 = vld [vmem:[%s5011_s8 + $0xe0] sm:$0xff]   ;;  %v4873_v62 = vld [vmem:[%s5011_s8 + $0xe8] sm:$0xff]  }
  0x22   : > { %4686 = vmatmul.mubr.msk.bf16.gmra.mxu1 %vm857_vm1, %v4826_v15  ;;  %4559 = vmatprep.mubr.msk.bf16.mxu0 %vm857_vm1, %v4827_v16  ;;  %v4870_v59 = vld [vmem:[%s5018_s11 + $0xd8] sm:$0xff]   ;;  %v4872_v61 = vld [vmem:[%s5018_s11 + $0xe0] sm:$0xff]   ;;  %v4874_v63 = vld [vmem:[%s5018_s11 + $0xe8] sm:$0xff]  }
  0x23   : > { %4689 = vmatprep.mubr.msk.bf16.mxu1 %vm857_vm1, %v4828_v17  ;;  %v4875_v0 = vld [vmem:[%s5011_s8 + $0xf0] sm:$0xff]   ;;  %v4877_v2 = vld [vmem:[%s5011_s8 + $0xf8] sm:$0xff]   ;;  %v4879_v4 = vld [vmem:[%s5011_s8 + $0x100] sm:$0xff]  }
  0x24   : > { %v4876_v1 = vld [vmem:[%s5018_s11 + $0xf0] sm:$0xff]   ;;  %v4878_v3 = vld [vmem:[%s5018_s11 + $0xf8] sm:$0xff]   ;;  %v4880_v5 = vld [vmem:[%s5018_s11 + $0x100] sm:$0xff]  }
  0x25   : > { %v4881_v6 = vld [vmem:[%s5011_s8 + $0x108] sm:$0xff]   ;;  %v4883_v8 = vld [vmem:[%s5011_s8 + $0x110] sm:$0xff]   ;;  %v4885_v10 = vld [vmem:[%s5011_s8 + $0x118] sm:$0xff]  }
  0x26   : > { %v4882_v7 = vld [vmem:[%s5018_s11 + $0x108] sm:$0xff]   ;;  %v4884_v9 = vld [vmem:[%s5018_s11 + $0x110] sm:$0xff]   ;;  %v4886_v11 = vld [vmem:[%s5018_s11 + $0x118] sm:$0xff]  }
  0x27   : > { %v4887_v12 = vld [vmem:[%s5011_s8 + $0x120] sm:$0xff]   ;;  %v4889_v14 = vld [vmem:[%s5011_s8 + $0x128] sm:$0xff]   ;;  %v4891_v16 = vld [vmem:[%s5011_s8 + $0x130] sm:$0xff]  }
  0x28   : > { %v4888_v13 = vld [vmem:[%s5018_s11 + $0x120] sm:$0xff]   ;;  %v4890_v15 = vld [vmem:[%s5018_s11 + $0x128] sm:$0xff]   ;;  %v4892_v17 = vld [vmem:[%s5018_s11 + $0x130] sm:$0xff]  }
  0x29   : > { %4560 = vmatmul.mubr.msk.bf16.gmra.mxu0 %vm857_vm1, %v4829_v18  ;;  %v4893_v18 = vld [vmem:[%s5011_s8 + $0x138] sm:$0xff]  }
  0x2a   : > { %4690 = vmatmul.mubr.msk.bf16.gmra.mxu1 %vm857_vm1, %v4830_v19  ;;  %4563 = vmatprep.mubr.msk.bf16.mxu0 %vm857_vm1, %v4831_v20  ;;  %v4894_v19 = vld [vmem:[%s5018_s11 + $0x138] sm:$0xff]   ;;  %v4895_v20 = vld [vmem:[%s5011_s8 + $0x140] sm:$0xff]  }
  0x2b   : > { %4693 = vmatprep.mubr.msk.bf16.mxu1 %vm857_vm1, %v4832_v21  ;;  %v4896_v21 = vld [vmem:[%s5018_s11 + $0x140] sm:$0xff]  }
  0x31   : > { %4564 = vmatmul.mubr.msk.bf16.gmra.mxu0 %vm857_vm1, %v4833_v22  ;;  %v4897_v22 = vld [vmem:[%s5011_s8 + $0x148] sm:$0xff]  }
  0x32   : > { %4694 = vmatmul.mubr.msk.bf16.gmra.mxu1 %vm857_vm1, %v4834_v23  ;;  %4567 = vmatprep.mubr.msk.bf16.mxu0 %vm857_vm1, %v4835_v24  ;;  %v4898_v23 = vld [vmem:[%s5018_s11 + $0x148] sm:$0xff]   ;;  %v4899_v24 = vld [vmem:[%s5011_s8 + $0x150] sm:$0xff]  }
  0x33   : > { %4697 = vmatprep.mubr.msk.bf16.mxu1 %vm857_vm1, %v4836_v25  ;;  %v4900_v25 = vld [vmem:[%s5018_s11 + $0x150] sm:$0xff]  }
  0x39   : > { %4568 = vmatmul.mubr.msk.bf16.gmra.mxu0 %vm857_vm1, %v4837_v26  ;;  %v4901_v26 = vld [vmem:[%s5011_s8 + $0x158] sm:$0xff]  }
  0x3a   : > { %4698 = vmatmul.mubr.msk.bf16.gmra.mxu1 %vm857_vm1, %v4838_v27  ;;  %4571 = vmatprep.mubr.msk.bf16.mxu0 %vm857_vm1, %v4839_v28  ;;  %v4902_v27 = vld [vmem:[%s5018_s11 + $0x158] sm:$0xff]   ;;  %v4903_v28 = vld [vmem:[%s5011_s8 + $0x160] sm:$0xff]  }
  0x3b   : > { %4701 = vmatprep.mubr.msk.bf16.mxu1 %vm857_vm1, %v4840_v29  ;;  %v4904_v29 = vld [vmem:[%s5018_s11 + $0x160] sm:$0xff]  }
  0x41   : > { %4572 = vmatmul.mubr.msk.bf16.gmra.mxu0 %vm857_vm1, %v4841_v30  ;;  %v4905_v30 = vld [vmem:[%s5011_s8 + $0x168] sm:$0xff]  }
  0x42   : > { %4702 = vmatmul.mubr.msk.bf16.gmra.mxu1 %vm857_vm1, %v4842_v31  ;;  %4575 = vmatprep.mubr.msk.bf16.mxu0 %vm857_vm1, %v4843_v32  ;;  %v4906_v31 = vld [vmem:[%s5018_s11 + $0x168] sm:$0xff]   ;;  %v4907_v32 = vld [vmem:[%s5011_s8 + $0x170] sm:$0xff]  }
  0x43   : > { %4705 = vmatprep.mubr.msk.bf16.mxu1 %vm857_vm1, %v4844_v33  ;;  %v4908_v33 = vld [vmem:[%s5018_s11 + $0x170] sm:$0xff]  }
  0x49   : > { %4576 = vmatmul.mubr.msk.bf16.gmra.mxu0 %vm857_vm1, %v4845_v34  ;;  %v4909_v34 = vld [vmem:[%s5011_s8 + $0x178] sm:$0xff]  }
  0x4a   : > { %4706 = vmatmul.mubr.msk.bf16.gmra.mxu1 %vm857_vm1, %v4846_v35  ;;  %4579 = vmatprep.mubr.msk.bf16.mxu0 %vm857_vm1, %v4847_v36  ;;  %v4910_v35 = vld [vmem:[%s5018_s11 + $0x178] sm:$0xff]   ;;  %v4911_v36 = vld [vmem:[%s5011_s8 + $0x180] sm:$0xff]  }
  0x4b   : > { %4709 = vmatprep.mubr.msk.bf16.mxu1 %vm857_vm1, %v4848_v37  ;;  %v4912_v37 = vld [vmem:[%s5018_s11 + $0x180] sm:$0xff]  }
  0x51   : > { %4580 = vmatmul.mubr.msk.bf16.gmra.mxu0 %vm857_vm1, %v4849_v38  ;;  %v4913_v38 = vld [vmem:[%s5011_s8 + $0x188] sm:$0xff]  }
  0x52   : > { %4710 = vmatmul.mubr.msk.bf16.gmra.mxu1 %vm857_vm1, %v4850_v39  ;;  %4583 = vmatprep.mubr.msk.bf16.mxu0 %vm857_vm1, %v4851_v40  ;;  %v4914_v39 = vld [vmem:[%s5018_s11 + $0x188] sm:$0xff]   ;;  %v4915_v40 = vld [vmem:[%s5011_s8 + $0x190] sm:$0xff]  }
  0x53   : > { %4713 = vmatprep.mubr.msk.bf16.mxu1 %vm857_vm1, %v4852_v41  ;;  %v4916_v41 = vld [vmem:[%s5018_s11 + $0x190] sm:$0xff]  }
  0x59   : > { %4584 = vmatmul.mubr.msk.bf16.gmra.mxu0 %vm857_vm1, %v4853_v42 }
  0x5a   : > { %4714 = vmatmul.mubr.msk.bf16.gmra.mxu1 %vm857_vm1, %v4854_v43  ;;  %4587 = vmatprep.mubr.msk.bf16.mxu0 %vm857_vm1, %v4855_v44  ;;  %v5223_v44 = vld [vmem:[%s5817_s4] ss:$0 sm:$0xff] }
  0x5b   : > { %4717 = vmatprep.mubr.msk.bf16.mxu1 %vm857_vm1, %v4856_v45 }
  0x61   : > { %4588 = vmatmul.mubr.msk.bf16.gmra.mxu0 %vm857_vm1, %v4857_v46 }
  0x62   : > { %4718 = vmatmul.mubr.msk.bf16.gmra.mxu1 %vm857_vm1, %v4858_v47  ;;  %4591 = vmatprep.mubr.msk.bf16.mxu0 %vm857_vm1, %v4859_v48  ;;  %v5228_v47 = vstv %s2794_s12 }
  0x63   : > { %4721 = vmatprep.mubr.msk.bf16.mxu1 %vm857_vm1, %v4860_v49 }
  0x69   : > { %4592 = vmatmul.mubr.msk.bf16.gmra.mxu0 %vm857_vm1, %v4861_v50 }
  0x6a   : > { %4722 = vmatmul.mubr.msk.bf16.gmra.mxu1 %vm857_vm1, %v4862_v51  ;;  %4595 = vmatprep.mubr.msk.bf16.mxu0 %vm857_vm1, %v4863_v52  ;;  %v4917_v52 = vld [vmem:[%s5011_s8 + $0x198] sm:$0xff]  }
  0x6b   : > { %4725 = vmatprep.mubr.msk.bf16.mxu1 %vm857_vm1, %v4864_v53 }
  0x71   : > { %4596 = vmatmul.mubr.msk.bf16.gmra.mxu0 %vm857_vm1, %v4865_v54  ;;  %v4918_v54 = vld [vmem:[%s5018_s11 + $0x198] sm:$0xff]  }
  0x72   : > { %4726 = vmatmul.mubr.msk.bf16.gmra.mxu1 %vm857_vm1, %v4866_v55  ;;  %4599 = vmatprep.mubr.msk.bf16.mxu0 %vm857_vm1, %v4867_v56  ;;  %v4919_v55 = vld [vmem:[%s5011_s8 + $0x1a0] sm:$0xff]  }
  0x73   : > { %4729 = vmatprep.mubr.msk.bf16.mxu1 %vm857_vm1, %v4868_v57 }
  0x79   : > { %4600 = vmatmul.mubr.msk.bf16.gmra.mxu0 %vm857_vm1, %v4869_v58 }
  0x7a   : > { %4730 = vmatmul.mubr.msk.bf16.gmra.mxu1 %vm857_vm1, %v4870_v59  ;;  %4603 = vmatprep.mubr.msk.bf16.mxu0 %vm857_vm1, %v4871_v60  ;;  %v4920_v60 = vld [vmem:[%s5018_s11 + $0x1a0] sm:$0xff]  }
  0x7b   : > { %4733 = vmatprep.mubr.msk.bf16.mxu1 %vm857_vm1, %v4872_v61 }
  0x81   : > { %4604 = vmatmul.mubr.msk.bf16.gmra.mxu0 %vm857_vm1, %v4873_v62 }
  0x82   : > { %4734 = vmatmul.mubr.msk.bf16.gmra.mxu1 %vm857_vm1, %v4874_v63  ;;  %4607 = vmatprep.mubr.msk.bf16.mxu0 %vm857_vm1, %v4875_v0 }
  0x83   : > { %4737 = vmatprep.mubr.msk.bf16.mxu1 %vm857_vm1, %v4876_v1 }
  0x89   : > { %4608 = vmatmul.mubr.msk.bf16.gmra.mxu0 %vm857_vm1, %v4877_v2 }
  0x8a   : > { %4738 = vmatmul.mubr.msk.bf16.gmra.mxu1 %vm857_vm1, %v4878_v3  ;;  %4611 = vmatprep.mubr.msk.bf16.mxu0 %vm857_vm1, %v4879_v4 }
  0x8b   : > { %4741 = vmatprep.mubr.msk.bf16.mxu1 %vm857_vm1, %v4880_v5 }
  0x91   : > { %4612 = vmatmul.mubr.msk.bf16.gmra.mxu0 %vm857_vm1, %v4881_v6 }
  0x92   : > { %4742 = vmatmul.mubr.msk.bf16.gmra.mxu1 %vm857_vm1, %v4882_v7  ;;  %4615 = vmatprep.mubr.msk.bf16.mxu0 %vm857_vm1, %v4883_v8 }
  0x93   : > { %4745 = vmatprep.mubr.msk.bf16.mxu1 %vm857_vm1, %v4884_v9 }
  0x99   : > { %4616 = vmatmul.mubr.msk.bf16.gmra.mxu0 %vm857_vm1, %v4885_v10 }
  0x9a   : > { %4746 = vmatmul.mubr.msk.bf16.gmra.mxu1 %vm857_vm1, %v4886_v11  ;;  %4619 = vmatprep.mubr.msk.bf16.mxu0 %vm857_vm1, %v4887_v12 }
  0x9b   : > { %4749 = vmatprep.mubr.msk.bf16.mxu1 %vm857_vm1, %v4888_v13 }
  0xa1   : > { %4620 = vmatmul.mubr.msk.bf16.gmra.mxu0 %vm857_vm1, %v4889_v14 }
  0xa2   : > { %4750 = vmatmul.mubr.msk.bf16.gmra.mxu1 %vm857_vm1, %v4890_v15  ;;  %4623 = vmatprep.mubr.msk.bf16.mxu0 %vm857_vm1, %v4891_v16  ;;  %v4921_v16 = vld [vmem:[%s5011_s8 + $0x1a8] sm:$0xff]  }
  0xa3   : > { %4753 = vmatprep.mubr.msk.bf16.mxu1 %vm857_vm1, %v4892_v17 }
  0xa9   : > { %4624 = vmatmul.mubr.msk.bf16.gmra.mxu0 %vm857_vm1, %v4893_v18 }
  0xaa   : > { %4754 = vmatmul.mubr.msk.bf16.gmra.mxu1 %vm857_vm1, %v4894_v19  ;;  %4627 = vmatprep.mubr.msk.bf16.mxu0 %vm857_vm1, %v4895_v20  ;;  %v4922_v20 = vld [vmem:[%s5018_s11 + $0x1a8] sm:$0xff]  }
  0xab   : > { %4757 = vmatprep.mubr.msk.bf16.mxu1 %vm857_vm1, %v4896_v21  ;;  %v4923_v21 = vld [vmem:[%s5011_s8 + $0x1b0] sm:$0xff]  }
  0xb1   : > { %4628 = vmatmul.mubr.msk.bf16.gmra.mxu0 %vm857_vm1, %v4897_v22 }
  0xb2   : > { %4758 = vmatmul.mubr.msk.bf16.gmra.mxu1 %vm857_vm1, %v4898_v23  ;;  %4631 = vmatprep.mubr.msk.bf16.mxu0 %vm857_vm1, %v4899_v24 }
  0xb3   : > { %4761 = vmatprep.mubr.msk.bf16.mxu1 %vm857_vm1, %v4900_v25 }
  0xb9   : > { %4632 = vmatmul.mubr.msk.bf16.gmra.mxu0 %vm857_vm1, %v4901_v26  ;;  %v4924_v26 = vld [vmem:[%s5018_s11 + $0x1b0] sm:$0xff]  }
  0xba   : > { %4762 = vmatmul.mubr.msk.bf16.gmra.mxu1 %vm857_vm1, %v4902_v27  ;;  %4635 = vmatprep.mubr.msk.bf16.mxu0 %vm857_vm1, %v4903_v28 }
  0xbb   : > { %4765 = vmatprep.mubr.msk.bf16.mxu1 %vm857_vm1, %v4904_v29 }
  0xc1   : > { %4636 = vmatmul.mubr.msk.bf16.gmra.mxu0 %vm857_vm1, %v4905_v30 }
  0xc2   : > { %4766 = vmatmul.mubr.msk.bf16.gmra.mxu1 %vm857_vm1, %v4906_v31  ;;  %4639 = vmatprep.mubr.msk.bf16.mxu0 %vm857_vm1, %v4907_v32 }
  0xc3   : > { %4769 = vmatprep.mubr.msk.bf16.mxu1 %vm857_vm1, %v4908_v33 }
  0xc9   : > { %4640 = vmatmul.mubr.msk.bf16.gmra.mxu0 %vm857_vm1, %v4909_v34 }
  0xca   : > { %4770 = vmatmul.mubr.msk.bf16.gmra.mxu1 %vm857_vm1, %v4910_v35  ;;  %4643 = vmatprep.mubr.msk.bf16.mxu0 %vm857_vm1, %v4911_v36 }
  0xcb   : > { %4773 = vmatprep.mubr.msk.bf16.mxu1 %vm857_vm1, %v4912_v37 }
  0xd1   : > { %v4549_v42 = vpop.f32.mrf.mxu0  ;;  %4644 = vmatmul.mubr.msk.bf16.gmra.mxu0 %vm857_vm1, %v4913_v38 }
  0xd2   : > { %v4679_v43 = vpop.f32.mrf.mxu1  ;;  %4774 = vmatmul.mubr.msk.bf16.gmra.mxu1 %vm857_vm1, %v4914_v39  ;;  %4647 = vmatprep.mubr.msk.bf16.mxu0 %vm857_vm1, %v4915_v40 }
  0xd3   : > { %v2157_v45 = vadd.f32 %v4679_v43, %v4549_v42  ;;  %v1088_v46 = vpop.f32.mrf.mxu0  ;;  %4777 = vmatprep.mubr.msk.bf16.mxu1 %vm857_vm1, %v4916_v41 }
  0xd4   : > { %v2148_v48 = vpop.f32.mrf.mxu1 }
  0xd5   : > { %v2668_v49 = vadd.f32 %v5223_v44, %v2157_v45  ;;  %v2149_v50 = vadd.f32 %v2148_v48, %v1088_v46  ;;  %v4550_v51 = vpop.f32.mrf.mxu0 }
  0xd6   : > { %v4680_v53 = vpop.f32.mrf.mxu1 }
  0xd7   : > { %vm2797_vm2 = vcmp.gt.f32.partialorder %v2668_v49, 0.0  ;;  %v2926_v56 = vmul.f32 %v5228_v47, %v2668_v49  ;;  %v2666_v57 = vadd.f32 %v5223_v44, %v2149_v50  ;;  %v2160_v58 = vadd.f32 %v4680_v53, %v4550_v51  ;;  %v1091_v59 = vpop.f32.mrf.mxu0  ;;  %v4926_v53 = vld [vmem:[%s5018_s11 + $0x1b8] sm:$0xff]  }
  0xd8   : > { %v2151_v61 = vpop.f32.mrf.mxu1 }
  0xd9   : > { %v3054_v62 = vsel %vm2797_vm2, %v2668_v49, %v2926_v56  ;;  %vm2795_vm4 = vcmp.gt.f32.partialorder %v2666_v57, 0.0  ;;  %v2924_v63 = vmul.f32 %v5228_v47, %v2666_v57  ;;  %v2669_v0 = vadd.f32 %v5223_v44, %v2160_v58  ;;  %v4553_v1 = vpop.f32.mrf.mxu0  ;;  %4648 = vmatmul.mubr.msk.bf16.gmra.mxu0 %vm857_vm1, %v4917_v52  ;;  %v4925_v49 = vld [vmem:[%s5011_s8 + $0x1b8] sm:$0xff]  }
  0xda   : > { %v4289_v2 = vpack.c.bf16 %v3054_v62, %v3054_v62  ;;  %v2152_v3 = vadd.f32 %v2151_v61, %v1091_v59  ;;  %v4683_v4 = vpop.f32.mrf.mxu1  ;;  %4778 = vmatmul.mubr.msk.bf16.gmra.mxu1 %vm857_vm1, %v4918_v54  ;;  %4651 = vmatprep.mubr.msk.bf16.mxu0 %vm857_vm1, %v4919_v55  ;;  %v4927_v54 = vld [vmem:[%s5011_s8 + $0x1c0] sm:$0xff]  }
  0xdb   : > { %v3052_v5 = vsel %vm2795_vm4, %v2666_v57, %v2924_v63  ;;  %vm2798_vm5 = vcmp.gt.f32.partialorder %v2669_v0, 0.0  ;;  %v2927_v6 = vmul.f32 %v5228_v47, %v2669_v0  ;;  %v2173_v7 = vadd.f32 %v4683_v4, %v4553_v1  ;;  %v1104_v8 = vpop.f32.mrf.mxu0  ;;  %4781 = vmatprep.mubr.msk.bf16.mxu1 %vm857_vm1, %v4920_v60  ;;  %v4928_v59 = vld [vmem:[%s5018_s11 + $0x1c0] sm:$0xff]  }
  0xdc   : > { %3695 = vst.msk [vmem:[%s5241_s17 + $0x8] sm:$0xf] %vm3692_vm3, %v4289_v2  ;;  %v4287_v9 = vpack.c.bf16 %v3052_v5, %v3052_v5  ;;  %v2667_v10 = vadd.f32 %v5223_v44, %v2152_v3  ;;  %v2164_v11 = vpop.f32.mrf.mxu1 }
  0xdd   : > { %v3055_v12 = vsel %vm2798_vm5, %v2669_v0, %v2927_v6  ;;  %v2672_v13 = vadd.f32 %v5223_v44, %v2173_v7  ;;  %v2165_v14 = vadd.f32 %v2164_v11, %v1104_v8  ;;  %v4554_v15 = vpop.f32.mrf.mxu0 }
  0xde   : > { %3693 = vst.msk [vmem:[%s5241_s17] sm:$0xf] %vm3692_vm3, %v4287_v9  ;;  %v4290_v17 = vpack.c.bf16 %v3055_v12, %v3055_v12  ;;  %vm2796_vm6 = vcmp.gt.f32.partialorder %v2667_v10, 0.0  ;;  %v2925_v18 = vmul.f32 %v5228_v47, %v2667_v10  ;;  %v4684_v19 = vpop.f32.mrf.mxu1 }
  0xdf   : > { %vm2801_vm7 = vcmp.gt.f32.partialorder %v2672_v13, 0.0  ;;  %v2930_v22 = vmul.f32 %v5228_v47, %v2672_v13  ;;  %v2670_v23 = vadd.f32 %v5223_v44, %v2165_v14  ;;  %v2176_v24 = vadd.f32 %v4684_v19, %v4554_v15  ;;  %v1107_v25 = vpop.f32.mrf.mxu0 }
  0xe0   : > { %3696 = vst.msk [vmem:[%s5241_s17 + $0xc] sm:$0xf] %vm3692_vm3, %v4290_v17  ;;  %v3053_v27 = vsel %vm2796_vm6, %v2667_v10, %v2925_v18  ;;  %v2167_v28 = vpop.f32.mrf.mxu1  ;;  %v4929_v17 = vld [vmem:[%s5011_s8 + $0x1c8] sm:$0xff]  }
  0xe1   : > { %v4288_v29 = vpack.c.bf16 %v3053_v27, %v3053_v27  ;;  %v3058_v30 = vsel %vm2801_vm7, %v2672_v13, %v2930_v22  ;;  %vm2799_vm8 = vcmp.gt.f32.partialorder %v2670_v23, 0.0  ;;  %v2928_v31 = vmul.f32 %v5228_v47, %v2670_v23  ;;  %v4557_v32 = vpop.f32.mrf.mxu0  ;;  %4652 = vmatmul.mubr.msk.bf16.gmra.mxu0 %vm857_vm1, %v4921_v16  ;;  %v4931_v22 = vld [vmem:[%s5011_s8 + $0x1d0] sm:$0xff]  }
  0xe2   : > { %v4293_v33 = vpack.c.bf16 %v3058_v30, %v3058_v30  ;;  %v2673_v34 = vadd.f32 %v5223_v44, %v2176_v24  ;;  %v2168_v35 = vadd.f32 %v2167_v28, %v1107_v25  ;;  %v4687_v36 = vpop.f32.mrf.mxu1  ;;  %4782 = vmatmul.mubr.msk.bf16.gmra.mxu1 %vm857_vm1, %v4922_v20  ;;  %4655 = vmatprep.mubr.msk.bf16.mxu0 %vm857_vm1, %v4923_v21  ;;  %v4930_v21 = vld [vmem:[%s5018_s11 + $0x1c8] sm:$0xff]   ;;  %v4932_v27 = vld [vmem:[%s5018_s11 + $0x1d0] sm:$0xff]  }
  0xe3   : > { %3694 = vst.msk [vmem:[%s5241_s17 + $0x4] sm:$0xf] %vm3692_vm3, %v4288_v29  ;;  %v3056_v37 = vsel %vm2799_vm8, %v2670_v23, %v2928_v31  ;;  %v2189_v38 = vadd.f32 %v4687_v36, %v4557_v32  ;;  %v1120_v39 = vpop.f32.mrf.mxu0  ;;  %4785 = vmatprep.mubr.msk.bf16.mxu1 %vm857_vm1, %v4924_v26 }
  0xe4   : > { %3699 = vst.msk [vmem:[%s5241_s17 + $0x18] sm:$0xf] %vm3692_vm3, %v4293_v33  ;;  %v4291_v40 = vpack.c.bf16 %v3056_v37, %v3056_v37  ;;  %vm2802_vm9 = vcmp.gt.f32.partialorder %v2673_v34, 0.0  ;;  %v2931_v41 = vmul.f32 %v5228_v47, %v2673_v34  ;;  %v2671_v42 = vadd.f32 %v5223_v44, %v2168_v35  ;;  %v2180_v43 = vpop.f32.mrf.mxu1 }
  0xe5   : > { %v2676_v45 = vadd.f32 %v5223_v44, %v2189_v38  ;;  %v2181_v46 = vadd.f32 %v2180_v43, %v1120_v39  ;;  %v4558_v48 = vpop.f32.mrf.mxu0 }
  0xe6   : > { %3697 = vst.msk [vmem:[%s5241_s17 + $0x10] sm:$0xf] %vm3692_vm3, %v4291_v40  ;;  %v3059_v50 = vsel %vm2802_vm9, %v2673_v34, %v2931_v41  ;;  %vm2800_vm10 = vcmp.gt.f32.partialorder %v2671_v42, 0.0  ;;  %v2929_v51 = vmul.f32 %v5228_v47, %v2671_v42  ;;  %v4688_v52 = vpop.f32.mrf.mxu1 }
  0xe7   : > { %v4294_v55 = vpack.c.bf16 %v3059_v50, %v3059_v50  ;;  %vm2805_vm11 = vcmp.gt.f32.partialorder %v2676_v45, 0.0  ;;  %v2934_v56 = vmul.f32 %v5228_v47, %v2676_v45  ;;  %v2674_v57 = vadd.f32 %v5223_v44, %v2181_v46  ;;  %v1123_v58 = vpop.f32.mrf.mxu0 }
  0xe8   : > { %v3057_v60 = vsel %vm2800_vm10, %v2671_v42, %v2929_v51  ;;  %v2192_v61 = vadd.f32 %v4688_v52, %v4558_v48  ;;  %v2183_v62 = vpop.f32.mrf.mxu1  ;;  %v4933_v51 = vld [vmem:[%s5011_s8 + $0x1d8] sm:$0xff]  }
  0xe9   : > { %3700 = vst.msk [vmem:[%s5241_s17 + $0x1c] sm:$0xf] %vm3692_vm3, %v4294_v55  ;;  %v4292_v63 = vpack.c.bf16 %v3057_v60, %v3057_v60  ;;  %v3062_v0 = vsel %vm2805_vm11, %v2676_v45, %v2934_v56  ;;  %vm2803_vm12 = vcmp.gt.f32.partialorder %v2674_v57, 0.0  ;;  %v2932_v1 = vmul.f32 %v5228_v47, %v2674_v57  ;;  %v4561_v2 = vpop.f32.mrf.mxu0  ;;  %4656 = vmatmul.mubr.msk.bf16.gmra.mxu0 %vm857_vm1, %v4925_v49  ;;  %v4934_v55 = vld [vmem:[%s5018_s11 + $0x1d8] sm:$0xff]   ;;  %v4935_v56 = vld [vmem:[%s5011_s8 + $0x1e0] sm:$0xff]  }
  0xea   : > { %v4297_v3 = vpack.c.bf16 %v3062_v0, %v3062_v0  ;;  %v2677_v4 = vadd.f32 %v5223_v44, %v2192_v61  ;;  %v2184_v5 = vadd.f32 %v2183_v62, %v1123_v58  ;;  %v4691_v6 = vpop.f32.mrf.mxu1  ;;  %4786 = vmatmul.mubr.msk.bf16.gmra.mxu1 %vm857_vm1, %v4926_v53  ;;  %4659 = vmatprep.mubr.msk.bf16.mxu0 %vm857_vm1, %v4927_v54  ;;  %v4936_v61 = vld [vmem:[%s5018_s11 + $0x1e0] sm:$0xff]  }
  0xeb   : > { %3698 = vst.msk [vmem:[%s5241_s17 + $0x14] sm:$0xf] %vm3692_vm3, %v4292_v63  ;;  %v3060_v7 = vsel %vm2803_vm12, %v2674_v57, %v2932_v1  ;;  %v2205_v8 = vadd.f32 %v4691_v6, %v4561_v2  ;;  %v1136_v9 = vpop.f32.mrf.mxu0  ;;  %4789 = vmatprep.mubr.msk.bf16.mxu1 %vm857_vm1, %v4928_v59 }
  0xec   : > { %3703 = vst.msk [vmem:[%s5241_s17 + $0x28] sm:$0xf] %vm3692_vm3, %v4297_v3  ;;  %v4295_v10 = vpack.c.bf16 %v3060_v7, %v3060_v7  ;;  %vm2806_vm13 = vcmp.gt.f32.partialorder %v2677_v4, 0.0  ;;  %v2935_v11 = vmul.f32 %v5228_v47, %v2677_v4  ;;  %v2675_v12 = vadd.f32 %v5223_v44, %v2184_v5  ;;  %v2196_v13 = vpop.f32.mrf.mxu1 }
  0xed   : > { %v2680_v14 = vadd.f32 %v5223_v44, %v2205_v8  ;;  %v2197_v15 = vadd.f32 %v2196_v13, %v1136_v9  ;;  %v4562_v16 = vpop.f32.mrf.mxu0 }
  0xee   : > { %3701 = vst.msk [vmem:[%s5241_s17 + $0x20] sm:$0xf] %vm3692_vm3, %v4295_v10  ;;  %v3063_v18 = vsel %vm2806_vm13, %v2677_v4, %v2935_v11  ;;  %vm2804_vm14 = vcmp.gt.f32.partialorder %v2675_v12, 0.0  ;;  %v2933_v19 = vmul.f32 %v5228_v47, %v2675_v12  ;;  %v4692_v20 = vpop.f32.mrf.mxu1 }
  0xef   : > { %v4298_v23 = vpack.c.bf16 %v3063_v18, %v3063_v18  ;;  %vm2809_vm15 = vcmp.gt.f32.partialorder %v2680_v14, 0.0  ;;  %v2938_v24 = vmul.f32 %v5228_v47, %v2680_v14  ;;  %v2678_v25 = vadd.f32 %v5223_v44, %v2197_v15  ;;  %v1139_v26 = vpop.f32.mrf.mxu0 }
  0xf0   : > { %v3061_v28 = vsel %vm2804_vm14, %v2675_v12, %v2933_v19  ;;  %v2208_v29 = vadd.f32 %v4692_v20, %v4562_v16  ;;  %v2199_v30 = vpop.f32.mrf.mxu1  ;;  %v4937_v19 = vld [vmem:[%s5011_s8 + $0x1e8] sm:$0xff]  }
  0xf1   : > { %3704 = vst.msk [vmem:[%s5241_s17 + $0x2c] sm:$0xf] %vm3692_vm3, %v4298_v23  ;;  %v4296_v31 = vpack.c.bf16 %v3061_v28, %v3061_v28  ;;  %v3066_v32 = vsel %vm2809_vm15, %v2680_v14, %v2938_v24  ;;  %vm2807_vm0 = vcmp.gt.f32.partialorder %v2678_v25, 0.0  ;;  %v2936_v33 = vmul.f32 %v5228_v47, %v2678_v25  ;;  %v4565_v34 = vpop.f32.mrf.mxu0  ;;  %4660 = vmatmul.mubr.msk.bf16.gmra.mxu0 %vm857_vm1, %v4929_v17  ;;  %v4938_v23 = vld [vmem:[%s5018_s11 + $0x1e8] sm:$0xff]   ;;  %v4939_v24 = vld [vmem:[%s5011_s8 + $0x1f0] sm:$0xff]  }
  0xf2   : > { %v4301_v35 = vpack.c.bf16 %v3066_v32, %v3066_v32  ;;  %v2681_v36 = vadd.f32 %v5223_v44, %v2208_v29  ;;  %v2200_v37 = vadd.f32 %v2199_v30, %v1139_v26  ;;  %v4695_v38 = vpop.f32.mrf.mxu1  ;;  %4790 = vmatmul.mubr.msk.bf16.gmra.mxu1 %vm857_vm1, %v4930_v21  ;;  %4663 = vmatprep.mubr.msk.bf16.mxu0 %vm857_vm1, %v4931_v22  ;;  %v4940_v29 = vld [vmem:[%s5018_s11 + $0x1f0] sm:$0xff]  }
  0xf3   : > { %3702 = vst.msk [vmem:[%s5241_s17 + $0x24] sm:$0xf] %vm3692_vm3, %v4296_v31  ;;  %v3064_v39 = vsel %vm2807_vm0, %v2678_v25, %v2936_v33  ;;  %v2221_v40 = vadd.f32 %v4695_v38, %v4565_v34  ;;  %v1152_v41 = vpop.f32.mrf.mxu0  ;;  %4793 = vmatprep.mubr.msk.bf16.mxu1 %vm857_vm1, %v4932_v27 }
  0xf4   : > { %3707 = vst.msk [vmem:[%s5241_s17 + $0x38] sm:$0xf] %vm3692_vm3, %v4301_v35  ;;  %v4299_v42 = vpack.c.bf16 %v3064_v39, %v3064_v39  ;;  %vm2810_vm2 = vcmp.gt.f32.partialorder %v2681_v36, 0.0  ;;  %v2939_v43 = vmul.f32 %v5228_v47, %v2681_v36  ;;  %v2679_v45 = vadd.f32 %v5223_v44, %v2200_v37  ;;  %v2212_v46 = vpop.f32.mrf.mxu1 }
  0xf5   : > { %v2684_v48 = vadd.f32 %v5223_v44, %v2221_v40  ;;  %v2213_v49 = vadd.f32 %v2212_v46, %v1152_v41  ;;  %v4566_v50 = vpop.f32.mrf.mxu0 }
  0xf6   : > { %3705 = vst.msk [vmem:[%s5241_s17 + $0x30] sm:$0xf] %vm3692_vm3, %v4299_v42  ;;  %v3067_v52 = vsel %vm2810_vm2, %v2681_v36, %v2939_v43  ;;  %vm2808_vm4 = vcmp.gt.f32.partialorder %v2679_v45, 0.0  ;;  %v2937_v53 = vmul.f32 %v5228_v47, %v2679_v45  ;;  %v4696_v54 = vpop.f32.mrf.mxu1 }
  0xf7   : > { %v4302_v57 = vpack.c.bf16 %v3067_v52, %v3067_v52  ;;  %vm2813_vm5 = vcmp.gt.f32.partialorder %v2684_v48, 0.0  ;;  %v2942_v58 = vmul.f32 %v5228_v47, %v2684_v48  ;;  %v2682_v59 = vadd.f32 %v5223_v44, %v2213_v49  ;;  %v1155_v60 = vpop.f32.mrf.mxu0 }
  0xf8   : > { %v3065_v62 = vsel %vm2808_vm4, %v2679_v45, %v2937_v53  ;;  %v2224_v63 = vadd.f32 %v4696_v54, %v4566_v50  ;;  %v2215_v0 = vpop.f32.mrf.mxu1  ;;  %v4941_v53 = vld [vmem:[%s5011_s8 + $0x1f8] sm:$0xff]  }
  0xf9   : > { %3708 = vst.msk [vmem:[%s5241_s17 + $0x3c] sm:$0xf] %vm3692_vm3, %v4302_v57  ;;  %v4300_v1 = vpack.c.bf16 %v3065_v62, %v3065_v62  ;;  %v3070_v2 = vsel %vm2813_vm5, %v2684_v48, %v2942_v58  ;;  %vm2811_vm6 = vcmp.gt.f32.partialorder %v2682_v59, 0.0  ;;  %v2940_v3 = vmul.f32 %v5228_v47, %v2682_v59  ;;  %v4569_v4 = vpop.f32.mrf.mxu0  ;;  %4664 = vmatmul.mubr.msk.bf16.gmra.mxu0 %vm857_vm1, %v4933_v51  ;;  %v4942_v57 = vld [vmem:[%s5018_s11 + $0x1f8] sm:$0xff]  }
  0xfa   : > { %v4305_v5 = vpack.c.bf16 %v3070_v2, %v3070_v2  ;;  %v2685_v6 = vadd.f32 %v5223_v44, %v2224_v63  ;;  %v2216_v7 = vadd.f32 %v2215_v0, %v1155_v60  ;;  %v4699_v8 = vpop.f32.mrf.mxu1  ;;  %4794 = vmatmul.mubr.msk.bf16.gmra.mxu1 %vm857_vm1, %v4934_v55  ;;  %4667 = vmatprep.mubr.msk.bf16.mxu0 %vm857_vm1, %v4935_v56 }
  0xfb   : > { %3706 = vst.msk [vmem:[%s5241_s17 + $0x34] sm:$0xf] %vm3692_vm3, %v4300_v1  ;;  %v3068_v9 = vsel %vm2811_vm6, %v2682_v59, %v2940_v3  ;;  %v2237_v10 = vadd.f32 %v4699_v8, %v4569_v4  ;;  %v1168_v11 = vpop.f32.mrf.mxu0  ;;  %4797 = vmatprep.mubr.msk.bf16.mxu1 %vm857_vm1, %v4936_v61 }
  0xfc   : > { %3711 = vst.msk [vmem:[%s5241_s17 + $0x48] sm:$0xf] %vm3692_vm3, %v4305_v5  ;;  %v4303_v12 = vpack.c.bf16 %v3068_v9, %v3068_v9  ;;  %vm2814_vm7 = vcmp.gt.f32.partialorder %v2685_v6, 0.0  ;;  %v2943_v13 = vmul.f32 %v5228_v47, %v2685_v6  ;;  %v2683_v14 = vadd.f32 %v5223_v44, %v2216_v7  ;;  %v2228_v15 = vpop.f32.mrf.mxu1 }
  0xfd   : > { %v2688_v16 = vadd.f32 %v5223_v44, %v2237_v10  ;;  %v2229_v17 = vadd.f32 %v2228_v15, %v1168_v11  ;;  %v4570_v18 = vpop.f32.mrf.mxu0 }
  0xfe   : > { %3709 = vst.msk [vmem:[%s5241_s17 + $0x40] sm:$0xf] %vm3692_vm3, %v4303_v12  ;;  %v3071_v20 = vsel %vm2814_vm7, %v2685_v6, %v2943_v13  ;;  %vm2812_vm8 = vcmp.gt.f32.partialorder %v2683_v14, 0.0  ;;  %v2941_v21 = vmul.f32 %v5228_v47, %v2683_v14  ;;  %v4700_v22 = vpop.f32.mrf.mxu1 }
  0xff   : > { %v4306_v25 = vpack.c.bf16 %v3071_v20, %v3071_v20  ;;  %vm2817_vm9 = vcmp.gt.f32.partialorder %v2688_v16, 0.0  ;;  %v2946_v26 = vmul.f32 %v5228_v47, %v2688_v16  ;;  %v2686_v27 = vadd.f32 %v5223_v44, %v2229_v17  ;;  %v1171_v28 = vpop.f32.mrf.mxu0 }
 0x100   : > { %v3069_v30 = vsel %vm2812_vm8, %v2683_v14, %v2941_v21  ;;  %v2240_v31 = vadd.f32 %v4700_v22, %v4570_v18  ;;  %v2231_v32 = vpop.f32.mrf.mxu1 }
 0x101   : > { %3712 = vst.msk [vmem:[%s5241_s17 + $0x4c] sm:$0xf] %vm3692_vm3, %v4306_v25  ;;  %v4304_v33 = vpack.c.bf16 %v3069_v30, %v3069_v30  ;;  %v3074_v34 = vsel %vm2817_vm9, %v2688_v16, %v2946_v26  ;;  %vm2815_vm10 = vcmp.gt.f32.partialorder %v2686_v27, 0.0  ;;  %v2944_v35 = vmul.f32 %v5228_v47, %v2686_v27  ;;  %v4573_v36 = vpop.f32.mrf.mxu0  ;;  %4668 = vmatmul.mubr.msk.bf16.gmra.mxu0 %vm857_vm1, %v4937_v19 }
 0x102   : > { %v4309_v37 = vpack.c.bf16 %v3074_v34, %v3074_v34  ;;  %v2689_v38 = vadd.f32 %v5223_v44, %v2240_v31  ;;  %v2232_v39 = vadd.f32 %v2231_v32, %v1171_v28  ;;  %v4703_v40 = vpop.f32.mrf.mxu1  ;;  %4798 = vmatmul.mubr.msk.bf16.gmra.mxu1 %vm857_vm1, %v4938_v23  ;;  %4671 = vmatprep.mubr.msk.bf16.mxu0 %vm857_vm1, %v4939_v24 }
 0x103   : > { %3710 = vst.msk [vmem:[%s5241_s17 + $0x44] sm:$0xf] %vm3692_vm3, %v4304_v33  ;;  %v3072_v41 = vsel %vm2815_vm10, %v2686_v27, %v2944_v35  ;;  %v2253_v42 = vadd.f32 %v4703_v40, %v4573_v36  ;;  %v1184_v43 = vpop.f32.mrf.mxu0  ;;  %4801 = vmatprep.mubr.msk.bf16.mxu1 %vm857_vm1, %v4940_v29 }
 0x104   : > { %3715 = vst.msk [vmem:[%s5241_s17 + $0x58] sm:$0xf] %vm3692_vm3, %v4309_v37  ;;  %v4307_v45 = vpack.c.bf16 %v3072_v41, %v3072_v41  ;;  %vm2818_vm11 = vcmp.gt.f32.partialorder %v2689_v38, 0.0  ;;  %v2947_v46 = vmul.f32 %v5228_v47, %v2689_v38  ;;  %v2687_v48 = vadd.f32 %v5223_v44, %v2232_v39  ;;  %v2244_v49 = vpop.f32.mrf.mxu1 }
 0x105   : > { %v2692_v50 = vadd.f32 %v5223_v44, %v2253_v42  ;;  %v2245_v51 = vadd.f32 %v2244_v49, %v1184_v43  ;;  %v4574_v52 = vpop.f32.mrf.mxu0 }
 0x106   : > { %3713 = vst.msk [vmem:[%s5241_s17 + $0x50] sm:$0xf] %vm3692_vm3, %v4307_v45  ;;  %v3075_v54 = vsel %vm2818_vm11, %v2689_v38, %v2947_v46  ;;  %vm2816_vm12 = vcmp.gt.f32.partialorder %v2687_v48, 0.0  ;;  %v2945_v55 = vmul.f32 %v5228_v47, %v2687_v48  ;;  %v4704_v56 = vpop.f32.mrf.mxu1 }
 0x107   : > { %v4310_v58 = vpack.c.bf16 %v3075_v54, %v3075_v54  ;;  %vm2821_vm13 = vcmp.gt.f32.partialorder %v2692_v50, 0.0  ;;  %v2950_v59 = vmul.f32 %v5228_v47, %v2692_v50  ;;  %v2690_v60 = vadd.f32 %v5223_v44, %v2245_v51  ;;  %v1187_v61 = vpop.f32.mrf.mxu0 }
 0x108   : > { %v3073_v62 = vsel %vm2816_vm12, %v2687_v48, %v2945_v55  ;;  %v2256_v63 = vadd.f32 %v4704_v56, %v4574_v52  ;;  %v2247_v0 = vpop.f32.mrf.mxu1 }
 0x109   : > { %3716 = vst.msk [vmem:[%s5241_s17 + $0x5c] sm:$0xf] %vm3692_vm3, %v4310_v58  ;;  %v4308_v1 = vpack.c.bf16 %v3073_v62, %v3073_v62  ;;  %v3078_v2 = vsel %vm2821_vm13, %v2692_v50, %v2950_v59  ;;  %vm2819_vm14 = vcmp.gt.f32.partialorder %v2690_v60, 0.0  ;;  %v2948_v3 = vmul.f32 %v5228_v47, %v2690_v60  ;;  %v4577_v4 = vpop.f32.mrf.mxu0  ;;  %4672 = vmatmul.mubr.msk.bf16.gmra.mxu0 %vm857_vm1, %v4941_v53 }
 0x10a   : > { %v4313_v5 = vpack.c.bf16 %v3078_v2, %v3078_v2  ;;  %v2693_v6 = vadd.f32 %v5223_v44, %v2256_v63  ;;  %v2248_v7 = vadd.f32 %v2247_v0, %v1187_v61  ;;  %v4707_v8 = vpop.f32.mrf.mxu1  ;;  %4802 = vmatmul.mubr.msk.bf16.gmra.mxu1 %vm857_vm1, %v4942_v57 }
 0x10b   : > { %3714 = vst.msk [vmem:[%s5241_s17 + $0x54] sm:$0xf] %vm3692_vm3, %v4308_v1  ;;  %v3076_v9 = vsel %vm2819_vm14, %v2690_v60, %v2948_v3  ;;  %v2269_v10 = vadd.f32 %v4707_v8, %v4577_v4  ;;  %v1200_v11 = vpop.f32.mrf.mxu0 }
 0x10c   : > { %3719 = vst.msk [vmem:[%s5241_s17 + $0x68] sm:$0xf] %vm3692_vm3, %v4313_v5  ;;  %v4311_v12 = vpack.c.bf16 %v3076_v9, %v3076_v9  ;;  %vm2822_vm15 = vcmp.gt.f32.partialorder %v2693_v6, 0.0  ;;  %v2951_v13 = vmul.f32 %v5228_v47, %v2693_v6  ;;  %v2691_v14 = vadd.f32 %v5223_v44, %v2248_v7  ;;  %v2260_v15 = vpop.f32.mrf.mxu1 }
 0x10d   : > { %v2696_v16 = vadd.f32 %v5223_v44, %v2269_v10  ;;  %v2261_v17 = vadd.f32 %v2260_v15, %v1200_v11  ;;  %v4578_v18 = vpop.f32.mrf.mxu0 }
 0x10e   : > { %3717 = vst.msk [vmem:[%s5241_s17 + $0x60] sm:$0xf] %vm3692_vm3, %v4311_v12  ;;  %v3079_v19 = vsel %vm2822_vm15, %v2693_v6, %v2951_v13  ;;  %vm2820_vm1 = vcmp.gt.f32.partialorder %v2691_v14, 0.0  ;;  %v2949_v20 = vmul.f32 %v5228_v47, %v2691_v14  ;;  %v4708_v21 = vpop.f32.mrf.mxu1 }
 0x10f   : > { %v4314_v22 = vpack.c.bf16 %v3079_v19, %v3079_v19  ;;  %vm2825_vm0 = vcmp.gt.f32.partialorder %v2696_v16, 0.0  ;;  %v2954_v23 = vmul.f32 %v5228_v47, %v2696_v16  ;;  %v2694_v24 = vadd.f32 %v5223_v44, %v2261_v17  ;;  %v1203_v25 = vpop.f32.mrf.mxu0 }
 0x110   : > { %v3077_v26 = vsel %vm2820_vm1, %v2691_v14, %v2949_v20  ;;  %v2272_v27 = vadd.f32 %v4708_v21, %v4578_v18  ;;  %v2263_v28 = vpop.f32.mrf.mxu1 }
 0x111   : > { %3720 = vst.msk [vmem:[%s5241_s17 + $0x6c] sm:$0xf] %vm3692_vm3, %v4314_v22  ;;  %v4312_v29 = vpack.c.bf16 %v3077_v26, %v3077_v26  ;;  %v3082_v30 = vsel %vm2825_vm0, %v2696_v16, %v2954_v23  ;;  %vm2823_vm2 = vcmp.gt.f32.partialorder %v2694_v24, 0.0  ;;  %v2952_v31 = vmul.f32 %v5228_v47, %v2694_v24  ;;  %v4581_v32 = vpop.f32.mrf.mxu0 }
 0x112   : > { %v4317_v33 = vpack.c.bf16 %v3082_v30, %v3082_v30  ;;  %v2697_v34 = vadd.f32 %v5223_v44, %v2272_v27  ;;  %v2264_v35 = vadd.f32 %v2263_v28, %v1203_v25  ;;  %v4711_v36 = vpop.f32.mrf.mxu1 }
 0x113   : > { %3718 = vst.msk [vmem:[%s5241_s17 + $0x64] sm:$0xf] %vm3692_vm3, %v4312_v29  ;;  %v3080_v37 = vsel %vm2823_vm2, %v2694_v24, %v2952_v31  ;;  %v2285_v38 = vadd.f32 %v4711_v36, %v4581_v32  ;;  %v1216_v39 = vpop.f32.mrf.mxu0 }
 0x114   : > { %3723 = vst.msk [vmem:[%s5241_s17 + $0x78] sm:$0xf] %vm3692_vm3, %v4317_v33  ;;  %v4315_v40 = vpack.c.bf16 %v3080_v37, %v3080_v37  ;;  %vm2826_vm4 = vcmp.gt.f32.partialorder %v2697_v34, 0.0  ;;  %v2955_v41 = vmul.f32 %v5228_v47, %v2697_v34  ;;  %v2695_v42 = vadd.f32 %v5223_v44, %v2264_v35  ;;  %v2276_v43 = vpop.f32.mrf.mxu1 }
 0x115   : > { %v2700_v45 = vadd.f32 %v5223_v44, %v2285_v38  ;;  %v2277_v46 = vadd.f32 %v2276_v43, %v1216_v39  ;;  %v4582_v48 = vpop.f32.mrf.mxu0 }
 0x116   : > { %3721 = vst.msk [vmem:[%s5241_s17 + $0x70] sm:$0xf] %vm3692_vm3, %v4315_v40  ;;  %v3083_v49 = vsel %vm2826_vm4, %v2697_v34, %v2955_v41  ;;  %vm2824_vm5 = vcmp.gt.f32.partialorder %v2695_v42, 0.0  ;;  %v2953_v50 = vmul.f32 %v5228_v47, %v2695_v42  ;;  %v4712_v51 = vpop.f32.mrf.mxu1 }
 0x117   : > { %v4318_v52 = vpack.c.bf16 %v3083_v49, %v3083_v49  ;;  %vm2829_vm6 = vcmp.gt.f32.partialorder %v2700_v45, 0.0  ;;  %v2958_v53 = vmul.f32 %v5228_v47, %v2700_v45  ;;  %v2698_v54 = vadd.f32 %v5223_v44, %v2277_v46  ;;  %v1219_v55 = vpop.f32.mrf.mxu0 }
 0x118   : > { %v3081_v56 = vsel %vm2824_vm5, %v2695_v42, %v2953_v50  ;;  %v2288_v57 = vadd.f32 %v4712_v51, %v4582_v48  ;;  %v2279_v58 = vpop.f32.mrf.mxu1 }
 0x119   : > { %3724 = vst.msk [vmem:[%s5241_s17 + $0x7c] sm:$0xf] %vm3692_vm3, %v4318_v52  ;;  %v4316_v59 = vpack.c.bf16 %v3081_v56, %v3081_v56  ;;  %v3086_v60 = vsel %vm2829_vm6, %v2700_v45, %v2958_v53  ;;  %vm2827_vm7 = vcmp.gt.f32.partialorder %v2698_v54, 0.0  ;;  %v2956_v61 = vmul.f32 %v5228_v47, %v2698_v54  ;;  %v4585_v62 = vpop.f32.mrf.mxu0 }
 0x11a   : > { %v4321_v63 = vpack.c.bf16 %v3086_v60, %v3086_v60  ;;  %v2701_v0 = vadd.f32 %v5223_v44, %v2288_v57  ;;  %v2280_v1 = vadd.f32 %v2279_v58, %v1219_v55  ;;  %v4715_v2 = vpop.f32.mrf.mxu1 }
 0x11b   : > { %3722 = vst.msk [vmem:[%s5241_s17 + $0x74] sm:$0xf] %vm3692_vm3, %v4316_v59  ;;  %v3084_v3 = vsel %vm2827_vm7, %v2698_v54, %v2956_v61  ;;  %v2301_v4 = vadd.f32 %v4715_v2, %v4585_v62  ;;  %v1232_v5 = vpop.f32.mrf.mxu0 }
 0x11c   : > { %3727 = vst.msk [vmem:[%s5241_s17 + $0x88] sm:$0xf] %vm3692_vm3, %v4321_v63  ;;  %v4319_v6 = vpack.c.bf16 %v3084_v3, %v3084_v3  ;;  %vm2830_vm8 = vcmp.gt.f32.partialorder %v2701_v0, 0.0  ;;  %v2959_v7 = vmul.f32 %v5228_v47, %v2701_v0  ;;  %v2699_v8 = vadd.f32 %v5223_v44, %v2280_v1  ;;  %v2292_v9 = vpop.f32.mrf.mxu1 }
 0x11d   : > { %v2704_v10 = vadd.f32 %v5223_v44, %v2301_v4  ;;  %v2293_v11 = vadd.f32 %v2292_v9, %v1232_v5  ;;  %v4586_v12 = vpop.f32.mrf.mxu0 }
 0x11e   : > { %3725 = vst.msk [vmem:[%s5241_s17 + $0x80] sm:$0xf] %vm3692_vm3, %v4319_v6  ;;  %v3087_v13 = vsel %vm2830_vm8, %v2701_v0, %v2959_v7  ;;  %vm2828_vm9 = vcmp.gt.f32.partialorder %v2699_v8, 0.0  ;;  %v2957_v14 = vmul.f32 %v5228_v47, %v2699_v8  ;;  %v4716_v15 = vpop.f32.mrf.mxu1 }
 0x11f   : > { %v4322_v16 = vpack.c.bf16 %v3087_v13, %v3087_v13  ;;  %vm2833_vm10 = vcmp.gt.f32.partialorder %v2704_v10, 0.0  ;;  %v2962_v17 = vmul.f32 %v5228_v47, %v2704_v10  ;;  %v2702_v18 = vadd.f32 %v5223_v44, %v2293_v11  ;;  %v1235_v19 = vpop.f32.mrf.mxu0 }
 0x120   : > { %v3085_v20 = vsel %vm2828_vm9, %v2699_v8, %v2957_v14  ;;  %v2304_v21 = vadd.f32 %v4716_v15, %v4586_v12  ;;  %v2295_v22 = vpop.f32.mrf.mxu1 }
 0x121   : > { %3728 = vst.msk [vmem:[%s5241_s17 + $0x8c] sm:$0xf] %vm3692_vm3, %v4322_v16  ;;  %v4320_v23 = vpack.c.bf16 %v3085_v20, %v3085_v20  ;;  %v3090_v24 = vsel %vm2833_vm10, %v2704_v10, %v2962_v17  ;;  %vm2831_vm11 = vcmp.gt.f32.partialorder %v2702_v18, 0.0  ;;  %v2960_v25 = vmul.f32 %v5228_v47, %v2702_v18  ;;  %v4589_v26 = vpop.f32.mrf.mxu0 }
 0x122   : > { %v4325_v27 = vpack.c.bf16 %v3090_v24, %v3090_v24  ;;  %v2705_v28 = vadd.f32 %v5223_v44, %v2304_v21  ;;  %v2296_v29 = vadd.f32 %v2295_v22, %v1235_v19  ;;  %v4719_v30 = vpop.f32.mrf.mxu1 }
 0x123   : > { %3726 = vst.msk [vmem:[%s5241_s17 + $0x84] sm:$0xf] %vm3692_vm3, %v4320_v23  ;;  %v3088_v31 = vsel %vm2831_vm11, %v2702_v18, %v2960_v25  ;;  %v2317_v32 = vadd.f32 %v4719_v30, %v4589_v26  ;;  %v1248_v33 = vpop.f32.mrf.mxu0 }
 0x124   : > { %3731 = vst.msk [vmem:[%s5241_s17 + $0x98] sm:$0xf] %vm3692_vm3, %v4325_v27  ;;  %v4323_v34 = vpack.c.bf16 %v3088_v31, %v3088_v31  ;;  %vm2834_vm12 = vcmp.gt.f32.partialorder %v2705_v28, 0.0  ;;  %v2963_v35 = vmul.f32 %v5228_v47, %v2705_v28  ;;  %v2703_v36 = vadd.f32 %v5223_v44, %v2296_v29  ;;  %v2308_v37 = vpop.f32.mrf.mxu1 }
 0x125   : > { %v2708_v38 = vadd.f32 %v5223_v44, %v2317_v32  ;;  %v2309_v39 = vadd.f32 %v2308_v37, %v1248_v33  ;;  %v4590_v40 = vpop.f32.mrf.mxu0 }
 0x126   : > { %3729 = vst.msk [vmem:[%s5241_s17 + $0x90] sm:$0xf] %vm3692_vm3, %v4323_v34  ;;  %v3091_v41 = vsel %vm2834_vm12, %v2705_v28, %v2963_v35  ;;  %vm2832_vm13 = vcmp.gt.f32.partialorder %v2703_v36, 0.0  ;;  %v2961_v42 = vmul.f32 %v5228_v47, %v2703_v36  ;;  %v4720_v43 = vpop.f32.mrf.mxu1 }
 0x127   : > { %v4326_v45 = vpack.c.bf16 %v3091_v41, %v3091_v41  ;;  %vm2837_vm14 = vcmp.gt.f32.partialorder %v2708_v38, 0.0  ;;  %v2966_v46 = vmul.f32 %v5228_v47, %v2708_v38  ;;  %v2706_v48 = vadd.f32 %v5223_v44, %v2309_v39  ;;  %v1251_v49 = vpop.f32.mrf.mxu0 }
 0x128   : > { %v3089_v50 = vsel %vm2832_vm13, %v2703_v36, %v2961_v42  ;;  %v2320_v51 = vadd.f32 %v4720_v43, %v4590_v40  ;;  %v2311_v52 = vpop.f32.mrf.mxu1 }
 0x129   : > { %3732 = vst.msk [vmem:[%s5241_s17 + $0x9c] sm:$0xf] %vm3692_vm3, %v4326_v45  ;;  %v4324_v53 = vpack.c.bf16 %v3089_v50, %v3089_v50  ;;  %v3094_v54 = vsel %vm2837_vm14, %v2708_v38, %v2966_v46  ;;  %vm2835_vm15 = vcmp.gt.f32.partialorder %v2706_v48, 0.0  ;;  %v2964_v55 = vmul.f32 %v5228_v47, %v2706_v48  ;;  %v4593_v56 = vpop.f32.mrf.mxu0 }
 0x12a   : > { %v4329_v57 = vpack.c.bf16 %v3094_v54, %v3094_v54  ;;  %v2709_v58 = vadd.f32 %v5223_v44, %v2320_v51  ;;  %v2312_v59 = vadd.f32 %v2311_v52, %v1251_v49  ;;  %v4723_v60 = vpop.f32.mrf.mxu1 }
 0x12b   : > { %3730 = vst.msk [vmem:[%s5241_s17 + $0x94] sm:$0xf] %vm3692_vm3, %v4324_v53  ;;  %v3092_v61 = vsel %vm2835_vm15, %v2706_v48, %v2964_v55  ;;  %v2333_v62 = vadd.f32 %v4723_v60, %v4593_v56  ;;  %v1264_v63 = vpop.f32.mrf.mxu0  ;;  %v5491_v60 = vld [vmem:[%s5817_s4] ss:$0 sm:$0xff] }
 0x12c   : > { %3735 = vst.msk [vmem:[%s5241_s17 + $0xa8] sm:$0xf] %vm3692_vm3, %v4329_v57  ;;  %v4327_v0 = vpack.c.bf16 %v3092_v61, %v3092_v61  ;;  %vm2838_vm1 = vcmp.gt.f32.partialorder %v2709_v58, 0.0  ;;  %v2967_v1 = vmul.f32 %v5228_v47, %v2709_v58  ;;  %v2707_v2 = vadd.f32 %v5223_v44, %v2312_v59  ;;  %v2324_v3 = vpop.f32.mrf.mxu1 }
 0x12d   : > { %v2712_v4 = vadd.f32 %v5223_v44, %v2333_v62  ;;  %v2325_v5 = vadd.f32 %v2324_v3, %v1264_v63  ;;  %v4594_v6 = vpop.f32.mrf.mxu0 }
 0x12e   : > { %3733 = vst.msk [vmem:[%s5241_s17 + $0xa0] sm:$0xf] %vm3692_vm3, %v4327_v0  ;;  %v3095_v7 = vsel %vm2838_vm1, %v2709_v58, %v2967_v1  ;;  %vm2836_vm0 = vcmp.gt.f32.partialorder %v2707_v2, 0.0  ;;  %v2965_v8 = vmul.f32 %v5228_v47, %v2707_v2  ;;  %v4724_v9 = vpop.f32.mrf.mxu1 }
 0x12f   : > { %v4330_v10 = vpack.c.bf16 %v3095_v7, %v3095_v7  ;;  %vm2841_vm2 = vcmp.gt.f32.partialorder %v2712_v4, 0.0  ;;  %v2970_v11 = vmul.f32 %v5228_v47, %v2712_v4  ;;  %v2710_v12 = vadd.f32 %v5223_v44, %v2325_v5  ;;  %v1267_v13 = vpop.f32.mrf.mxu0 }
 0x130   : > { %v3093_v14 = vsel %vm2836_vm0, %v2707_v2, %v2965_v8  ;;  %v2336_v15 = vadd.f32 %v4724_v9, %v4594_v6  ;;  %v2327_v16 = vpop.f32.mrf.mxu1 }
 0x131   : > { %3736 = vst.msk [vmem:[%s5241_s17 + $0xac] sm:$0xf] %vm3692_vm3, %v4330_v10  ;;  %v4328_v17 = vpack.c.bf16 %v3093_v14, %v3093_v14  ;;  %v3098_v18 = vsel %vm2841_vm2, %v2712_v4, %v2970_v11  ;;  %vm2839_vm4 = vcmp.gt.f32.partialorder %v2710_v12, 0.0  ;;  %v2968_v19 = vmul.f32 %v5228_v47, %v2710_v12  ;;  %v4597_v20 = vpop.f32.mrf.mxu0 }
 0x132   : > { %v4333_v21 = vpack.c.bf16 %v3098_v18, %v3098_v18  ;;  %v2713_v22 = vadd.f32 %v5223_v44, %v2336_v15  ;;  %v2328_v23 = vadd.f32 %v2327_v16, %v1267_v13  ;;  %v4727_v24 = vpop.f32.mrf.mxu1 }
 0x133   : > { %3734 = vst.msk [vmem:[%s5241_s17 + $0xa4] sm:$0xf] %vm3692_vm3, %v4328_v17  ;;  %v3096_v25 = vsel %vm2839_vm4, %v2710_v12, %v2968_v19  ;;  %v2349_v26 = vadd.f32 %v4727_v24, %v4597_v20  ;;  %v1280_v27 = vpop.f32.mrf.mxu0 }
 0x134   : > { %3739 = vst.msk [vmem:[%s5241_s17 + $0xb8] sm:$0xf] %vm3692_vm3, %v4333_v21  ;;  %v4331_v28 = vpack.c.bf16 %v3096_v25, %v3096_v25  ;;  %vm2842_vm5 = vcmp.gt.f32.partialorder %v2713_v22, 0.0  ;;  %v2971_v29 = vmul.f32 %v5228_v47, %v2713_v22  ;;  %v2711_v30 = vadd.f32 %v5223_v44, %v2328_v23  ;;  %v2340_v31 = vpop.f32.mrf.mxu1 }
 0x135   : > { %v2716_v32 = vadd.f32 %v5223_v44, %v2349_v26  ;;  %v2341_v33 = vadd.f32 %v2340_v31, %v1280_v27  ;;  %v4598_v34 = vpop.f32.mrf.mxu0 }
 0x136   : > { %3737 = vst.msk [vmem:[%s5241_s17 + $0xb0] sm:$0xf] %vm3692_vm3, %v4331_v28  ;;  %v3099_v35 = vsel %vm2842_vm5, %v2713_v22, %v2971_v29  ;;  %vm2840_vm6 = vcmp.gt.f32.partialorder %v2711_v30, 0.0  ;;  %v2969_v36 = vmul.f32 %v5228_v47, %v2711_v30  ;;  %v4728_v37 = vpop.f32.mrf.mxu1 }
 0x137   : > { %v4334_v38 = vpack.c.bf16 %v3099_v35, %v3099_v35  ;;  %vm2845_vm7 = vcmp.gt.f32.partialorder %v2716_v32, 0.0  ;;  %v2974_v39 = vmul.f32 %v5228_v47, %v2716_v32  ;;  %v2714_v40 = vadd.f32 %v5223_v44, %v2341_v33  ;;  %v1283_v41 = vpop.f32.mrf.mxu0 }
 0x138   : > { %v3097_v42 = vsel %vm2840_vm6, %v2711_v30, %v2969_v36  ;;  %v2352_v43 = vadd.f32 %v4728_v37, %v4598_v34  ;;  %v2343_v45 = vpop.f32.mrf.mxu1 }
 0x139   : > { %3740 = vst.msk [vmem:[%s5241_s17 + $0xbc] sm:$0xf] %vm3692_vm3, %v4334_v38  ;;  %v4332_v46 = vpack.c.bf16 %v3097_v42, %v3097_v42  ;;  %v3102_v48 = vsel %vm2845_vm7, %v2716_v32, %v2974_v39  ;;  %vm2843_vm8 = vcmp.gt.f32.partialorder %v2714_v40, 0.0  ;;  %v2972_v49 = vmul.f32 %v5228_v47, %v2714_v40  ;;  %v4601_v50 = vpop.f32.mrf.mxu0 }
 0x13a   : > { %v4337_v51 = vpack.c.bf16 %v3102_v48, %v3102_v48  ;;  %v2717_v52 = vadd.f32 %v5223_v44, %v2352_v43  ;;  %v2344_v53 = vadd.f32 %v2343_v45, %v1283_v41  ;;  %v4731_v54 = vpop.f32.mrf.mxu1 }
 0x13b   : > { %3738 = vst.msk [vmem:[%s5241_s17 + $0xb4] sm:$0xf] %vm3692_vm3, %v4332_v46  ;;  %v3100_v55 = vsel %vm2843_vm8, %v2714_v40, %v2972_v49  ;;  %v2365_v56 = vadd.f32 %v4731_v54, %v4601_v50  ;;  %v1296_v57 = vpop.f32.mrf.mxu0 }
 0x13c   : > { %3743 = vst.msk [vmem:[%s5241_s17 + $0xc8] sm:$0xf] %vm3692_vm3, %v4337_v51  ;;  %v4335_v58 = vpack.c.bf16 %v3100_v55, %v3100_v55  ;;  %vm2846_vm9 = vcmp.gt.f32.partialorder %v2717_v52, 0.0  ;;  %v2975_v59 = vmul.f32 %v5228_v47, %v2717_v52  ;;  %v2715_v44 = vadd.f32 %v5491_v60, %v2344_v53  ;;  %v2356_v61 = vpop.f32.mrf.mxu1 }
 0x13d   : > { %v2720_v62 = vadd.f32 %v5491_v60, %v2365_v56  ;;  %v2357_v63 = vadd.f32 %v2356_v61, %v1296_v57  ;;  %v4602_v0 = vpop.f32.mrf.mxu0 }
 0x13e   : > { %3741 = vst.msk [vmem:[%s5241_s17 + $0xc0] sm:$0xf] %vm3692_vm3, %v4335_v58  ;;  %v3103_v1 = vsel %vm2846_vm9, %v2717_v52, %v2975_v59  ;;  %vm2844_vm10 = vcmp.gt.f32.partialorder %v2715_v44, 0.0  ;;  %v2973_v2 = vmul.f32 %v5228_v47, %v2715_v44  ;;  %v4732_v3 = vpop.f32.mrf.mxu1 }
 0x13f   : > { %v4338_v4 = vpack.c.bf16 %v3103_v1, %v3103_v1  ;;  %vm2849_vm11 = vcmp.gt.f32.partialorder %v2720_v62, 0.0  ;;  %v2978_v5 = vmul.f32 %v5228_v47, %v2720_v62  ;;  %v2718_v6 = vadd.f32 %v5491_v60, %v2357_v63  ;;  %v1299_v7 = vpop.f32.mrf.mxu0 }
 0x140   : > { %v3101_v8 = vsel %vm2844_vm10, %v2715_v44, %v2973_v2  ;;  %v2368_v9 = vadd.f32 %v4732_v3, %v4602_v0  ;;  %v2359_v10 = vpop.f32.mrf.mxu1 }
 0x141   : > { %3744 = vst.msk [vmem:[%s5241_s17 + $0xcc] sm:$0xf] %vm3692_vm3, %v4338_v4  ;;  %v4336_v11 = vpack.c.bf16 %v3101_v8, %v3101_v8  ;;  %v3106_v12 = vsel %vm2849_vm11, %v2720_v62, %v2978_v5  ;;  %vm2847_vm12 = vcmp.gt.f32.partialorder %v2718_v6, 0.0  ;;  %v2976_v13 = vmul.f32 %v5228_v47, %v2718_v6  ;;  %v4605_v14 = vpop.f32.mrf.mxu0 }
 0x142   : > { %v4341_v15 = vpack.c.bf16 %v3106_v12, %v3106_v12  ;;  %v2721_v16 = vadd.f32 %v5491_v60, %v2368_v9  ;;  %v2360_v17 = vadd.f32 %v2359_v10, %v1299_v7  ;;  %v4735_v18 = vpop.f32.mrf.mxu1 }
 0x143   : > { %3742 = vst.msk [vmem:[%s5241_s17 + $0xc4] sm:$0xf] %vm3692_vm3, %v4336_v11  ;;  %v3104_v19 = vsel %vm2847_vm12, %v2718_v6, %v2976_v13  ;;  %v2381_v20 = vadd.f32 %v4735_v18, %v4605_v14  ;;  %v1312_v21 = vpop.f32.mrf.mxu0 }
 0x144   : > { %3747 = vst.msk [vmem:[%s5241_s17 + $0xd8] sm:$0xf] %vm3692_vm3, %v4341_v15  ;;  %v4339_v22 = vpack.c.bf16 %v3104_v19, %v3104_v19  ;;  %vm2850_vm13 = vcmp.gt.f32.partialorder %v2721_v16, 0.0  ;;  %v2979_v23 = vmul.f32 %v5228_v47, %v2721_v16  ;;  %v2719_v24 = vadd.f32 %v5491_v60, %v2360_v17  ;;  %v2372_v25 = vpop.f32.mrf.mxu1 }
 0x145   : > { %v2724_v26 = vadd.f32 %v5491_v60, %v2381_v20  ;;  %v2373_v27 = vadd.f32 %v2372_v25, %v1312_v21  ;;  %v4606_v28 = vpop.f32.mrf.mxu0 }
 0x146   : > { %3745 = vst.msk [vmem:[%s5241_s17 + $0xd0] sm:$0xf] %vm3692_vm3, %v4339_v22  ;;  %v3107_v29 = vsel %vm2850_vm13, %v2721_v16, %v2979_v23  ;;  %vm2848_vm14 = vcmp.gt.f32.partialorder %v2719_v24, 0.0  ;;  %v2977_v30 = vmul.f32 %v5228_v47, %v2719_v24  ;;  %v4736_v31 = vpop.f32.mrf.mxu1 }
 0x147   : > { %v4342_v32 = vpack.c.bf16 %v3107_v29, %v3107_v29  ;;  %vm2853_vm15 = vcmp.gt.f32.partialorder %v2724_v26, 0.0  ;;  %v2982_v33 = vmul.f32 %v5228_v47, %v2724_v26  ;;  %v2722_v34 = vadd.f32 %v5491_v60, %v2373_v27  ;;  %v1315_v35 = vpop.f32.mrf.mxu0 }
 0x148   : > { %v3105_v36 = vsel %vm2848_vm14, %v2719_v24, %v2977_v30  ;;  %v2384_v37 = vadd.f32 %v4736_v31, %v4606_v28  ;;  %v2375_v38 = vpop.f32.mrf.mxu1 }
 0x149   : > { %3748 = vst.msk [vmem:[%s5241_s17 + $0xdc] sm:$0xf] %vm3692_vm3, %v4342_v32  ;;  %v4340_v39 = vpack.c.bf16 %v3105_v36, %v3105_v36  ;;  %v3110_v40 = vsel %vm2853_vm15, %v2724_v26, %v2982_v33  ;;  %vm2851_vm1 = vcmp.gt.f32.partialorder %v2722_v34, 0.0  ;;  %v2980_v41 = vmul.f32 %v5228_v47, %v2722_v34  ;;  %v4609_v42 = vpop.f32.mrf.mxu0 }
 0x14a   : > { %v4345_v43 = vpack.c.bf16 %v3110_v40, %v3110_v40  ;;  %v2725_v45 = vadd.f32 %v5491_v60, %v2384_v37  ;;  %v2376_v46 = vadd.f32 %v2375_v38, %v1315_v35  ;;  %v4739_v48 = vpop.f32.mrf.mxu1 }
 0x14b   : > { %3746 = vst.msk [vmem:[%s5241_s17 + $0xd4] sm:$0xf] %vm3692_vm3, %v4340_v39  ;;  %v3108_v49 = vsel %vm2851_vm1, %v2722_v34, %v2980_v41  ;;  %v2397_v50 = vadd.f32 %v4739_v48, %v4609_v42  ;;  %v1328_v51 = vpop.f32.mrf.mxu0 }
 0x14c   : > { %3751 = vst.msk [vmem:[%s5241_s17 + $0xe8] sm:$0xf] %vm3692_vm3, %v4345_v43  ;;  %v4343_v52 = vpack.c.bf16 %v3108_v49, %v3108_v49  ;;  %vm2854_vm0 = vcmp.gt.f32.partialorder %v2725_v45, 0.0  ;;  %v2983_v53 = vmul.f32 %v5228_v47, %v2725_v45  ;;  %v2723_v54 = vadd.f32 %v5491_v60, %v2376_v46  ;;  %v2388_v55 = vpop.f32.mrf.mxu1 }
 0x14d   : > { %v2728_v56 = vadd.f32 %v5491_v60, %v2397_v50  ;;  %v2389_v57 = vadd.f32 %v2388_v55, %v1328_v51  ;;  %v4610_v58 = vpop.f32.mrf.mxu0 }
 0x14e   : > { %3749 = vst.msk [vmem:[%s5241_s17 + $0xe0] sm:$0xf] %vm3692_vm3, %v4343_v52  ;;  %v3111_v59 = vsel %vm2854_vm0, %v2725_v45, %v2983_v53  ;;  %vm2852_vm2 = vcmp.gt.f32.partialorder %v2723_v54, 0.0  ;;  %v2981_v44 = vmul.f32 %v5228_v47, %v2723_v54  ;;  %v4740_v61 = vpop.f32.mrf.mxu1 }
 0x14f   : > { %v4346_v62 = vpack.c.bf16 %v3111_v59, %v3111_v59  ;;  %vm2857_vm4 = vcmp.gt.f32.partialorder %v2728_v56, 0.0  ;;  %v2986_v63 = vmul.f32 %v5228_v47, %v2728_v56  ;;  %v2726_v0 = vadd.f32 %v5491_v60, %v2389_v57  ;;  %v1331_v1 = vpop.f32.mrf.mxu0 }
 0x150   : > { %v3109_v2 = vsel %vm2852_vm2, %v2723_v54, %v2981_v44  ;;  %v2400_v3 = vadd.f32 %v4740_v61, %v4610_v58  ;;  %v2391_v4 = vpop.f32.mrf.mxu1 }
 0x151   : > { %3752 = vst.msk [vmem:[%s5241_s17 + $0xec] sm:$0xf] %vm3692_vm3, %v4346_v62  ;;  %v4344_v5 = vpack.c.bf16 %v3109_v2, %v3109_v2  ;;  %v3114_v6 = vsel %vm2857_vm4, %v2728_v56, %v2986_v63  ;;  %vm2855_vm5 = vcmp.gt.f32.partialorder %v2726_v0, 0.0  ;;  %v2984_v7 = vmul.f32 %v5228_v47, %v2726_v0  ;;  %v4613_v8 = vpop.f32.mrf.mxu0 }
 0x152   : > { %v4349_v9 = vpack.c.bf16 %v3114_v6, %v3114_v6  ;;  %v2729_v10 = vadd.f32 %v5491_v60, %v2400_v3  ;;  %v2392_v11 = vadd.f32 %v2391_v4, %v1331_v1  ;;  %v4743_v12 = vpop.f32.mrf.mxu1 }
 0x153   : > { %3750 = vst.msk [vmem:[%s5241_s17 + $0xe4] sm:$0xf] %vm3692_vm3, %v4344_v5  ;;  %v3112_v13 = vsel %vm2855_vm5, %v2726_v0, %v2984_v7  ;;  %v2413_v14 = vadd.f32 %v4743_v12, %v4613_v8  ;;  %v1344_v15 = vpop.f32.mrf.mxu0 }
 0x154   : > { %3755 = vst.msk [vmem:[%s5241_s17 + $0xf8] sm:$0xf] %vm3692_vm3, %v4349_v9  ;;  %v4347_v16 = vpack.c.bf16 %v3112_v13, %v3112_v13  ;;  %vm2858_vm6 = vcmp.gt.f32.partialorder %v2729_v10, 0.0  ;;  %v2987_v17 = vmul.f32 %v5228_v47, %v2729_v10  ;;  %v2727_v18 = vadd.f32 %v5491_v60, %v2392_v11  ;;  %v2404_v19 = vpop.f32.mrf.mxu1 }
 0x155   : > { %v2732_v20 = vadd.f32 %v5491_v60, %v2413_v14  ;;  %v2405_v21 = vadd.f32 %v2404_v19, %v1344_v15  ;;  %v4614_v22 = vpop.f32.mrf.mxu0 }
 0x156   : > { %3753 = vst.msk [vmem:[%s5241_s17 + $0xf0] sm:$0xf] %vm3692_vm3, %v4347_v16  ;;  %v3115_v23 = vsel %vm2858_vm6, %v2729_v10, %v2987_v17  ;;  %vm2856_vm7 = vcmp.gt.f32.partialorder %v2727_v18, 0.0  ;;  %v2985_v24 = vmul.f32 %v5228_v47, %v2727_v18  ;;  %v4744_v25 = vpop.f32.mrf.mxu1 }
 0x157   : > { %v4350_v26 = vpack.c.bf16 %v3115_v23, %v3115_v23  ;;  %vm2861_vm8 = vcmp.gt.f32.partialorder %v2732_v20, 0.0  ;;  %v2990_v27 = vmul.f32 %v5228_v47, %v2732_v20  ;;  %v2730_v28 = vadd.f32 %v5491_v60, %v2405_v21  ;;  %v1347_v29 = vpop.f32.mrf.mxu0 }
 0x158   : > { %v3113_v30 = vsel %vm2856_vm7, %v2727_v18, %v2985_v24  ;;  %v2416_v31 = vadd.f32 %v4744_v25, %v4614_v22  ;;  %v2407_v32 = vpop.f32.mrf.mxu1 }
 0x159   : > { %3756 = vst.msk [vmem:[%s5241_s17 + $0xfc] sm:$0xf] %vm3692_vm3, %v4350_v26  ;;  %v4348_v33 = vpack.c.bf16 %v3113_v30, %v3113_v30  ;;  %v3118_v34 = vsel %vm2861_vm8, %v2732_v20, %v2990_v27  ;;  %vm2859_vm9 = vcmp.gt.f32.partialorder %v2730_v28, 0.0  ;;  %v2988_v35 = vmul.f32 %v5228_v47, %v2730_v28  ;;  %v4617_v36 = vpop.f32.mrf.mxu0 }
 0x15a   : > { %v4353_v37 = vpack.c.bf16 %v3118_v34, %v3118_v34  ;;  %v2733_v38 = vadd.f32 %v5491_v60, %v2416_v31  ;;  %v2408_v39 = vadd.f32 %v2407_v32, %v1347_v29  ;;  %v4747_v40 = vpop.f32.mrf.mxu1 }
 0x15b   : > { %3754 = vst.msk [vmem:[%s5241_s17 + $0xf4] sm:$0xf] %vm3692_vm3, %v4348_v33  ;;  %v3116_v41 = vsel %vm2859_vm9, %v2730_v28, %v2988_v35  ;;  %v2429_v42 = vadd.f32 %v4747_v40, %v4617_v36  ;;  %v1360_v43 = vpop.f32.mrf.mxu0 }
 0x15c   : > { %3759 = vst.msk [vmem:[%s5241_s17 + $0x108] sm:$0xf] %vm3692_vm3, %v4353_v37  ;;  %v4351_v45 = vpack.c.bf16 %v3116_v41, %v3116_v41  ;;  %vm2862_vm10 = vcmp.gt.f32.partialorder %v2733_v38, 0.0  ;;  %v2991_v46 = vmul.f32 %v5228_v47, %v2733_v38  ;;  %v2731_v48 = vadd.f32 %v5491_v60, %v2408_v39  ;;  %v2420_v49 = vpop.f32.mrf.mxu1 }
 0x15d   : > { %v2736_v50 = vadd.f32 %v5491_v60, %v2429_v42  ;;  %v2421_v51 = vadd.f32 %v2420_v49, %v1360_v43  ;;  %v4618_v52 = vpop.f32.mrf.mxu0 }
 0x15e   : > { %3757 = vst.msk [vmem:[%s5241_s17 + $0x100] sm:$0xf] %vm3692_vm3, %v4351_v45  ;;  %v3119_v53 = vsel %vm2862_vm10, %v2733_v38, %v2991_v46  ;;  %vm2860_vm11 = vcmp.gt.f32.partialorder %v2731_v48, 0.0  ;;  %v2989_v54 = vmul.f32 %v5228_v47, %v2731_v48  ;;  %v4748_v55 = vpop.f32.mrf.mxu1 }
 0x15f   : > { %v4354_v56 = vpack.c.bf16 %v3119_v53, %v3119_v53  ;;  %vm2865_vm12 = vcmp.gt.f32.partialorder %v2736_v50, 0.0  ;;  %v2994_v57 = vmul.f32 %v5228_v47, %v2736_v50  ;;  %v2734_v58 = vadd.f32 %v5491_v60, %v2421_v51  ;;  %v1363_v59 = vpop.f32.mrf.mxu0 }
 0x160   : > { %v3117_v44 = vsel %vm2860_vm11, %v2731_v48, %v2989_v54  ;;  %v2432_v61 = vadd.f32 %v4748_v55, %v4618_v52  ;;  %v2423_v62 = vpop.f32.mrf.mxu1 }
 0x161   : > { %3760 = vst.msk [vmem:[%s5241_s17 + $0x10c] sm:$0xf] %vm3692_vm3, %v4354_v56  ;;  %v4352_v63 = vpack.c.bf16 %v3117_v44, %v3117_v44  ;;  %v3122_v0 = vsel %vm2865_vm12, %v2736_v50, %v2994_v57  ;;  %vm2863_vm13 = vcmp.gt.f32.partialorder %v2734_v58, 0.0  ;;  %v2992_v1 = vmul.f32 %v5228_v47, %v2734_v58  ;;  %v4621_v2 = vpop.f32.mrf.mxu0 }
 0x162   : > { %v4357_v3 = vpack.c.bf16 %v3122_v0, %v3122_v0  ;;  %v2737_v4 = vadd.f32 %v5491_v60, %v2432_v61  ;;  %v2424_v5 = vadd.f32 %v2423_v62, %v1363_v59  ;;  %v4751_v6 = vpop.f32.mrf.mxu1 }
 0x163   : > { %3758 = vst.msk [vmem:[%s5241_s17 + $0x104] sm:$0xf] %vm3692_vm3, %v4352_v63  ;;  %v3120_v7 = vsel %vm2863_vm13, %v2734_v58, %v2992_v1  ;;  %v2445_v8 = vadd.f32 %v4751_v6, %v4621_v2  ;;  %v1376_v9 = vpop.f32.mrf.mxu0 }
 0x164   : > { %3763 = vst.msk [vmem:[%s5241_s17 + $0x118] sm:$0xf] %vm3692_vm3, %v4357_v3  ;;  %v4355_v10 = vpack.c.bf16 %v3120_v7, %v3120_v7  ;;  %vm2866_vm14 = vcmp.gt.f32.partialorder %v2737_v4, 0.0  ;;  %v2995_v11 = vmul.f32 %v5228_v47, %v2737_v4  ;;  %v2735_v12 = vadd.f32 %v5491_v60, %v2424_v5  ;;  %v2436_v13 = vpop.f32.mrf.mxu1 }
 0x165   : > { %v2740_v14 = vadd.f32 %v5491_v60, %v2445_v8  ;;  %v2437_v15 = vadd.f32 %v2436_v13, %v1376_v9  ;;  %v4622_v16 = vpop.f32.mrf.mxu0 }
 0x166   : > { %3761 = vst.msk [vmem:[%s5241_s17 + $0x110] sm:$0xf] %vm3692_vm3, %v4355_v10  ;;  %v3123_v17 = vsel %vm2866_vm14, %v2737_v4, %v2995_v11  ;;  %vm2864_vm15 = vcmp.gt.f32.partialorder %v2735_v12, 0.0  ;;  %v2993_v18 = vmul.f32 %v5228_v47, %v2735_v12  ;;  %v4752_v19 = vpop.f32.mrf.mxu1 }
 0x167   : > { %v4358_v20 = vpack.c.bf16 %v3123_v17, %v3123_v17  ;;  %vm2869_vm1 = vcmp.gt.f32.partialorder %v2740_v14, 0.0  ;;  %v2998_v21 = vmul.f32 %v5228_v47, %v2740_v14  ;;  %v2738_v22 = vadd.f32 %v5491_v60, %v2437_v15  ;;  %v1379_v23 = vpop.f32.mrf.mxu0 }
 0x168   : > { %v3121_v24 = vsel %vm2864_vm15, %v2735_v12, %v2993_v18  ;;  %v2448_v25 = vadd.f32 %v4752_v19, %v4622_v16  ;;  %v2439_v26 = vpop.f32.mrf.mxu1 }
 0x169   : > { %3764 = vst.msk [vmem:[%s5241_s17 + $0x11c] sm:$0xf] %vm3692_vm3, %v4358_v20  ;;  %v4356_v27 = vpack.c.bf16 %v3121_v24, %v3121_v24  ;;  %v3126_v28 = vsel %vm2869_vm1, %v2740_v14, %v2998_v21  ;;  %vm2867_vm0 = vcmp.gt.f32.partialorder %v2738_v22, 0.0  ;;  %v2996_v29 = vmul.f32 %v5228_v47, %v2738_v22  ;;  %v4625_v30 = vpop.f32.mrf.mxu0 }
 0x16a   : > { %v4361_v31 = vpack.c.bf16 %v3126_v28, %v3126_v28  ;;  %v2741_v32 = vadd.f32 %v5491_v60, %v2448_v25  ;;  %v2440_v33 = vadd.f32 %v2439_v26, %v1379_v23  ;;  %v4755_v34 = vpop.f32.mrf.mxu1 }
 0x16b   : > { %3762 = vst.msk [vmem:[%s5241_s17 + $0x114] sm:$0xf] %vm3692_vm3, %v4356_v27  ;;  %v3124_v35 = vsel %vm2867_vm0, %v2738_v22, %v2996_v29  ;;  %v2461_v36 = vadd.f32 %v4755_v34, %v4625_v30  ;;  %v1392_v37 = vpop.f32.mrf.mxu0 }
 0x16c   : > { %3767 = vst.msk [vmem:[%s5241_s17 + $0x128] sm:$0xf] %vm3692_vm3, %v4361_v31  ;;  %v4359_v38 = vpack.c.bf16 %v3124_v35, %v3124_v35  ;;  %vm2870_vm2 = vcmp.gt.f32.partialorder %v2741_v32, 0.0  ;;  %v2999_v39 = vmul.f32 %v5228_v47, %v2741_v32  ;;  %v2739_v40 = vadd.f32 %v5491_v60, %v2440_v33  ;;  %v2452_v41 = vpop.f32.mrf.mxu1 }
 0x16d   : > { %v2744_v42 = vadd.f32 %v5491_v60, %v2461_v36  ;;  %v2453_v43 = vadd.f32 %v2452_v41, %v1392_v37  ;;  %v4626_v45 = vpop.f32.mrf.mxu0 }
 0x16e   : > { %3765 = vst.msk [vmem:[%s5241_s17 + $0x120] sm:$0xf] %vm3692_vm3, %v4359_v38  ;;  %v3127_v46 = vsel %vm2870_vm2, %v2741_v32, %v2999_v39  ;;  %vm2868_vm4 = vcmp.gt.f32.partialorder %v2739_v40, 0.0  ;;  %v2997_v48 = vmul.f32 %v5228_v47, %v2739_v40  ;;  %v4756_v49 = vpop.f32.mrf.mxu1 }
 0x16f   : > { %v4362_v50 = vpack.c.bf16 %v3127_v46, %v3127_v46  ;;  %vm2873_vm5 = vcmp.gt.f32.partialorder %v2744_v42, 0.0  ;;  %v3002_v51 = vmul.f32 %v5228_v47, %v2744_v42  ;;  %v2742_v52 = vadd.f32 %v5491_v60, %v2453_v43  ;;  %v1395_v53 = vpop.f32.mrf.mxu0 }
 0x170   : > { %v3125_v54 = vsel %vm2868_vm4, %v2739_v40, %v2997_v48  ;;  %v2464_v55 = vadd.f32 %v4756_v49, %v4626_v45  ;;  %v2455_v56 = vpop.f32.mrf.mxu1 }
 0x171   : > { %3768 = vst.msk [vmem:[%s5241_s17 + $0x12c] sm:$0xf] %vm3692_vm3, %v4362_v50  ;;  %v4360_v57 = vpack.c.bf16 %v3125_v54, %v3125_v54  ;;  %v3130_v58 = vsel %vm2873_vm5, %v2744_v42, %v3002_v51  ;;  %vm2871_vm6 = vcmp.gt.f32.partialorder %v2742_v52, 0.0  ;;  %v3000_v59 = vmul.f32 %v5228_v47, %v2742_v52  ;;  %v4629_v44 = vpop.f32.mrf.mxu0 }
 0x172   : > { %v4365_v61 = vpack.c.bf16 %v3130_v58, %v3130_v58  ;;  %v2745_v62 = vadd.f32 %v5491_v60, %v2464_v55  ;;  %v2456_v63 = vadd.f32 %v2455_v56, %v1395_v53  ;;  %v4759_v0 = vpop.f32.mrf.mxu1 }
 0x173   : > { %3766 = vst.msk [vmem:[%s5241_s17 + $0x124] sm:$0xf] %vm3692_vm3, %v4360_v57  ;;  %v3128_v1 = vsel %vm2871_vm6, %v2742_v52, %v3000_v59  ;;  %v2477_v2 = vadd.f32 %v4759_v0, %v4629_v44  ;;  %v1408_v3 = vpop.f32.mrf.mxu0 }
 0x174   : > { %3771 = vst.msk [vmem:[%s5241_s17 + $0x138] sm:$0xf] %vm3692_vm3, %v4365_v61  ;;  %v4363_v4 = vpack.c.bf16 %v3128_v1, %v3128_v1  ;;  %vm2874_vm7 = vcmp.gt.f32.partialorder %v2745_v62, 0.0  ;;  %v3003_v5 = vmul.f32 %v5228_v47, %v2745_v62  ;;  %v2743_v6 = vadd.f32 %v5491_v60, %v2456_v63  ;;  %v2468_v7 = vpop.f32.mrf.mxu1 }
 0x175   : > { %v2748_v8 = vadd.f32 %v5491_v60, %v2477_v2  ;;  %v2469_v9 = vadd.f32 %v2468_v7, %v1408_v3  ;;  %v4630_v10 = vpop.f32.mrf.mxu0 }
 0x176   : > { %3769 = vst.msk [vmem:[%s5241_s17 + $0x130] sm:$0xf] %vm3692_vm3, %v4363_v4  ;;  %v3131_v11 = vsel %vm2874_vm7, %v2745_v62, %v3003_v5  ;;  %vm2872_vm8 = vcmp.gt.f32.partialorder %v2743_v6, 0.0  ;;  %v3001_v12 = vmul.f32 %v5228_v47, %v2743_v6  ;;  %v4760_v13 = vpop.f32.mrf.mxu1 }
 0x177   : > { %v4366_v14 = vpack.c.bf16 %v3131_v11, %v3131_v11  ;;  %vm2877_vm9 = vcmp.gt.f32.partialorder %v2748_v8, 0.0  ;;  %v3006_v15 = vmul.f32 %v5228_v47, %v2748_v8  ;;  %v2746_v16 = vadd.f32 %v5491_v60, %v2469_v9  ;;  %v1411_v17 = vpop.f32.mrf.mxu0 }
 0x178   : > { %v3129_v18 = vsel %vm2872_vm8, %v2743_v6, %v3001_v12  ;;  %v2480_v19 = vadd.f32 %v4760_v13, %v4630_v10  ;;  %v2471_v20 = vpop.f32.mrf.mxu1 }
 0x179   : > { %3772 = vst.msk [vmem:[%s5241_s17 + $0x13c] sm:$0xf] %vm3692_vm3, %v4366_v14  ;;  %v4364_v21 = vpack.c.bf16 %v3129_v18, %v3129_v18  ;;  %v3134_v22 = vsel %vm2877_vm9, %v2748_v8, %v3006_v15  ;;  %vm2875_vm10 = vcmp.gt.f32.partialorder %v2746_v16, 0.0  ;;  %v3004_v23 = vmul.f32 %v5228_v47, %v2746_v16  ;;  %v4633_v24 = vpop.f32.mrf.mxu0 }
 0x17a   : > { %v4369_v25 = vpack.c.bf16 %v3134_v22, %v3134_v22  ;;  %v2749_v26 = vadd.f32 %v5491_v60, %v2480_v19  ;;  %v2472_v27 = vadd.f32 %v2471_v20, %v1411_v17  ;;  %v4763_v28 = vpop.f32.mrf.mxu1 }
 0x17b   : > { %3770 = vst.msk [vmem:[%s5241_s17 + $0x134] sm:$0xf] %vm3692_vm3, %v4364_v21  ;;  %v3132_v29 = vsel %vm2875_vm10, %v2746_v16, %v3004_v23  ;;  %v2493_v30 = vadd.f32 %v4763_v28, %v4633_v24  ;;  %v1424_v31 = vpop.f32.mrf.mxu0 }
 0x17c   : > { %3775 = vst.msk [vmem:[%s5241_s17 + $0x148] sm:$0xf] %vm3692_vm3, %v4369_v25  ;;  %v4367_v32 = vpack.c.bf16 %v3132_v29, %v3132_v29  ;;  %vm2878_vm11 = vcmp.gt.f32.partialorder %v2749_v26, 0.0  ;;  %v3007_v33 = vmul.f32 %v5228_v47, %v2749_v26  ;;  %v2747_v34 = vadd.f32 %v5491_v60, %v2472_v27  ;;  %v2484_v35 = vpop.f32.mrf.mxu1 }
 0x17d   : > { %v2752_v36 = vadd.f32 %v5491_v60, %v2493_v30  ;;  %v2485_v37 = vadd.f32 %v2484_v35, %v1424_v31  ;;  %v4634_v38 = vpop.f32.mrf.mxu0 }
 0x17e   : > { %3773 = vst.msk [vmem:[%s5241_s17 + $0x140] sm:$0xf] %vm3692_vm3, %v4367_v32  ;;  %v3135_v39 = vsel %vm2878_vm11, %v2749_v26, %v3007_v33  ;;  %vm2876_vm12 = vcmp.gt.f32.partialorder %v2747_v34, 0.0  ;;  %v3005_v40 = vmul.f32 %v5228_v47, %v2747_v34  ;;  %v4764_v41 = vpop.f32.mrf.mxu1 }
 0x17f   : > { %v4370_v42 = vpack.c.bf16 %v3135_v39, %v3135_v39  ;;  %vm2881_vm13 = vcmp.gt.f32.partialorder %v2752_v36, 0.0  ;;  %v3010_v43 = vmul.f32 %v5228_v47, %v2752_v36  ;;  %v2750_v45 = vadd.f32 %v5491_v60, %v2485_v37  ;;  %v1427_v46 = vpop.f32.mrf.mxu0 }
 0x180   : > { %v3133_v48 = vsel %vm2876_vm12, %v2747_v34, %v3005_v40  ;;  %v2496_v49 = vadd.f32 %v4764_v41, %v4634_v38  ;;  %v2487_v50 = vpop.f32.mrf.mxu1 }
 0x181   : > { %3776 = vst.msk [vmem:[%s5241_s17 + $0x14c] sm:$0xf] %vm3692_vm3, %v4370_v42  ;;  %v4368_v51 = vpack.c.bf16 %v3133_v48, %v3133_v48  ;;  %v3138_v52 = vsel %vm2881_vm13, %v2752_v36, %v3010_v43  ;;  %vm2879_vm14 = vcmp.gt.f32.partialorder %v2750_v45, 0.0  ;;  %v3008_v53 = vmul.f32 %v5228_v47, %v2750_v45  ;;  %v4637_v54 = vpop.f32.mrf.mxu0 }
 0x182   : > { %v4373_v55 = vpack.c.bf16 %v3138_v52, %v3138_v52  ;;  %v2753_v56 = vadd.f32 %v5491_v60, %v2496_v49  ;;  %v2488_v57 = vadd.f32 %v2487_v50, %v1427_v46  ;;  %v4767_v58 = vpop.f32.mrf.mxu1 }
 0x183   : > { %3774 = vst.msk [vmem:[%s5241_s17 + $0x144] sm:$0xf] %vm3692_vm3, %v4368_v51  ;;  %v3136_v59 = vsel %vm2879_vm14, %v2750_v45, %v3008_v53  ;;  %v2509_v44 = vadd.f32 %v4767_v58, %v4637_v54  ;;  %v1440_v61 = vpop.f32.mrf.mxu0 }
 0x184   : > { %3779 = vst.msk [vmem:[%s5241_s17 + $0x158] sm:$0xf] %vm3692_vm3, %v4373_v55  ;;  %v4371_v62 = vpack.c.bf16 %v3136_v59, %v3136_v59  ;;  %vm2882_vm15 = vcmp.gt.f32.partialorder %v2753_v56, 0.0  ;;  %v3011_v63 = vmul.f32 %v5228_v47, %v2753_v56  ;;  %v2751_v0 = vadd.f32 %v5491_v60, %v2488_v57  ;;  %v2500_v1 = vpop.f32.mrf.mxu1 }
 0x185   : > { %v2756_v2 = vadd.f32 %v5491_v60, %v2509_v44  ;;  %v2501_v3 = vadd.f32 %v2500_v1, %v1440_v61  ;;  %v4638_v4 = vpop.f32.mrf.mxu0 }
 0x186   : > { %3777 = vst.msk [vmem:[%s5241_s17 + $0x150] sm:$0xf] %vm3692_vm3, %v4371_v62  ;;  %v3139_v5 = vsel %vm2882_vm15, %v2753_v56, %v3011_v63  ;;  %vm2880_vm1 = vcmp.gt.f32.partialorder %v2751_v0, 0.0  ;;  %v3009_v6 = vmul.f32 %v5228_v47, %v2751_v0  ;;  %v4768_v7 = vpop.f32.mrf.mxu1 }
 0x187   : > { %v4374_v8 = vpack.c.bf16 %v3139_v5, %v3139_v5  ;;  %vm2885_vm0 = vcmp.gt.f32.partialorder %v2756_v2, 0.0  ;;  %v3014_v9 = vmul.f32 %v5228_v47, %v2756_v2  ;;  %v2754_v10 = vadd.f32 %v5491_v60, %v2501_v3  ;;  %v1443_v11 = vpop.f32.mrf.mxu0 }
 0x188   : > { %v3137_v12 = vsel %vm2880_vm1, %v2751_v0, %v3009_v6  ;;  %v2512_v13 = vadd.f32 %v4768_v7, %v4638_v4  ;;  %v2503_v14 = vpop.f32.mrf.mxu1 }
 0x189   : > { %3780 = vst.msk [vmem:[%s5241_s17 + $0x15c] sm:$0xf] %vm3692_vm3, %v4374_v8  ;;  %v4372_v15 = vpack.c.bf16 %v3137_v12, %v3137_v12  ;;  %v3142_v16 = vsel %vm2885_vm0, %v2756_v2, %v3014_v9  ;;  %vm2883_vm2 = vcmp.gt.f32.partialorder %v2754_v10, 0.0  ;;  %v3012_v17 = vmul.f32 %v5228_v47, %v2754_v10  ;;  %v4641_v18 = vpop.f32.mrf.mxu0 }
 0x18a   : > { %v4377_v19 = vpack.c.bf16 %v3142_v16, %v3142_v16  ;;  %v2757_v20 = vadd.f32 %v5491_v60, %v2512_v13  ;;  %v2504_v21 = vadd.f32 %v2503_v14, %v1443_v11  ;;  %v4771_v22 = vpop.f32.mrf.mxu1 }
 0x18b   : > { %3778 = vst.msk [vmem:[%s5241_s17 + $0x154] sm:$0xf] %vm3692_vm3, %v4372_v15  ;;  %v3140_v23 = vsel %vm2883_vm2, %v2754_v10, %v3012_v17  ;;  %v2525_v24 = vadd.f32 %v4771_v22, %v4641_v18  ;;  %v1456_v25 = vpop.f32.mrf.mxu0 }
 0x18c   : > { %3783 = vst.msk [vmem:[%s5241_s17 + $0x168] sm:$0xf] %vm3692_vm3, %v4377_v19  ;;  %v4375_v26 = vpack.c.bf16 %v3140_v23, %v3140_v23  ;;  %vm2886_vm4 = vcmp.gt.f32.partialorder %v2757_v20, 0.0  ;;  %v3015_v27 = vmul.f32 %v5228_v47, %v2757_v20  ;;  %v2755_v28 = vadd.f32 %v5491_v60, %v2504_v21  ;;  %v2516_v29 = vpop.f32.mrf.mxu1 }
 0x18d   : > { %v2760_v30 = vadd.f32 %v5491_v60, %v2525_v24  ;;  %v2517_v31 = vadd.f32 %v2516_v29, %v1456_v25  ;;  %v4642_v32 = vpop.f32.mrf.mxu0 }
 0x18e   : > { %3781 = vst.msk [vmem:[%s5241_s17 + $0x160] sm:$0xf] %vm3692_vm3, %v4375_v26  ;;  %v3143_v33 = vsel %vm2886_vm4, %v2757_v20, %v3015_v27  ;;  %vm2884_vm5 = vcmp.gt.f32.partialorder %v2755_v28, 0.0  ;;  %v3013_v34 = vmul.f32 %v5228_v47, %v2755_v28  ;;  %v4772_v35 = vpop.f32.mrf.mxu1 }
 0x18f   : > { %v4378_v36 = vpack.c.bf16 %v3143_v33, %v3143_v33  ;;  %vm2889_vm6 = vcmp.gt.f32.partialorder %v2760_v30, 0.0  ;;  %v3018_v37 = vmul.f32 %v5228_v47, %v2760_v30  ;;  %v2758_v38 = vadd.f32 %v5491_v60, %v2517_v31  ;;  %v1459_v39 = vpop.f32.mrf.mxu0 }
 0x190   : > { %v3141_v40 = vsel %vm2884_vm5, %v2755_v28, %v3013_v34  ;;  %v2528_v41 = vadd.f32 %v4772_v35, %v4642_v32  ;;  %v2519_v42 = vpop.f32.mrf.mxu1 }
 0x191   : > { %3784 = vst.msk [vmem:[%s5241_s17 + $0x16c] sm:$0xf] %vm3692_vm3, %v4378_v36  ;;  %v4376_v43 = vpack.c.bf16 %v3141_v40, %v3141_v40  ;;  %v3146_v45 = vsel %vm2889_vm6, %v2760_v30, %v3018_v37  ;;  %vm2887_vm7 = vcmp.gt.f32.partialorder %v2758_v38, 0.0  ;;  %v3016_v46 = vmul.f32 %v5228_v47, %v2758_v38  ;;  %v4645_v48 = vpop.f32.mrf.mxu0 }
 0x192   : > { %v4381_v49 = vpack.c.bf16 %v3146_v45, %v3146_v45  ;;  %v2761_v50 = vadd.f32 %v5491_v60, %v2528_v41  ;;  %v2520_v51 = vadd.f32 %v2519_v42, %v1459_v39  ;;  %v4775_v52 = vpop.f32.mrf.mxu1 }
 0x193   : > { %3782 = vst.msk [vmem:[%s5241_s17 + $0x164] sm:$0xf] %vm3692_vm3, %v4376_v43  ;;  %v3144_v53 = vsel %vm2887_vm7, %v2758_v38, %v3016_v46  ;;  %v2541_v54 = vadd.f32 %v4775_v52, %v4645_v48  ;;  %v1472_v55 = vpop.f32.mrf.mxu0 }
 0x194   : > { %3787 = vst.msk [vmem:[%s5241_s17 + $0x178] sm:$0xf] %vm3692_vm3, %v4381_v49  ;;  %v4379_v56 = vpack.c.bf16 %v3144_v53, %v3144_v53  ;;  %vm2890_vm8 = vcmp.gt.f32.partialorder %v2761_v50, 0.0  ;;  %v3019_v57 = vmul.f32 %v5228_v47, %v2761_v50  ;;  %v2759_v58 = vadd.f32 %v5491_v60, %v2520_v51  ;;  %v2532_v59 = vpop.f32.mrf.mxu1 }
 0x195   : > { %v2764_v44 = vadd.f32 %v5491_v60, %v2541_v54  ;;  %v2533_v61 = vadd.f32 %v2532_v59, %v1472_v55  ;;  %v4646_v62 = vpop.f32.mrf.mxu0 }
 0x196   : > { %3785 = vst.msk [vmem:[%s5241_s17 + $0x170] sm:$0xf] %vm3692_vm3, %v4379_v56  ;;  %v3147_v63 = vsel %vm2890_vm8, %v2761_v50, %v3019_v57  ;;  %vm2888_vm9 = vcmp.gt.f32.partialorder %v2759_v58, 0.0  ;;  %v3017_v0 = vmul.f32 %v5228_v47, %v2759_v58  ;;  %v4776_v1 = vpop.f32.mrf.mxu1 }
 0x197   : > { %v4382_v2 = vpack.c.bf16 %v3147_v63, %v3147_v63  ;;  %vm2893_vm10 = vcmp.gt.f32.partialorder %v2764_v44, 0.0  ;;  %v3022_v3 = vmul.f32 %v5228_v47, %v2764_v44  ;;  %v2762_v4 = vadd.f32 %v5491_v60, %v2533_v61  ;;  %v1475_v5 = vpop.f32.mrf.mxu0 }
 0x198   : > { %v3145_v6 = vsel %vm2888_vm9, %v2759_v58, %v3017_v0  ;;  %v2544_v7 = vadd.f32 %v4776_v1, %v4646_v62  ;;  %v2535_v8 = vpop.f32.mrf.mxu1 }
 0x199   : > { %3788 = vst.msk [vmem:[%s5241_s17 + $0x17c] sm:$0xf] %vm3692_vm3, %v4382_v2  ;;  %v4380_v9 = vpack.c.bf16 %v3145_v6, %v3145_v6  ;;  %v3150_v10 = vsel %vm2893_vm10, %v2764_v44, %v3022_v3  ;;  %vm2891_vm11 = vcmp.gt.f32.partialorder %v2762_v4, 0.0  ;;  %v3020_v11 = vmul.f32 %v5228_v47, %v2762_v4  ;;  %v4649_v12 = vpop.f32.mrf.mxu0 }
 0x19a   : > { %v4385_v13 = vpack.c.bf16 %v3150_v10, %v3150_v10  ;;  %v2765_v14 = vadd.f32 %v5491_v60, %v2544_v7  ;;  %v2536_v15 = vadd.f32 %v2535_v8, %v1475_v5  ;;  %v4779_v16 = vpop.f32.mrf.mxu1 }
 0x19b   : > { %3786 = vst.msk [vmem:[%s5241_s17 + $0x174] sm:$0xf] %vm3692_vm3, %v4380_v9  ;;  %v3148_v17 = vsel %vm2891_vm11, %v2762_v4, %v3020_v11  ;;  %v2557_v18 = vadd.f32 %v4779_v16, %v4649_v12  ;;  %v1488_v19 = vpop.f32.mrf.mxu0 }
 0x19c   : > { %3791 = vst.msk [vmem:[%s5241_s17 + $0x188] sm:$0xf] %vm3692_vm3, %v4385_v13  ;;  %v4383_v20 = vpack.c.bf16 %v3148_v17, %v3148_v17  ;;  %vm2894_vm12 = vcmp.gt.f32.partialorder %v2765_v14, 0.0  ;;  %v3023_v21 = vmul.f32 %v5228_v47, %v2765_v14  ;;  %v2763_v22 = vadd.f32 %v5491_v60, %v2536_v15  ;;  %v2548_v23 = vpop.f32.mrf.mxu1 }
 0x19d   : > { %v2768_v24 = vadd.f32 %v5491_v60, %v2557_v18  ;;  %v2549_v25 = vadd.f32 %v2548_v23, %v1488_v19  ;;  %v4650_v26 = vpop.f32.mrf.mxu0 }
 0x19e   : > { %3789 = vst.msk [vmem:[%s5241_s17 + $0x180] sm:$0xf] %vm3692_vm3, %v4383_v20  ;;  %v3151_v27 = vsel %vm2894_vm12, %v2765_v14, %v3023_v21  ;;  %vm2892_vm13 = vcmp.gt.f32.partialorder %v2763_v22, 0.0  ;;  %v3021_v28 = vmul.f32 %v5228_v47, %v2763_v22  ;;  %v4780_v29 = vpop.f32.mrf.mxu1 }
 0x19f   : > { %v4386_v30 = vpack.c.bf16 %v3151_v27, %v3151_v27  ;;  %vm2897_vm14 = vcmp.gt.f32.partialorder %v2768_v24, 0.0  ;;  %v3026_v31 = vmul.f32 %v5228_v47, %v2768_v24  ;;  %v2766_v32 = vadd.f32 %v5491_v60, %v2549_v25  ;;  %v1491_v33 = vpop.f32.mrf.mxu0 }
 0x1a0   : > { %v3149_v34 = vsel %vm2892_vm13, %v2763_v22, %v3021_v28  ;;  %v2560_v35 = vadd.f32 %v4780_v29, %v4650_v26  ;;  %v2551_v36 = vpop.f32.mrf.mxu1  ;;  %v5726_v26 = vld [vmem:[%s5817_s4] ss:$0 sm:$0xff] }
 0x1a1   : > { %3792 = vst.msk [vmem:[%s5241_s17 + $0x18c] sm:$0xf] %vm3692_vm3, %v4386_v30  ;;  %v4384_v37 = vpack.c.bf16 %v3149_v34, %v3149_v34  ;;  %v3154_v38 = vsel %vm2897_vm14, %v2768_v24, %v3026_v31  ;;  %vm2895_vm15 = vcmp.gt.f32.partialorder %v2766_v32, 0.0  ;;  %v3024_v39 = vmul.f32 %v5228_v47, %v2766_v32  ;;  %v4653_v40 = vpop.f32.mrf.mxu0 }
 0x1a2   : > { %v4389_v41 = vpack.c.bf16 %v3154_v38, %v3154_v38  ;;  %v2769_v42 = vadd.f32 %v5491_v60, %v2560_v35  ;;  %v2552_v43 = vadd.f32 %v2551_v36, %v1491_v33  ;;  %v4783_v45 = vpop.f32.mrf.mxu1 }
 0x1a3   : > { %3790 = vst.msk [vmem:[%s5241_s17 + $0x184] sm:$0xf] %vm3692_vm3, %v4384_v37  ;;  %v3152_v46 = vsel %vm2895_vm15, %v2766_v32, %v3024_v39  ;;  %v2573_v48 = vadd.f32 %v4783_v45, %v4653_v40  ;;  %v1504_v49 = vpop.f32.mrf.mxu0 }
 0x1a4   : > { %3795 = vst.msk [vmem:[%s5241_s17 + $0x198] sm:$0xf] %vm3692_vm3, %v4389_v41  ;;  %v4387_v50 = vpack.c.bf16 %v3152_v46, %v3152_v46  ;;  %vm2898_vm1 = vcmp.gt.f32.partialorder %v2769_v42, 0.0  ;;  %v3027_v51 = vmul.f32 %v5228_v47, %v2769_v42  ;;  %v2767_v52 = vadd.f32 %v5491_v60, %v2552_v43  ;;  %v2564_v53 = vpop.f32.mrf.mxu1 }
 0x1a5   : > { %v2772_v54 = vadd.f32 %v5491_v60, %v2573_v48  ;;  %v2565_v55 = vadd.f32 %v2564_v53, %v1504_v49  ;;  %v4654_v56 = vpop.f32.mrf.mxu0 }
 0x1a6   : > { %3793 = vst.msk [vmem:[%s5241_s17 + $0x190] sm:$0xf] %vm3692_vm3, %v4387_v50  ;;  %v3155_v57 = vsel %vm2898_vm1, %v2769_v42, %v3027_v51  ;;  %vm2896_vm0 = vcmp.gt.f32.partialorder %v2767_v52, 0.0  ;;  %v3025_v58 = vmul.f32 %v5228_v47, %v2767_v52  ;;  %v4784_v59 = vpop.f32.mrf.mxu1 }
 0x1a7   : > { %v4390_v44 = vpack.c.bf16 %v3155_v57, %v3155_v57  ;;  %vm2901_vm2 = vcmp.gt.f32.partialorder %v2772_v54, 0.0  ;;  %v3030_v61 = vmul.f32 %v5228_v47, %v2772_v54  ;;  %v2770_v62 = vadd.f32 %v5491_v60, %v2565_v55  ;;  %v1507_v63 = vpop.f32.mrf.mxu0 }
 0x1a8   : > { %v3153_v0 = vsel %vm2896_vm0, %v2767_v52, %v3025_v58  ;;  %v2576_v1 = vadd.f32 %v4784_v59, %v4654_v56  ;;  %v2567_v2 = vpop.f32.mrf.mxu1 }
 0x1a9   : > { %3796 = vst.msk [vmem:[%s5241_s17 + $0x19c] sm:$0xf] %vm3692_vm3, %v4390_v44  ;;  %v4388_v3 = vpack.c.bf16 %v3153_v0, %v3153_v0  ;;  %v3158_v4 = vsel %vm2901_vm2, %v2772_v54, %v3030_v61  ;;  %vm2899_vm4 = vcmp.gt.f32.partialorder %v2770_v62, 0.0  ;;  %v3028_v5 = vmul.f32 %v5228_v47, %v2770_v62  ;;  %v4657_v6 = vpop.f32.mrf.mxu0 }
 0x1aa   : > { %v4393_v7 = vpack.c.bf16 %v3158_v4, %v3158_v4  ;;  %v2773_v8 = vadd.f32 %v5491_v60, %v2576_v1  ;;  %v2568_v9 = vadd.f32 %v2567_v2, %v1507_v63  ;;  %v4787_v10 = vpop.f32.mrf.mxu1 }
 0x1ab   : > { %3794 = vst.msk [vmem:[%s5241_s17 + $0x194] sm:$0xf] %vm3692_vm3, %v4388_v3  ;;  %v3156_v11 = vsel %vm2899_vm4, %v2770_v62, %v3028_v5  ;;  %v2589_v12 = vadd.f32 %v4787_v10, %v4657_v6  ;;  %v1520_v13 = vpop.f32.mrf.mxu0 }
 0x1ac   : > { %3799 = vst.msk [vmem:[%s5241_s17 + $0x1a8] sm:$0xf] %vm3692_vm3, %v4393_v7  ;;  %v4391_v14 = vpack.c.bf16 %v3156_v11, %v3156_v11  ;;  %vm2902_vm5 = vcmp.gt.f32.partialorder %v2773_v8, 0.0  ;;  %v3031_v15 = vmul.f32 %v5228_v47, %v2773_v8  ;;  %v2771_v16 = vadd.f32 %v5491_v60, %v2568_v9  ;;  %v2580_v17 = vpop.f32.mrf.mxu1 }
 0x1ad   : > { %v2776_v18 = vadd.f32 %v5491_v60, %v2589_v12  ;;  %v2581_v19 = vadd.f32 %v2580_v17, %v1520_v13  ;;  %v4658_v20 = vpop.f32.mrf.mxu0 }
 0x1ae   : > { %3797 = vst.msk [vmem:[%s5241_s17 + $0x1a0] sm:$0xf] %vm3692_vm3, %v4391_v14  ;;  %v3159_v21 = vsel %vm2902_vm5, %v2773_v8, %v3031_v15  ;;  %vm2900_vm6 = vcmp.gt.f32.partialorder %v2771_v16, 0.0  ;;  %v3029_v22 = vmul.f32 %v5228_v47, %v2771_v16  ;;  %v4788_v23 = vpop.f32.mrf.mxu1 }
 0x1af   : > { %v4394_v24 = vpack.c.bf16 %v3159_v21, %v3159_v21  ;;  %vm2905_vm7 = vcmp.gt.f32.partialorder %v2776_v18, 0.0  ;;  %v3034_v25 = vmul.f32 %v5228_v47, %v2776_v18  ;;  %v2774_v60 = vadd.f32 %v5726_v26, %v2581_v19  ;;  %v1523_v27 = vpop.f32.mrf.mxu0 }
 0x1b0   : > { %v3157_v28 = vsel %vm2900_vm6, %v2771_v16, %v3029_v22  ;;  %v2592_v29 = vadd.f32 %v4788_v23, %v4658_v20  ;;  %v2583_v30 = vpop.f32.mrf.mxu1 }
 0x1b1   : > { %3800 = vst.msk [vmem:[%s5241_s17 + $0x1ac] sm:$0xf] %vm3692_vm3, %v4394_v24  ;;  %v4392_v31 = vpack.c.bf16 %v3157_v28, %v3157_v28  ;;  %v3162_v32 = vsel %vm2905_vm7, %v2776_v18, %v3034_v25  ;;  %vm2903_vm8 = vcmp.gt.f32.partialorder %v2774_v60, 0.0  ;;  %v3032_v33 = vmul.f32 %v5228_v47, %v2774_v60  ;;  %v4661_v34 = vpop.f32.mrf.mxu0 }
 0x1b2   : > { %v4397_v35 = vpack.c.bf16 %v3162_v32, %v3162_v32  ;;  %v2777_v36 = vadd.f32 %v5726_v26, %v2592_v29  ;;  %v2584_v37 = vadd.f32 %v2583_v30, %v1523_v27  ;;  %v4791_v38 = vpop.f32.mrf.mxu1 }
 0x1b3   : > { %3798 = vst.msk [vmem:[%s5241_s17 + $0x1a4] sm:$0xf] %vm3692_vm3, %v4392_v31  ;;  %v3160_v39 = vsel %vm2903_vm8, %v2774_v60, %v3032_v33  ;;  %v2605_v40 = vadd.f32 %v4791_v38, %v4661_v34  ;;  %v1536_v41 = vpop.f32.mrf.mxu0 }
 0x1b4   : > { %3803 = vst.msk [vmem:[%s5241_s17 + $0x1b8] sm:$0xf] %vm3692_vm3, %v4397_v35  ;;  %v4395_v42 = vpack.c.bf16 %v3160_v39, %v3160_v39  ;;  %vm2906_vm9 = vcmp.gt.f32.partialorder %v2777_v36, 0.0  ;;  %v3035_v43 = vmul.f32 %v5228_v47, %v2777_v36  ;;  %v2775_v45 = vadd.f32 %v5726_v26, %v2584_v37  ;;  %v2596_v46 = vpop.f32.mrf.mxu1 }
 0x1b5   : > { %v2780_v48 = vadd.f32 %v5726_v26, %v2605_v40  ;;  %v2597_v49 = vadd.f32 %v2596_v46, %v1536_v41  ;;  %v4662_v50 = vpop.f32.mrf.mxu0 }
 0x1b6   : > { %3801 = vst.msk [vmem:[%s5241_s17 + $0x1b0] sm:$0xf] %vm3692_vm3, %v4395_v42  ;;  %v3163_v51 = vsel %vm2906_vm9, %v2777_v36, %v3035_v43  ;;  %vm2904_vm10 = vcmp.gt.f32.partialorder %v2775_v45, 0.0  ;;  %v3033_v52 = vmul.f32 %v5228_v47, %v2775_v45  ;;  %v4792_v53 = vpop.f32.mrf.mxu1 }
 0x1b7   : > { %v4398_v54 = vpack.c.bf16 %v3163_v51, %v3163_v51  ;;  %vm2909_vm11 = vcmp.gt.f32.partialorder %v2780_v48, 0.0  ;;  %v3038_v55 = vmul.f32 %v5228_v47, %v2780_v48  ;;  %v2778_v56 = vadd.f32 %v5726_v26, %v2597_v49  ;;  %v1539_v57 = vpop.f32.mrf.mxu0 }
 0x1b8   : > { %v3161_v58 = vsel %vm2904_vm10, %v2775_v45, %v3033_v52  ;;  %v2608_v59 = vadd.f32 %v4792_v53, %v4662_v50  ;;  %v2599_v44 = vpop.f32.mrf.mxu1 }
 0x1b9   : > { %3804 = vst.msk [vmem:[%s5241_s17 + $0x1bc] sm:$0xf] %vm3692_vm3, %v4398_v54  ;;  %v4396_v61 = vpack.c.bf16 %v3161_v58, %v3161_v58  ;;  %v3166_v62 = vsel %vm2909_vm11, %v2780_v48, %v3038_v55  ;;  %vm2907_vm12 = vcmp.gt.f32.partialorder %v2778_v56, 0.0  ;;  %v3036_v63 = vmul.f32 %v5228_v47, %v2778_v56  ;;  %v4665_v0 = vpop.f32.mrf.mxu0 }
 0x1ba   : > { %v4401_v1 = vpack.c.bf16 %v3166_v62, %v3166_v62  ;;  %v2781_v2 = vadd.f32 %v5726_v26, %v2608_v59  ;;  %v2600_v3 = vadd.f32 %v2599_v44, %v1539_v57  ;;  %v4795_v4 = vpop.f32.mrf.mxu1 }
 0x1bb   : > { %3802 = vst.msk [vmem:[%s5241_s17 + $0x1b4] sm:$0xf] %vm3692_vm3, %v4396_v61  ;;  %v3164_v5 = vsel %vm2907_vm12, %v2778_v56, %v3036_v63  ;;  %v2621_v6 = vadd.f32 %v4795_v4, %v4665_v0  ;;  %v1552_v7 = vpop.f32.mrf.mxu0 }
 0x1bc   : > { %3807 = vst.msk [vmem:[%s5241_s17 + $0x1c8] sm:$0xf] %vm3692_vm3, %v4401_v1  ;;  %v4399_v8 = vpack.c.bf16 %v3164_v5, %v3164_v5  ;;  %vm2910_vm13 = vcmp.gt.f32.partialorder %v2781_v2, 0.0  ;;  %v3039_v9 = vmul.f32 %v5228_v47, %v2781_v2  ;;  %v2779_v10 = vadd.f32 %v5726_v26, %v2600_v3  ;;  %v2612_v11 = vpop.f32.mrf.mxu1 }
 0x1bd   : > { %v2784_v12 = vadd.f32 %v5726_v26, %v2621_v6  ;;  %v2613_v13 = vadd.f32 %v2612_v11, %v1552_v7  ;;  %v4666_v14 = vpop.f32.mrf.mxu0 }
 0x1be   : > { %3805 = vst.msk [vmem:[%s5241_s17 + $0x1c0] sm:$0xf] %vm3692_vm3, %v4399_v8  ;;  %v3167_v15 = vsel %vm2910_vm13, %v2781_v2, %v3039_v9  ;;  %vm2908_vm14 = vcmp.gt.f32.partialorder %v2779_v10, 0.0  ;;  %v3037_v16 = vmul.f32 %v5228_v47, %v2779_v10  ;;  %v4796_v17 = vpop.f32.mrf.mxu1 }
 0x1bf   : > { %v4402_v18 = vpack.c.bf16 %v3167_v15, %v3167_v15  ;;  %vm2913_vm15 = vcmp.gt.f32.partialorder %v2784_v12, 0.0  ;;  %v3042_v19 = vmul.f32 %v5228_v47, %v2784_v12  ;;  %v2782_v20 = vadd.f32 %v5726_v26, %v2613_v13  ;;  %v1555_v21 = vpop.f32.mrf.mxu0 }
 0x1c0   : > { %v3165_v22 = vsel %vm2908_vm14, %v2779_v10, %v3037_v16  ;;  %v2624_v23 = vadd.f32 %v4796_v17, %v4666_v14  ;;  %v2615_v24 = vpop.f32.mrf.mxu1 }
 0x1c1   : > { %3808 = vst.msk [vmem:[%s5241_s17 + $0x1cc] sm:$0xf] %vm3692_vm3, %v4402_v18  ;;  %v4400_v25 = vpack.c.bf16 %v3165_v22, %v3165_v22  ;;  %v3170_v60 = vsel %vm2913_vm15, %v2784_v12, %v3042_v19  ;;  %vm2911_vm1 = vcmp.gt.f32.partialorder %v2782_v20, 0.0  ;;  %v3040_v27 = vmul.f32 %v5228_v47, %v2782_v20  ;;  %v4669_v28 = vpop.f32.mrf.mxu0 }
 0x1c2   : > { %v4405_v29 = vpack.c.bf16 %v3170_v60, %v3170_v60  ;;  %v2785_v30 = vadd.f32 %v5726_v26, %v2624_v23  ;;  %v2616_v31 = vadd.f32 %v2615_v24, %v1555_v21  ;;  %v4799_v32 = vpop.f32.mrf.mxu1 }
 0x1c3   : > { %3806 = vst.msk [vmem:[%s5241_s17 + $0x1c4] sm:$0xf] %vm3692_vm3, %v4400_v25  ;;  %v3168_v33 = vsel %vm2911_vm1, %v2782_v20, %v3040_v27  ;;  %v2637_v34 = vadd.f32 %v4799_v32, %v4669_v28  ;;  %v1568_v35 = vpop.f32.mrf.mxu0 }
 0x1c4   : > { %3811 = vst.msk [vmem:[%s5241_s17 + $0x1d8] sm:$0xf] %vm3692_vm3, %v4405_v29  ;;  %v4403_v36 = vpack.c.bf16 %v3168_v33, %v3168_v33  ;;  %vm2914_vm0 = vcmp.gt.f32.partialorder %v2785_v30, 0.0  ;;  %v3043_v37 = vmul.f32 %v5228_v47, %v2785_v30  ;;  %v2783_v38 = vadd.f32 %v5726_v26, %v2616_v31  ;;  %v2628_v39 = vpop.f32.mrf.mxu1 }
 0x1c5   : > { %v2788_v40 = vadd.f32 %v5726_v26, %v2637_v34  ;;  %v2629_v41 = vadd.f32 %v2628_v39, %v1568_v35  ;;  %v4670_v42 = vpop.f32.mrf.mxu0 }
 0x1c6   : > { %3809 = vst.msk [vmem:[%s5241_s17 + $0x1d0] sm:$0xf] %vm3692_vm3, %v4403_v36  ;;  %v3171_v43 = vsel %vm2914_vm0, %v2785_v30, %v3043_v37  ;;  %vm2912_vm2 = vcmp.gt.f32.partialorder %v2783_v38, 0.0  ;;  %v3041_v45 = vmul.f32 %v5228_v47, %v2783_v38  ;;  %v4800_v46 = vpop.f32.mrf.mxu1 }
 0x1c7   : > { %v4406_v48 = vpack.c.bf16 %v3171_v43, %v3171_v43  ;;  %vm2917_vm4 = vcmp.gt.f32.partialorder %v2788_v40, 0.0  ;;  %v3046_v49 = vmul.f32 %v5228_v47, %v2788_v40  ;;  %v2786_v50 = vadd.f32 %v5726_v26, %v2629_v41  ;;  %v1571_v51 = vpop.f32.mrf.mxu0 }
 0x1c8   : > { %v3169_v52 = vsel %vm2912_vm2, %v2783_v38, %v3041_v45  ;;  %v2640_v53 = vadd.f32 %v4800_v46, %v4670_v42  ;;  %v2631_v54 = vpop.f32.mrf.mxu1 }
 0x1c9   : > { %3812 = vst.msk [vmem:[%s5241_s17 + $0x1dc] sm:$0xf] %vm3692_vm3, %v4406_v48  ;;  %v4404_v55 = vpack.c.bf16 %v3169_v52, %v3169_v52  ;;  %v3174_v56 = vsel %vm2917_vm4, %v2788_v40, %v3046_v49  ;;  %vm2915_vm5 = vcmp.gt.f32.partialorder %v2786_v50, 0.0  ;;  %v3044_v57 = vmul.f32 %v5228_v47, %v2786_v50  ;;  %v4673_v58 = vpop.f32.mrf.mxu0 }
 0x1ca   : > { %v4409_v59 = vpack.c.bf16 %v3174_v56, %v3174_v56  ;;  %v2789_v44 = vadd.f32 %v5726_v26, %v2640_v53  ;;  %v2632_v61 = vadd.f32 %v2631_v54, %v1571_v51  ;;  %v4803_v62 = vpop.f32.mrf.mxu1 }
 0x1cb   : > { %3810 = vst.msk [vmem:[%s5241_s17 + $0x1d4] sm:$0xf] %vm3692_vm3, %v4404_v55  ;;  %v3172_v63 = vsel %vm2915_vm5, %v2786_v50, %v3044_v57  ;;  %v2653_v0 = vadd.f32 %v4803_v62, %v4673_v58  ;;  %v1584_v1 = vpop.f32.mrf.mxu0 }
 0x1cc   : > { %3815 = vst.msk [vmem:[%s5241_s17 + $0x1e8] sm:$0xf] %vm3692_vm3, %v4409_v59  ;;  %v4407_v2 = vpack.c.bf16 %v3172_v63, %v3172_v63  ;;  %vm2918_vm6 = vcmp.gt.f32.partialorder %v2789_v44, 0.0  ;;  %v3047_v3 = vmul.f32 %v5228_v47, %v2789_v44  ;;  %v2787_v4 = vadd.f32 %v5726_v26, %v2632_v61  ;;  %v2644_v5 = vpop.f32.mrf.mxu1 }
 0x1cd   : > { %v2792_v6 = vadd.f32 %v5726_v26, %v2653_v0  ;;  %v2645_v7 = vadd.f32 %v2644_v5, %v1584_v1  ;;  %v4674_v8 = vpop.f32.mrf.mxu0 }
 0x1ce   : > { %3813 = vst.msk [vmem:[%s5241_s17 + $0x1e0] sm:$0xf] %vm3692_vm3, %v4407_v2  ;;  %v3175_v9 = vsel %vm2918_vm6, %v2789_v44, %v3047_v3  ;;  %vm2916_vm7 = vcmp.gt.f32.partialorder %v2787_v4, 0.0  ;;  %v3045_v10 = vmul.f32 %v5228_v47, %v2787_v4  ;;  %v4804_v11 = vpop.f32.mrf.mxu1 }
 0x1cf   : > { %v4410_v12 = vpack.c.bf16 %v3175_v9, %v3175_v9  ;;  %vm2921_vm8 = vcmp.gt.f32.partialorder %v2792_v6, 0.0  ;;  %v3050_v13 = vmul.f32 %v5228_v47, %v2792_v6  ;;  %v2790_v14 = vadd.f32 %v5726_v26, %v2645_v7  ;;  %v1587_v15 = vpop.f32.mrf.mxu0 }
 0x1d0   : > { %v3173_v16 = vsel %vm2916_vm7, %v2787_v4, %v3045_v10  ;;  %v2656_v17 = vadd.f32 %v4804_v11, %v4674_v8  ;;  %v2647_v18 = vpop.f32.mrf.mxu1 }
 0x1d1   : > { %3816 = vst.msk [vmem:[%s5241_s17 + $0x1ec] sm:$0xf] %vm3692_vm3, %v4410_v12  ;;  %v4408_v19 = vpack.c.bf16 %v3173_v16, %v3173_v16  ;;  %v3178_v20 = vsel %vm2921_vm8, %v2792_v6, %v3050_v13  ;;  %vm2919_vm9 = vcmp.gt.f32.partialorder %v2790_v14, 0.0  ;;  %v3048_v21 = vmul.f32 %v5228_v47, %v2790_v14 }
 0x1d2   : > { %v4413_v22 = vpack.c.bf16 %v3178_v20, %v3178_v20  ;;  %v2793_v23 = vadd.f32 %v5726_v26, %v2656_v17  ;;  %v2648_v24 = vadd.f32 %v2647_v18, %v1587_v15 }
 0x1d3   : > { %3814 = vst.msk [vmem:[%s5241_s17 + $0x1e4] sm:$0xf] %vm3692_vm3, %v4408_v19  ;;  %v3176_v25 = vsel %vm2919_vm9, %v2790_v14, %v3048_v21 }
 0x1d4   : > { %3819 = vst.msk [vmem:[%s5241_s17 + $0x1f8] sm:$0xf] %vm3692_vm3, %v4413_v22  ;;  %v4411_v60 = vpack.c.bf16 %v3176_v25, %v3176_v25  ;;  %vm2922_vm10 = vcmp.gt.f32.partialorder %v2793_v23, 0.0  ;;  %v3051_v27 = vmul.f32 %v5228_v47, %v2793_v23  ;;  %v2791_v28 = vadd.f32 %v5726_v26, %v2648_v24 }
 0x1d6   : > { %3817 = vst.msk [vmem:[%s5241_s17 + $0x1f0] sm:$0xf] %vm3692_vm3, %v4411_v60  ;;  %v3179_v29 = vsel %vm2922_vm10, %v2793_v23, %v3051_v27  ;;  %vm2920_vm11 = vcmp.gt.f32.partialorder %v2791_v28, 0.0  ;;  %v3049_v30 = vmul.f32 %v5228_v47, %v2791_v28 }
 0x1d7   : > { %v4414_v31 = vpack.c.bf16 %v3179_v29, %v3179_v29 }
 0x1d8   : > { %v3177_v32 = vsel %vm2920_vm11, %v2791_v28, %v3049_v30 }
 0x1d9   : > { %3820 = vst.msk [vmem:[%s5241_s17 + $0x1fc] sm:$0xf] %vm3692_vm3, %v4414_v31  ;;  %v4412_v33 = vpack.c.bf16 %v3177_v32, %v3177_v32 }
 0x1db   : > { %3818 = vst.msk [vmem:[%s5241_s17 + $0x1f4] sm:$0xf] %vm3692_vm3, %v4412_v33 }
 0x1dc PF: > { %s17_s23 = sadd.s32 1, %s4951_s23  }
 0x1dd   : > { %p14_p4 = scmp.ge.s32.totalorder %s17_s23, 4  }
 0x1df   :  { %16 = sbr.rel (!%p14_p4) target bundleno = 2 (0x2), region = 77 }

</bundles_post_ra>
